<compile_context>
chip_gen: v5e
topology: v5e:2x2
jax: 0.10.0
libtpu: 0.0.40
codegen_flags: <defaults>
</compile_context>

<pallas_src>
import functools
import math

import jax
import jax.numpy as jnp
from jax import lax
from jax.experimental import pallas as pl
from jax.experimental.pallas import tpu as pltpu

F32 = jnp.float32
BF16 = jnp.bfloat16
OUT_PAD = 128  # lane-dense padded width of the final output store


# ----------------------------- in-kernel helpers -----------------------------

def _elu(x):
    # exp only sees the clamped branch -> no inf in the unselected lane
    return jnp.where(x > 0.0, x, jnp.exp(jnp.minimum(x, 0.0)) - 1.0)


def _layer_norm(x, gamma, beta, eps=1e-5):
    mean = jnp.mean(x, axis=-1, keepdims=True)
    xc = x - mean
    var = jnp.mean(xc * xc, axis=-1, keepdims=True)
    return xc * lax.rsqrt(var + eps) * gamma + beta


# --------------------------------- kernel ------------------------------------

def fused_net_kernel(x_ref, log_adj_ref,
                     enc_w1_ref, enc_w2_ref, enc_b_ref,
                     wqkv_ref, bqkv_ref, wo_ref, wf1_ref, wf2_ref,
                     bmisc_ref, bf1_ref,
                     ow1_ref, ow2_ref, ow3_ref, ob_ref,
                     o_ref, *, num_heads):
    N = x_ref.shape[0]
    num_layers = wqkv_ref.shape[0]
    H = wo_ref.shape[1]
    d_k = H // num_heads

    # Additive edge bias: log(edge count) on edges, -inf elsewhere (masks non-edges
    # and weights duplicate edges -> numerically equivalent to torch scatter-softmax).
    log_adj = log_adj_ref[...]                             # (N, N) f32

    # ------------------------------ lc_encode ---------------------------------
    enc_b = enc_b_ref[...]                                 # (2, H) f32
    h = jnp.dot(x_ref[...].astype(BF16), enc_w1_ref[...],
                preferred_element_type=F32) + enc_b[0:1, :]
    h = _elu(h)
    h = jnp.dot(h.astype(BF16), enc_w2_ref[...],
                preferred_element_type=F32) + enc_b[1:2, :]
    x0 = _elu(h)                                           # (N, H) f32

    # -------------------------- transformer layers ----------------------------
    def layer_body(l, x):
        wqkv = wqkv_ref[l]                                 # (H, 3H)  bf16
        bqkv = bqkv_ref[l]                                 # (1, 3H)  f32
        wo = wo_ref[l]                                     # (H, H)   bf16
        wf1 = wf1_ref[l]                                   # (H, 4H)  bf16
        wf2 = wf2_ref[l]                                   # (4H, H)  bf16
        bm = bmisc_ref[l]                                  # (8, H)   f32
        bo, g1, be1 = bm[0:1, :], bm[1:2, :], bm[2:3, :]
        g2, be2, b_ff2 = bm[3:4, :], bm[4:5, :], bm[5:6, :]
        b_ff1 = bf1_ref[l]                                 # (1, 4H)  f32

        # ---- fused, lane-dense QKV projection (1/sqrt(d_k) folded into Wq/bq) ----
        qkv = jnp.dot(x.astype(BF16), wqkv,
                      preferred_element_type=F32) + bqkv   # (N, 3H) f32
        q = qkv[:, 0 * H:1 * H]
        k = qkv[:, 1 * H:2 * H]
        v = qkv[:, 2 * H:3 * H]
        # head-major stacks (static lane slices -> no in-kernel dim-merging reshape)
        q_h = jnp.stack([q[:, hh * d_k:(hh + 1) * d_k] for hh in range(num_heads)],
                        axis=0).astype(BF16)               # (nh, N, dk)
        k_h = jnp.stack([k[:, hh * d_k:(hh + 1) * d_k] for hh in range(num_heads)],
                        axis=0).astype(BF16)
        v_h = jnp.stack([v[:, hh * d_k:(hh + 1) * d_k] for hh in range(num_heads)],
                        axis=0).astype(BF16)

        # ---- masked, count-weighted attention (dense scatter-softmax) ----
        s = jnp.einsum('htd,hsd->hts', q_h, k_h,
                       preferred_element_type=F32)         # (nh, N, N)
        s = s + log_adj                                    # non-edges -> -inf
        m = jnp.max(s, axis=-1, keepdims=True)
        m_safe = jnp.where(m > -jnp.inf, m, 0.0)           # targets with no edges
        p = jnp.exp(s - m_safe)
        denom = jnp.sum(p, axis=-1, keepdims=True) + 1e-16
        alpha = (p * pl.reciprocal(denom, approx=True)).astype(BF16)

        attn = jnp.einsum('hts,hsd->htd', alpha, v_h,
                          preferred_element_type=F32)      # (nh, N, dk)
        attn_flat = jnp.concatenate(
            [attn[hh] for hh in range(num_heads)], axis=-1).astype(BF16)  # (N, H)

        # ---- single output projection ----
        attn_out = jnp.dot(attn_flat, wo,
                           preferred_element_type=F32) + bo               # (N, H)

        x1 = _layer_norm(x + attn_out, g1, be1)

        # ---- feed-forward ----
        ff = jnp.dot(x1.astype(BF16), wf1, preferred_element_type=F32) + b_ff1
        ff = jnp.maximum(ff, 0.0)
        ff = jnp.dot(ff.astype(BF16), wf2, preferred_element_type=F32) + b_ff2
        return _layer_norm(x1 + ff, g2, be2)

    x = lax.fori_loop(0, num_layers, layer_body, x0)

    # ------------------------------ output head -------------------------------
    ob = ob_ref[...]                                       # (3, OUT_PAD) f32
    d1 = ow1_ref.shape[1]                                  # 64
    d2 = ow2_ref.shape[1]                                  # 32
    h = _elu(jnp.dot(x.astype(BF16), ow1_ref[...],
                     preferred_element_type=F32) + ob[0:1, :d1])
    h = _elu(jnp.dot(h.astype(BF16), ow2_ref[...],
                     preferred_element_type=F32) + ob[1:2, :d2])
    o_ref[...] = jnp.dot(h.astype(BF16), ow3_ref[...],
                         preferred_element_type=F32) + ob[2:3, :]


# ------------------------------- parameters ----------------------------------

def _linear(key, fan_in, fan_out):
    kw, kb = jax.random.split(key)
    bound = 1.0 / math.sqrt(fan_in)
    w = jax.random.uniform(kw, (fan_in, fan_out), F32, -bound, bound)
    b = jax.random.uniform(kb, (1, fan_out), F32, -bound, bound)
    return w, b


def init_params(key, hidden_dim=64, num_layers=4, contrastive_dim=8):
    keys = jax.random.split(key, 2 + num_layers + 3)
    params = {}
    # lc_encode: Linear(8, H), ELU, Linear(H, H), ELU
    params["enc_w1"], params["enc_b1"] = _linear(keys[0], 8, hidden_dim)
    params["enc_w2"], params["enc_b2"] = _linear(keys[1], hidden_dim, hidden_dim)
    layers = []
    for i in range(num_layers):
        sub = jax.random.split(keys[2 + i], 6)
        lp = {}
        lp["wq"], lp["bq"] = _linear(sub[0], hidden_dim, hidden_dim)
        lp["wk"], lp["bk"] = _linear(sub[1], hidden_dim, hidden_dim)
        lp["wv"], lp["bv"] = _linear(sub[2], hidden_dim, hidden_dim)
        lp["wo"], lp["bo"] = _linear(sub[3], hidden_dim, hidden_dim)
        lp["g1"] = jnp.ones((1, hidden_dim), F32)
        lp["be1"] = jnp.zeros((1, hidden_dim), F32)
        lp["g2"] = jnp.ones((1, hidden_dim), F32)
        lp["be2"] = jnp.zeros((1, hidden_dim), F32)
        lp["wf1"], lp["bf1"] = _linear(sub[4], hidden_dim, hidden_dim * 4)
        lp["wf2"], lp["bf2"] = _linear(sub[5], hidden_dim * 4, hidden_dim)
        layers.append(lp)
    params["layers"] = layers
    # output head: Linear(H,64) ELU Linear(64,32) ELU Linear(32,contrastive_dim)
    params["out_w1"], params["out_b1"] = _linear(keys[2 + num_layers], hidden_dim, 64)
    params["out_w2"], params["out_b2"] = _linear(keys[3 + num_layers], 64, 32)
    params["out_w3"], params["out_b3"] = _linear(keys[4 + num_layers], 32, contrastive_dim)
    return params


def _pack_params(params, hidden_dim, num_heads, contrastive_dim):
    """Pre-reshape / pre-cast everything once in plain JAX (outside the kernel)."""
    H = hidden_dim
    dk = H // num_heads
    scale = 1.0 / math.sqrt(dk)

    wqkv, bqkv, wo, wf1, wf2, bmisc, bf1 = [], [], [], [], [], [], []
    for lp in params["layers"]:
        # fused (H, 3H) projection; 1/sqrt(d_k) folded into Wq / bq
        wqkv.append(jnp.concatenate([lp["wq"] * scale, lp["wk"], lp["wv"]], axis=1))
        bqkv.append(jnp.concatenate([lp["bq"] * scale, lp["bk"], lp["bv"]], axis=1))
        wo.append(lp["wo"])                                     # (H, H), rows = h*dk+d
        wf1.append(lp["wf1"])
        wf2.append(lp["wf2"])
        bmisc.append(jnp.concatenate(
            [lp["bo"], lp["g1"], lp["be1"], lp["g2"], lp["be2"], lp["bf2"],
             jnp.zeros((2, H), F32)], axis=0))                  # (8, H)
        bf1.append(lp["bf1"])

    # output head: natural-size ow1/ow2; only ow3's output dim padded for a
    # lane-dense final store (sliced back to contrastive_dim outside).
    d1 = params["out_w1"].shape[1]          # 64
    d2 = params["out_w2"].shape[1]          # 32
    ow1 = params["out_w1"]                                       # (H, 64)
    ow2 = params["out_w2"]                                       # (64, 32)
    ow3 = jnp.zeros((d2, OUT_PAD), F32).at[:, :contrastive_dim].set(params["out_w3"])
    ob = jnp.zeros((3, OUT_PAD), F32)
    ob = ob.at[0, :d1].set(params["out_b1"][0])
    ob = ob.at[1, :d2].set(params["out_b2"][0])
    ob = ob.at[2, :contrastive_dim].set(params["out_b3"][0])

    return dict(
        enc_w1=params["enc_w1"].astype(BF16),
        enc_w2=params["enc_w2"].astype(BF16),
        enc_b=jnp.concatenate([params["enc_b1"], params["enc_b2"]], axis=0),
        wqkv=jnp.stack(wqkv).astype(BF16),   # (L, H, 3H)
        bqkv=jnp.stack(bqkv),                # (L, 1, 3H)
        wo=jnp.stack(wo).astype(BF16),       # (L, H, H)
        wf1=jnp.stack(wf1).astype(BF16),     # (L, H, 4H)
        wf2=jnp.stack(wf2).astype(BF16),     # (L, 4H, H)
        bmisc=jnp.stack(bmisc),              # (L, 8, H)
        bf1=jnp.stack(bf1),                  # (L, 1, 4H)
        ow1=ow1.astype(BF16), ow2=ow2.astype(BF16), ow3=ow3.astype(BF16), ob=ob,
    )


# --------------------------------- forward -----------------------------------

def net_forward(params, x, edge_index, batch=None,
                hidden_dim=64, num_heads=4, num_layers=4, contrastive_dim=8):
    N = x.shape[0]
    src, tgt = edge_index[0], edge_index[1]
    # dense edge-count adjacency (plain-JAX glue), then a single additive softmax
    # bias: log(count) on edges, -inf elsewhere.
    adj = jnp.zeros((N, N), F32).at[tgt, src].add(1.0)
    log_adj = jnp.where(adj > 0.0, jnp.log(jnp.maximum(adj, 1.0)), -jnp.inf)

    pk = _pack_params(params, hidden_dim, num_heads, contrastive_dim)

    args = (x, log_adj,
            pk["enc_w1"], pk["enc_w2"], pk["enc_b"],
            pk["wqkv"], pk["bqkv"], pk["wo"], pk["wf1"], pk["wf2"],
            pk["bmisc"], pk["bf1"],
            pk["ow1"], pk["ow2"], pk["ow3"], pk["ob"])

    kernel = functools.partial(fused_net_kernel, num_heads=num_heads)
    out_pad = pl.pallas_call(
        kernel,
        out_shape=jax.ShapeDtypeStruct((N, OUT_PAD), F32),
        in_specs=[pl.BlockSpec(memory_space=pltpu.MemorySpace.VMEM)] * len(args),
        out_specs=pl.BlockSpec(memory_space=pltpu.MemorySpace.VMEM),
        compiler_params=pltpu.CompilerParams(vmem_limit_bytes=32 * 1024 * 1024),
    )(*args)
    return out_pad[:, :contrastive_dim], batch


# ----------------------------------- main -------------------------------------

if __name__ == "__main__":
    key = jax.random.PRNGKey(0)
    k_param, k_x, k_e = jax.random.split(key, 3)

    N, F_IN, E = 64, 8, 256
    HIDDEN, HEADS, LAYERS, CDIM = 64, 4, 4, 8

    x = jax.random.normal(k_x, (N, F_IN), F32)
    edge_index = jax.random.randint(k_e, (2, E), 0, N, dtype=jnp.int32)

    params = init_params(k_param, hidden_dim=HIDDEN, num_layers=LAYERS,
                         contrastive_dim=CDIM)

    out, batch = net_forward(params, x, edge_index, batch=None,
                             hidden_dim=HIDDEN, num_heads=HEADS,
                             num_layers=LAYERS, contrastive_dim=CDIM)
    out = jax.block_until_ready(out)
    assert out.shape == (N, CDIM)
    assert bool(jnp.all(jnp.isfinite(out)))
    print("KERNEL_OK")
</pallas_src>

<mosaic_0001>
module attributes {stable_mosaic.version = 11 : i64} {
  func.func @fused_net_kernel(%arg0: memref<64x8xf32, #tpu.memory_space<vmem>>, %arg1: memref<64x64xf32, #tpu.memory_space<vmem>>, %arg2: memref<8x64xbf16, #tpu.memory_space<vmem>>, %arg3: memref<64x64xbf16, #tpu.memory_space<vmem>>, %arg4: memref<2x64xf32, #tpu.memory_space<vmem>>, %arg5: memref<4x64x192xbf16, #tpu.memory_space<vmem>>, %arg6: memref<4x1x192xf32, #tpu.memory_space<vmem>>, %arg7: memref<4x64x64xbf16, #tpu.memory_space<vmem>>, %arg8: memref<4x64x256xbf16, #tpu.memory_space<vmem>>, %arg9: memref<4x256x64xbf16, #tpu.memory_space<vmem>>, %arg10: memref<4x8x64xf32, #tpu.memory_space<vmem>>, %arg11: memref<4x1x256xf32, #tpu.memory_space<vmem>>, %arg12: memref<64x64xbf16, #tpu.memory_space<vmem>>, %arg13: memref<64x32xbf16, #tpu.memory_space<vmem>>, %arg14: memref<32x128xbf16, #tpu.memory_space<vmem>>, %arg15: memref<3x128xf32, #tpu.memory_space<vmem>>, %arg16: memref<64x128xf32, #tpu.memory_space<vmem>>) attributes {dimension_semantics = [], scalar_prefetch = 0 : i64, scratch_operands = 0 : i64, tpu.core_type = #tpu.core_type<tc>} {
    %c0 = arith.constant 0 : index
    %c0_0 = arith.constant 0 : index
    %0 = vector.load %arg1[%c0, %c0_0] : memref<64x64xf32, #tpu.memory_space<vmem>>, vector<64x64xf32>
    %c0_1 = arith.constant 0 : index
    %c0_2 = arith.constant 0 : index
    %1 = vector.load %arg4[%c0_1, %c0_2] : memref<2x64xf32, #tpu.memory_space<vmem>>, vector<2x64xf32>
    %c0_3 = arith.constant 0 : index
    %c0_4 = arith.constant 0 : index
    %2 = vector.load %arg0[%c0_3, %c0_4] : memref<64x8xf32, #tpu.memory_space<vmem>>, vector<64x8xf32>
    %3 = arith.truncf %2 : vector<64x8xf32> to vector<64x8xbf16>
    %c0_5 = arith.constant 0 : index
    %c0_6 = arith.constant 0 : index
    %4 = vector.load %arg2[%c0_5, %c0_6] : memref<8x64xbf16, #tpu.memory_space<vmem>>, vector<8x64xbf16>
    %cst = arith.constant dense<0.000000e+00> : vector<64x64xf32>
    %5 = tpu.matmul %3, %4, %cst {dimension_numbers = #tpu.dot_dimension_numbers<[1], [0], [0], [1], [0, 0, 1, 1], [], []>} : vector<64x8xbf16>, vector<8x64xbf16>, vector<64x64xf32> -> vector<64x64xf32>
    %6 = vector.extract_strided_slice %1 {offsets = [0, 0], sizes = [1, 64], strides = [1, 1]} : vector<2x64xf32> to vector<1x64xf32>
    %7 = vector.broadcast %6 : vector<1x64xf32> to vector<64x64xf32>
    %8 = arith.addf %5, %7 : vector<64x64xf32>
    %cst_7 = arith.constant 0.000000e+00 : f32
    %9 = vector.broadcast %cst_7 : f32 to vector<64x64xf32>
    %10 = arith.cmpf ogt, %8, %9 : vector<64x64xf32>
    %cst_8 = arith.constant 0.000000e+00 : f32
    %11 = vector.broadcast %cst_8 : f32 to vector<64x64xf32>
    %12 = arith.minimumf %8, %11 : vector<64x64xf32>
    %13 = math.exp %12 : vector<64x64xf32>
    %cst_9 = arith.constant 1.000000e+00 : f32
    %14 = vector.broadcast %cst_9 : f32 to vector<64x64xf32>
    %15 = arith.subf %13, %14 : vector<64x64xf32>
    %16 = arith.select %10, %8, %15 : vector<64x64xi1>, vector<64x64xf32>
    %17 = arith.truncf %16 : vector<64x64xf32> to vector<64x64xbf16>
    %c0_10 = arith.constant 0 : index
    %c0_11 = arith.constant 0 : index
    %18 = vector.load %arg3[%c0_10, %c0_11] : memref<64x64xbf16, #tpu.memory_space<vmem>>, vector<64x64xbf16>
    %cst_12 = arith.constant dense<0.000000e+00> : vector<64x64xf32>
    %19 = tpu.matmul %17, %18, %cst_12 {dimension_numbers = #tpu.dot_dimension_numbers<[1], [0], [0], [1], [0, 0, 1, 1], [], []>} : vector<64x64xbf16>, vector<64x64xbf16>, vector<64x64xf32> -> vector<64x64xf32>
    %20 = vector.extract_strided_slice %1 {offsets = [1, 0], sizes = [1, 64], strides = [1, 1]} : vector<2x64xf32> to vector<1x64xf32>
    %21 = vector.broadcast %20 : vector<1x64xf32> to vector<64x64xf32>
    %22 = arith.addf %19, %21 : vector<64x64xf32>
    %cst_13 = arith.constant 0.000000e+00 : f32
    %23 = vector.broadcast %cst_13 : f32 to vector<64x64xf32>
    %24 = arith.cmpf ogt, %22, %23 : vector<64x64xf32>
    %cst_14 = arith.constant 0.000000e+00 : f32
    %25 = vector.broadcast %cst_14 : f32 to vector<64x64xf32>
    %26 = arith.minimumf %22, %25 : vector<64x64xf32>
    %27 = math.exp %26 : vector<64x64xf32>
    %cst_15 = arith.constant 1.000000e+00 : f32
    %28 = vector.broadcast %cst_15 : f32 to vector<64x64xf32>
    %29 = arith.subf %27, %28 : vector<64x64xf32>
    %30 = arith.select %24, %22, %29 : vector<64x64xi1>, vector<64x64xf32>
    %c0_i32 = arith.constant 0 : i32
    %c4_i32 = arith.constant 4 : i32
    %31 = arith.addi %c0_i32, %c4_i32 : i32
    %c1_i32 = arith.constant 1 : i32
    %32 = scf.for %arg17 = %c0_i32 to %31 step %c1_i32 iter_args(%arg18 = %30) -> (vector<64x64xf32>)  : i32 {
      %69 = arith.index_cast %arg17 : i32 to index
      %c0_36 = arith.constant 0 : index
      %c0_37 = arith.constant 0 : index
      %70 = vector.load %arg5[%69, %c0_36, %c0_37] : memref<4x64x192xbf16, #tpu.memory_space<vmem>>, vector<1x64x192xbf16>
      %71 = vector.shape_cast %70 : vector<1x64x192xbf16> to vector<64x192xbf16>
      %72 = arith.index_cast %arg17 : i32 to index
      %c0_38 = arith.constant 0 : index
      %c0_39 = arith.constant 0 : index
      %73 = vector.load %arg6[%72, %c0_38, %c0_39] : memref<4x1x192xf32, #tpu.memory_space<vmem>>, vector<1x1x192xf32>
      %74 = vector.shape_cast %73 : vector<1x1x192xf32> to vector<1x192xf32>
      %75 = arith.index_cast %arg17 : i32 to index
      %c0_40 = arith.constant 0 : index
      %c0_41 = arith.constant 0 : index
      %76 = vector.load %arg7[%75, %c0_40, %c0_41] : memref<4x64x64xbf16, #tpu.memory_space<vmem>>, vector<1x64x64xbf16>
      %77 = vector.shape_cast %76 : vector<1x64x64xbf16> to vector<64x64xbf16>
      %78 = arith.index_cast %arg17 : i32 to index
      %c0_42 = arith.constant 0 : index
      %c0_43 = arith.constant 0 : index
      %79 = vector.load %arg8[%78, %c0_42, %c0_43] : memref<4x64x256xbf16, #tpu.memory_space<vmem>>, vector<1x64x256xbf16>
      %80 = vector.shape_cast %79 : vector<1x64x256xbf16> to vector<64x256xbf16>
      %81 = arith.index_cast %arg17 : i32 to index
      %c0_44 = arith.constant 0 : index
      %c0_45 = arith.constant 0 : index
      %82 = vector.load %arg9[%81, %c0_44, %c0_45] : memref<4x256x64xbf16, #tpu.memory_space<vmem>>, vector<1x256x64xbf16>
      %83 = vector.shape_cast %82 : vector<1x256x64xbf16> to vector<256x64xbf16>
      %84 = arith.index_cast %arg17 : i32 to index
      %c0_46 = arith.constant 0 : index
      %c0_47 = arith.constant 0 : index
      %85 = vector.load %arg10[%84, %c0_46, %c0_47] : memref<4x8x64xf32, #tpu.memory_space<vmem>>, vector<1x8x64xf32>
      %86 = vector.shape_cast %85 : vector<1x8x64xf32> to vector<8x64xf32>
      %87 = vector.extract_strided_slice %86 {offsets = [0, 0], sizes = [1, 64], strides = [1, 1]} : vector<8x64xf32> to vector<1x64xf32>
      %88 = vector.extract_strided_slice %86 {offsets = [1, 0], sizes = [1, 64], strides = [1, 1]} : vector<8x64xf32> to vector<1x64xf32>
      %89 = vector.extract_strided_slice %86 {offsets = [2, 0], sizes = [1, 64], strides = [1, 1]} : vector<8x64xf32> to vector<1x64xf32>
      %90 = vector.extract_strided_slice %86 {offsets = [3, 0], sizes = [1, 64], strides = [1, 1]} : vector<8x64xf32> to vector<1x64xf32>
      %91 = vector.extract_strided_slice %86 {offsets = [4, 0], sizes = [1, 64], strides = [1, 1]} : vector<8x64xf32> to vector<1x64xf32>
      %92 = vector.extract_strided_slice %86 {offsets = [5, 0], sizes = [1, 64], strides = [1, 1]} : vector<8x64xf32> to vector<1x64xf32>
      %93 = arith.index_cast %arg17 : i32 to index
      %c0_48 = arith.constant 0 : index
      %c0_49 = arith.constant 0 : index
      %94 = vector.load %arg11[%93, %c0_48, %c0_49] : memref<4x1x256xf32, #tpu.memory_space<vmem>>, vector<1x1x256xf32>
      %95 = vector.shape_cast %94 : vector<1x1x256xf32> to vector<1x256xf32>
      %96 = arith.truncf %arg18 : vector<64x64xf32> to vector<64x64xbf16>
      %cst_50 = arith.constant dense<0.000000e+00> : vector<64x192xf32>
      %97 = tpu.matmul %96, %71, %cst_50 {dimension_numbers = #tpu.dot_dimension_numbers<[1], [0], [0], [1], [0, 0, 1, 1], [], []>} : vector<64x64xbf16>, vector<64x192xbf16>, vector<64x192xf32> -> vector<64x192xf32>
      %98 = vector.broadcast %74 : vector<1x192xf32> to vector<64x192xf32>
      %99 = arith.addf %97, %98 : vector<64x192xf32>
      %100 = vector.extract_strided_slice %99 {offsets = [0, 0], sizes = [64, 64], strides = [1, 1]} : vector<64x192xf32> to vector<64x64xf32>
      %101 = vector.extract_strided_slice %99 {offsets = [0, 64], sizes = [64, 64], strides = [1, 1]} : vector<64x192xf32> to vector<64x64xf32>
      %102 = vector.extract_strided_slice %99 {offsets = [0, 128], sizes = [64, 64], strides = [1, 1]} : vector<64x192xf32> to vector<64x64xf32>
      %103 = vector.extract_strided_slice %100 {offsets = [0, 0], sizes = [64, 16], strides = [1, 1]} : vector<64x64xf32> to vector<64x16xf32>
      %104 = vector.extract_strided_slice %100 {offsets = [0, 16], sizes = [64, 16], strides = [1, 1]} : vector<64x64xf32> to vector<64x16xf32>
      %105 = vector.extract_strided_slice %100 {offsets = [0, 32], sizes = [64, 16], strides = [1, 1]} : vector<64x64xf32> to vector<64x16xf32>
      %106 = vector.extract_strided_slice %100 {offsets = [0, 48], sizes = [64, 16], strides = [1, 1]} : vector<64x64xf32> to vector<64x16xf32>
      %107 = vector.shape_cast %103 : vector<64x16xf32> to vector<1x64x16xf32>
      %108 = vector.shape_cast %104 : vector<64x16xf32> to vector<1x64x16xf32>
      %109 = vector.shape_cast %105 : vector<64x16xf32> to vector<1x64x16xf32>
      %110 = vector.shape_cast %106 : vector<64x16xf32> to vector<1x64x16xf32>
      %111 = tpu.concatenate %107, %108, %109, %110 in 0 : vector<1x64x16xf32>, vector<1x64x16xf32>, vector<1x64x16xf32>, vector<1x64x16xf32> -> vector<4x64x16xf32>
      %112 = arith.truncf %111 : vector<4x64x16xf32> to vector<4x64x16xbf16>
      %113 = vector.extract_strided_slice %101 {offsets = [0, 0], sizes = [64, 16], strides = [1, 1]} : vector<64x64xf32> to vector<64x16xf32>
      %114 = vector.extract_strided_slice %101 {offsets = [0, 16], sizes = [64, 16], strides = [1, 1]} : vector<64x64xf32> to vector<64x16xf32>
      %115 = vector.extract_strided_slice %101 {offsets = [0, 32], sizes = [64, 16], strides = [1, 1]} : vector<64x64xf32> to vector<64x16xf32>
      %116 = vector.extract_strided_slice %101 {offsets = [0, 48], sizes = [64, 16], strides = [1, 1]} : vector<64x64xf32> to vector<64x16xf32>
      %117 = vector.shape_cast %113 : vector<64x16xf32> to vector<1x64x16xf32>
      %118 = vector.shape_cast %114 : vector<64x16xf32> to vector<1x64x16xf32>
      %119 = vector.shape_cast %115 : vector<64x16xf32> to vector<1x64x16xf32>
      %120 = vector.shape_cast %116 : vector<64x16xf32> to vector<1x64x16xf32>
      %121 = tpu.concatenate %117, %118, %119, %120 in 0 : vector<1x64x16xf32>, vector<1x64x16xf32>, vector<1x64x16xf32>, vector<1x64x16xf32> -> vector<4x64x16xf32>
      %122 = arith.truncf %121 : vector<4x64x16xf32> to vector<4x64x16xbf16>
      %123 = vector.extract_strided_slice %102 {offsets = [0, 0], sizes = [64, 16], strides = [1, 1]} : vector<64x64xf32> to vector<64x16xf32>
      %124 = vector.extract_strided_slice %102 {offsets = [0, 16], sizes = [64, 16], strides = [1, 1]} : vector<64x64xf32> to vector<64x16xf32>
      %125 = vector.extract_strided_slice %102 {offsets = [0, 32], sizes = [64, 16], strides = [1, 1]} : vector<64x64xf32> to vector<64x16xf32>
      %126 = vector.extract_strided_slice %102 {offsets = [0, 48], sizes = [64, 16], strides = [1, 1]} : vector<64x64xf32> to vector<64x16xf32>
      %127 = vector.shape_cast %123 : vector<64x16xf32> to vector<1x64x16xf32>
      %128 = vector.shape_cast %124 : vector<64x16xf32> to vector<1x64x16xf32>
      %129 = vector.shape_cast %125 : vector<64x16xf32> to vector<1x64x16xf32>
      %130 = vector.shape_cast %126 : vector<64x16xf32> to vector<1x64x16xf32>
      %131 = tpu.concatenate %127, %128, %129, %130 in 0 : vector<1x64x16xf32>, vector<1x64x16xf32>, vector<1x64x16xf32>, vector<1x64x16xf32> -> vector<4x64x16xf32>
      %132 = arith.truncf %131 : vector<4x64x16xf32> to vector<4x64x16xbf16>
      "tpu.trace_start"() <{level = 10 : i32, message = "htd,hsd->hts"}> : () -> ()
      %cst_51 = arith.constant dense<0.000000e+00> : vector<4x64x64xf32>
      %133 = tpu.matmul %112, %122, %cst_51 {dimension_numbers = #tpu.dot_dimension_numbers<[2], [2], [1], [1], [0, 0, 0, 1, 1, 1], [0], [0]>} : vector<4x64x16xbf16>, vector<4x64x16xbf16>, vector<4x64x64xf32> -> vector<4x64x64xf32>
      "tpu.trace_stop"() : () -> ()
      %134 = vector.shape_cast %0 : vector<64x64xf32> to vector<1x64x64xf32>
      %135 = vector.broadcast %134 : vector<1x64x64xf32> to vector<4x64x64xf32>
      %136 = arith.addf %133, %135 : vector<4x64x64xf32>
      %cst_52 = arith.constant dense<0xFF800000> : vector<4x64xf32>
      %137 = vector.multi_reduction <maximumf>, %136, %cst_52 [2] : vector<4x64x64xf32> to vector<4x64xf32>
      %138 = vector.shape_cast %137 : vector<4x64xf32> to vector<4x64x1xf32>
      %cst_53 = arith.constant 0xFF800000 : f32
      %139 = vector.broadcast %cst_53 : f32 to vector<4x64x1xf32>
      %140 = arith.cmpf ogt, %138, %139 : vector<4x64x1xf32>
      %cst_54 = arith.constant 0.000000e+00 : f32
      %141 = vector.broadcast %cst_54 : f32 to vector<4x64x1xf32>
      %142 = arith.select %140, %138, %141 : vector<4x64x1xi1>, vector<4x64x1xf32>
      %143 = vector.broadcast %142 : vector<4x64x1xf32> to vector<4x64x64xf32>
      %144 = arith.subf %136, %143 : vector<4x64x64xf32>
      %145 = math.exp %144 : vector<4x64x64xf32>
      %cst_55 = arith.constant dense<0.000000e+00> : vector<4x64xf32>
      %146 = vector.multi_reduction <add>, %145, %cst_55 [2] : vector<4x64x64xf32> to vector<4x64xf32>
      %147 = vector.shape_cast %146 : vector<4x64xf32> to vector<4x64x1xf32>
      %cst_56 = arith.constant 1.000000e-16 : f32
      %148 = vector.broadcast %cst_56 : f32 to vector<4x64x1xf32>
      %149 = arith.addf %147, %148 : vector<4x64x1xf32>
      %150 = tpu.reciprocal %149 {approx = true} : vector<4x64x1xf32> -> vector<4x64x1xf32>
      %151 = vector.broadcast %150 : vector<4x64x1xf32> to vector<4x64x64xf32>
      %152 = arith.mulf %145, %151 : vector<4x64x64xf32>
      %153 = arith.truncf %152 : vector<4x64x64xf32> to vector<4x64x64xbf16>
      "tpu.trace_start"() <{level = 10 : i32, message = "hts,hsd->htd"}> : () -> ()
      %cst_57 = arith.constant dense<0.000000e+00> : vector<4x64x16xf32>
      %154 = tpu.matmul %153, %132, %cst_57 {dimension_numbers = #tpu.dot_dimension_numbers<[2], [1], [1], [2], [0, 0, 0, 1, 1, 2], [0], [0]>} : vector<4x64x64xbf16>, vector<4x64x16xbf16>, vector<4x64x16xf32> -> vector<4x64x16xf32>
      "tpu.trace_stop"() : () -> ()
      %155 = vector.extract_strided_slice %154 {offsets = [0, 0, 0], sizes = [1, 64, 16], strides = [1, 1, 1]} : vector<4x64x16xf32> to vector<1x64x16xf32>
      %156 = vector.shape_cast %155 : vector<1x64x16xf32> to vector<64x16xf32>
      %157 = vector.extract_strided_slice %154 {offsets = [1, 0, 0], sizes = [1, 64, 16], strides = [1, 1, 1]} : vector<4x64x16xf32> to vector<1x64x16xf32>
      %158 = vector.shape_cast %157 : vector<1x64x16xf32> to vector<64x16xf32>
      %159 = vector.extract_strided_slice %154 {offsets = [2, 0, 0], sizes = [1, 64, 16], strides = [1, 1, 1]} : vector<4x64x16xf32> to vector<1x64x16xf32>
      %160 = vector.shape_cast %159 : vector<1x64x16xf32> to vector<64x16xf32>
      %161 = vector.extract_strided_slice %154 {offsets = [3, 0, 0], sizes = [1, 64, 16], strides = [1, 1, 1]} : vector<4x64x16xf32> to vector<1x64x16xf32>
      %162 = vector.shape_cast %161 : vector<1x64x16xf32> to vector<64x16xf32>
      %163 = tpu.concatenate %156, %158, %160, %162 in 1 : vector<64x16xf32>, vector<64x16xf32>, vector<64x16xf32>, vector<64x16xf32> -> vector<64x64xf32>
      %164 = arith.truncf %163 : vector<64x64xf32> to vector<64x64xbf16>
      %cst_58 = arith.constant dense<0.000000e+00> : vector<64x64xf32>
      %165 = tpu.matmul %164, %77, %cst_58 {dimension_numbers = #tpu.dot_dimension_numbers<[1], [0], [0], [1], [0, 0, 1, 1], [], []>} : vector<64x64xbf16>, vector<64x64xbf16>, vector<64x64xf32> -> vector<64x64xf32>
      %166 = vector.broadcast %87 : vector<1x64xf32> to vector<64x64xf32>
      %167 = arith.addf %165, %166 : vector<64x64xf32>
      %168 = arith.addf %arg18, %167 : vector<64x64xf32>
      %cst_59 = arith.constant dense<0.000000e+00> : vector<64xf32>
      %169 = vector.multi_reduction <add>, %168, %cst_59 [1] : vector<64x64xf32> to vector<64xf32>
      %170 = vector.shape_cast %169 : vector<64xf32> to vector<64x1xf32>
      %cst_60 = arith.constant 6.400000e+01 : f32
      %171 = vector.broadcast %cst_60 : f32 to vector<64x1xf32>
      %172 = arith.divf %170, %171 : vector<64x1xf32>
      %173 = vector.broadcast %172 : vector<64x1xf32> to vector<64x64xf32>
      %174 = arith.subf %168, %173 : vector<64x64xf32>
      %175 = arith.mulf %174, %174 : vector<64x64xf32>
      %cst_61 = arith.constant dense<0.000000e+00> : vector<64xf32>
      %176 = vector.multi_reduction <add>, %175, %cst_61 [1] : vector<64x64xf32> to vector<64xf32>
      %177 = vector.shape_cast %176 : vector<64xf32> to vector<64x1xf32>
      %cst_62 = arith.constant 6.400000e+01 : f32
      %178 = vector.broadcast %cst_62 : f32 to vector<64x1xf32>
      %179 = arith.divf %177, %178 : vector<64x1xf32>
      %cst_63 = arith.constant 9.99999974E-6 : f32
      %180 = vector.broadcast %cst_63 : f32 to vector<64x1xf32>
      %181 = arith.addf %179, %180 : vector<64x1xf32>
      %182 = math.rsqrt %181 : vector<64x1xf32>
      %183 = vector.broadcast %182 : vector<64x1xf32> to vector<64x64xf32>
      %184 = arith.mulf %174, %183 : vector<64x64xf32>
      %185 = vector.broadcast %88 : vector<1x64xf32> to vector<64x64xf32>
      %186 = arith.mulf %184, %185 : vector<64x64xf32>
      %187 = vector.broadcast %89 : vector<1x64xf32> to vector<64x64xf32>
      %188 = arith.addf %186, %187 : vector<64x64xf32>
      %189 = arith.truncf %188 : vector<64x64xf32> to vector<64x64xbf16>
      %cst_64 = arith.constant dense<0.000000e+00> : vector<64x256xf32>
      %190 = tpu.matmul %189, %80, %cst_64 {dimension_numbers = #tpu.dot_dimension_numbers<[1], [0], [0], [1], [0, 0, 1, 1], [], []>} : vector<64x64xbf16>, vector<64x256xbf16>, vector<64x256xf32> -> vector<64x256xf32>
      %191 = vector.broadcast %95 : vector<1x256xf32> to vector<64x256xf32>
      %192 = arith.addf %190, %191 : vector<64x256xf32>
      %cst_65 = arith.constant 0.000000e+00 : f32
      %193 = vector.broadcast %cst_65 : f32 to vector<64x256xf32>
      %194 = arith.maximumf %192, %193 : vector<64x256xf32>
      %195 = arith.truncf %194 : vector<64x256xf32> to vector<64x256xbf16>
      %cst_66 = arith.constant dense<0.000000e+00> : vector<64x64xf32>
      %196 = tpu.matmul %195, %83, %cst_66 {dimension_numbers = #tpu.dot_dimension_numbers<[1], [0], [0], [1], [0, 0, 1, 1], [], []>} : vector<64x256xbf16>, vector<256x64xbf16>, vector<64x64xf32> -> vector<64x64xf32>
      %197 = vector.broadcast %92 : vector<1x64xf32> to vector<64x64xf32>
      %198 = arith.addf %196, %197 : vector<64x64xf32>
      %199 = arith.addf %188, %198 : vector<64x64xf32>
      %cst_67 = arith.constant dense<0.000000e+00> : vector<64xf32>
      %200 = vector.multi_reduction <add>, %199, %cst_67 [1] : vector<64x64xf32> to vector<64xf32>
      %201 = vector.shape_cast %200 : vector<64xf32> to vector<64x1xf32>
      %cst_68 = arith.constant 6.400000e+01 : f32
      %202 = vector.broadcast %cst_68 : f32 to vector<64x1xf32>
      %203 = arith.divf %201, %202 : vector<64x1xf32>
      %204 = vector.broadcast %203 : vector<64x1xf32> to vector<64x64xf32>
      %205 = arith.subf %199, %204 : vector<64x64xf32>
      %206 = arith.mulf %205, %205 : vector<64x64xf32>
      %cst_69 = arith.constant dense<0.000000e+00> : vector<64xf32>
      %207 = vector.multi_reduction <add>, %206, %cst_69 [1] : vector<64x64xf32> to vector<64xf32>
      %208 = vector.shape_cast %207 : vector<64xf32> to vector<64x1xf32>
      %cst_70 = arith.constant 6.400000e+01 : f32
      %209 = vector.broadcast %cst_70 : f32 to vector<64x1xf32>
      %210 = arith.divf %208, %209 : vector<64x1xf32>
      %cst_71 = arith.constant 9.99999974E-6 : f32
      %211 = vector.broadcast %cst_71 : f32 to vector<64x1xf32>
      %212 = arith.addf %210, %211 : vector<64x1xf32>
      %213 = math.rsqrt %212 : vector<64x1xf32>
      %214 = vector.broadcast %213 : vector<64x1xf32> to vector<64x64xf32>
      %215 = arith.mulf %205, %214 : vector<64x64xf32>
      %216 = vector.broadcast %90 : vector<1x64xf32> to vector<64x64xf32>
      %217 = arith.mulf %215, %216 : vector<64x64xf32>
      %218 = vector.broadcast %91 : vector<1x64xf32> to vector<64x64xf32>
      %219 = arith.addf %217, %218 : vector<64x64xf32>
      scf.yield %219 : vector<64x64xf32>
    }
    %c4_i32_16 = arith.constant 4 : i32
    %c0_17 = arith.constant 0 : index
    %c0_18 = arith.constant 0 : index
    %33 = vector.load %arg15[%c0_17, %c0_18] : memref<3x128xf32, #tpu.memory_space<vmem>>, vector<3x128xf32>
    %34 = arith.truncf %32 : vector<64x64xf32> to vector<64x64xbf16>
    %c0_19 = arith.constant 0 : index
    %c0_20 = arith.constant 0 : index
    %35 = vector.load %arg12[%c0_19, %c0_20] : memref<64x64xbf16, #tpu.memory_space<vmem>>, vector<64x64xbf16>
    %cst_21 = arith.constant dense<0.000000e+00> : vector<64x64xf32>
    %36 = tpu.matmul %34, %35, %cst_21 {dimension_numbers = #tpu.dot_dimension_numbers<[1], [0], [0], [1], [0, 0, 1, 1], [], []>} : vector<64x64xbf16>, vector<64x64xbf16>, vector<64x64xf32> -> vector<64x64xf32>
    %37 = vector.extract_strided_slice %33 {offsets = [0, 0], sizes = [1, 64], strides = [1, 1]} : vector<3x128xf32> to vector<1x64xf32>
    %38 = vector.broadcast %37 : vector<1x64xf32> to vector<64x64xf32>
    %39 = arith.addf %36, %38 : vector<64x64xf32>
    %cst_22 = arith.constant 0.000000e+00 : f32
    %40 = vector.broadcast %cst_22 : f32 to vector<64x64xf32>
    %41 = arith.cmpf ogt, %39, %40 : vector<64x64xf32>
    %cst_23 = arith.constant 0.000000e+00 : f32
    %42 = vector.broadcast %cst_23 : f32 to vector<64x64xf32>
    %43 = arith.minimumf %39, %42 : vector<64x64xf32>
    %44 = math.exp %43 : vector<64x64xf32>
    %cst_24 = arith.constant 1.000000e+00 : f32
    %45 = vector.broadcast %cst_24 : f32 to vector<64x64xf32>
    %46 = arith.subf %44, %45 : vector<64x64xf32>
    %47 = arith.select %41, %39, %46 : vector<64x64xi1>, vector<64x64xf32>
    %48 = arith.truncf %47 : vector<64x64xf32> to vector<64x64xbf16>
    %c0_25 = arith.constant 0 : index
    %c0_26 = arith.constant 0 : index
    %49 = vector.load %arg13[%c0_25, %c0_26] : memref<64x32xbf16, #tpu.memory_space<vmem>>, vector<64x32xbf16>
    %cst_27 = arith.constant dense<0.000000e+00> : vector<64x32xf32>
    %50 = tpu.matmul %48, %49, %cst_27 {dimension_numbers = #tpu.dot_dimension_numbers<[1], [0], [0], [1], [0, 0, 1, 1], [], []>} : vector<64x64xbf16>, vector<64x32xbf16>, vector<64x32xf32> -> vector<64x32xf32>
    %51 = vector.extract_strided_slice %33 {offsets = [1, 0], sizes = [1, 32], strides = [1, 1]} : vector<3x128xf32> to vector<1x32xf32>
    %52 = vector.broadcast %51 : vector<1x32xf32> to vector<64x32xf32>
    %53 = arith.addf %50, %52 : vector<64x32xf32>
    %cst_28 = arith.constant 0.000000e+00 : f32
    %54 = vector.broadcast %cst_28 : f32 to vector<64x32xf32>
    %55 = arith.cmpf ogt, %53, %54 : vector<64x32xf32>
    %cst_29 = arith.constant 0.000000e+00 : f32
    %56 = vector.broadcast %cst_29 : f32 to vector<64x32xf32>
    %57 = arith.minimumf %53, %56 : vector<64x32xf32>
    %58 = math.exp %57 : vector<64x32xf32>
    %cst_30 = arith.constant 1.000000e+00 : f32
    %59 = vector.broadcast %cst_30 : f32 to vector<64x32xf32>
    %60 = arith.subf %58, %59 : vector<64x32xf32>
    %61 = arith.select %55, %53, %60 : vector<64x32xi1>, vector<64x32xf32>
    %62 = arith.truncf %61 : vector<64x32xf32> to vector<64x32xbf16>
    %c0_31 = arith.constant 0 : index
    %c0_32 = arith.constant 0 : index
    %63 = vector.load %arg14[%c0_31, %c0_32] : memref<32x128xbf16, #tpu.memory_space<vmem>>, vector<32x128xbf16>
    %cst_33 = arith.constant dense<0.000000e+00> : vector<64x128xf32>
    %64 = tpu.matmul %62, %63, %cst_33 {dimension_numbers = #tpu.dot_dimension_numbers<[1], [0], [0], [1], [0, 0, 1, 1], [], []>} : vector<64x32xbf16>, vector<32x128xbf16>, vector<64x128xf32> -> vector<64x128xf32>
    %65 = vector.extract_strided_slice %33 {offsets = [2, 0], sizes = [1, 128], strides = [1, 1]} : vector<3x128xf32> to vector<1x128xf32>
    %66 = vector.broadcast %65 : vector<1x128xf32> to vector<64x128xf32>
    %67 = arith.addf %64, %66 : vector<64x128xf32>
    %c0_34 = arith.constant 0 : index
    %c0_35 = arith.constant 0 : index
    %68 = vector.load %arg16[%c0_34, %c0_35] : memref<64x128xf32, #tpu.memory_space<vmem>>, vector<64x128xf32>
    tpu.vector_store %arg16[%c0_34, %c0_35], %67 {strides = array<i32>} : memref<64x128xf32, #tpu.memory_space<vmem>>, vector<64x128xf32>,
    return
  }
}

</mosaic_0001>

<bundles_post_ra>
// kernel: tpu_custom_call.1
= control target key start
LH: loop header
LB: loop body
LE: loop exit
PB: predicated region body
PF: predicated region fallthrough
CT: control target
= control target key end

     0   :  { %s5472_s0 = inlined_call_operand.vmem [shape: f32[64,8], index: 0, kind: input, shape index: {}]   ;;  %s5473_s1 = inlined_call_operand.vmem [shape: f32[64,64], index: 1, kind: input, shape index: {}]   ;;  %s5474_s2 = inlined_call_operand.vmem [shape: bf16[8,64], index: 2, kind: input, shape index: {}]   ;;  %s5475_s3 = inlined_call_operand.vmem [shape: bf16[64,64], index: 3, kind: input, shape index: {}]   ;;  %s5476_s4 = inlined_call_operand.vmem [shape: f32[2,64], index: 4, kind: input, shape index: {}]   ;;  %s5477_s5 = inlined_call_operand.vmem [shape: bf16[4,64,192], index: 5, kind: input, shape index: {}]   ;;  %s5478_s6 = inlined_call_operand.vmem [shape: f32[4,1,192], index: 6, kind: input, shape index: {}]   ;;  %s5479_s7 = inlined_call_operand.vmem [shape: bf16[4,64,64], index: 7, kind: input, shape index: {}]   ;;  %s5480_s8 = inlined_call_operand.vmem [shape: bf16[4,64,256], index: 8, kind: input, shape index: {}]   ;;  %s5481_s9 = inlined_call_operand.vmem [shape: bf16[4,256,64], index: 9, kind: input, shape index: {}]   ;;  %s5482_s10 = inlined_call_operand.vmem [shape: f32[4,8,64], index: 10, kind: input, shape index: {}]   ;;  %s5483_s11 = inlined_call_operand.vmem [shape: f32[4,1,256], index: 11, kind: input, shape index: {}]   ;;  %s5484_s12 = inlined_call_operand.vmem [shape: bf16[64,64], index: 12, kind: input, shape index: {}]   ;;  %s5485_s13 = inlined_call_operand.vmem [shape: bf16[64,32], index: 13, kind: input, shape index: {}]   ;;  %s5486_s14 = inlined_call_operand.vmem [shape: bf16[32,128], index: 14, kind: input, shape index: {}]   ;;  %s5487_s15 = inlined_call_operand.vmem [shape: f32[3,128], index: 15, kind: input, shape index: {}]   ;;  %s5488_s16 = inlined_call_operand.hbm [shape: f32[64,128], index: 16, kind: output, shape index: {}]  }
   0x1   :  { %5494 = sst [smem:[#allocation9_spill]] %s5472_s0 }
   0x2   :  { %21 = vsyncpa [#allocation3], 0  ;;  %v4230_v0 = vld [vmem:[%s5473_s1] sm:$0xff]  ;;  %v4235_v1 = vld [vmem:[%s5473_s1 + $0x8] sm:$0xff]  ;;  %vm91_vm0 = vcmask 1043456   ;;  %s5499_s26 = sld [smem:[#allocation9_spill]] }
   0x3   :  { %5495 = vst [vmem:[#allocation5_spill] sm:$0xff] %v4230_v0  ;;  %v4240_v2 = vld [vmem:[%s5473_s1 + $0x10] sm:$0xff]  ;;  %v4245_v3 = vld [vmem:[%s5473_s1 + $0x18] sm:$0xff]  ;;  %v4250_v4 = vld [vmem:[%s5473_s1 + $0x20] sm:$0xff]  ;;  %vm78_vm1 = vcmask 64512   ;;  %vm209_vm4 = vcmask 523264  }
   0x4   :  { %5496 = vst [vmem:[#allocation6_spill] sm:$0xff] %v4235_v1  ;;  %v4255_v5 = vld [vmem:[%s5473_s1 + $0x28] sm:$0xff]  ;;  %v4260_v6 = vld [vmem:[%s5473_s1 + $0x30] sm:$0xff]  ;;  %v4265_v7 = vld [vmem:[%s5473_s1 + $0x38] sm:$0xff] }
   0x5   :  { %5497 = vst [vmem:[#allocation7_spill] sm:$0xff] %v4240_v2  ;;  %v76_v8 = vld [vmem:[%s5474_s2] sm:$0xf]  ;;  %v3476_v22 = vld [vmem:[%s5475_s3 + $0x18] sm:$0xff]  ;;  %v3475_v23 = vld [vmem:[%s5475_s3 + $0x10] sm:$0xff] }
   0x6   :  { %5498 = vst [vmem:[#allocation8_spill] sm:$0xff] %v4245_v3  ;;  %v93_v11 = vsel %vm91_vm0, %v76_v8, 0  ;;  %226 = vmatpush.bf16.msra.mxu1 %v3476_v22  ;;  %3528 = vmatpush.bf16.msra.mxu2 %v3476_v22  ;;  %v3474_v24 = vld [vmem:[%s5475_s3 + $0x8] sm:$0xff]  ;;  %v3473_v25 = vld [vmem:[%s5475_s3] sm:$0xff]  ;;  %s4346_s3 = smov 0  }
   0x7   :  { %102 = vmatpush.bf16.msra.mxu0 %v93_v11  ;;  %3527 = vmatpush.bf16.msra.mxu3 %v93_v11  ;;  %v4309_v26 = vld [vmem:[%s5476_s4] sm:$0x3] }
   0x8   :  { %v64_v9 = vld [vmem:[%s5499_s26] sm:$0xff]  ;;  %v65_v10 = vld [vmem:[%s5499_s26 + $0x8] sm:$0xff]  ;;  %v66_v13 = vld [vmem:[%s5499_s26 + $0x10] sm:$0xff]  ;;  %v4312_v27 = vperm.slane %v4309_v26, 0 }
   0x9   :  { %v72_v12 = vpack.c.bf16 %v65_v10, %v64_v9  ;;  %v67_v14 = vld [vmem:[%s5499_s26 + $0x18] sm:$0xff]  ;;  %v68_v16 = vld [vmem:[%s5499_s26 + $0x20] sm:$0xff]  ;;  %v69_v17 = vld [vmem:[%s5499_s26 + $0x28] sm:$0xff] }
   0xa   :  { %v73_v15 = vpack.c.bf16 %v67_v14, %v66_v13  ;;  %v74_v18 = vpack.c.bf16 %v69_v17, %v68_v16  ;;  %v70_v19 = vld [vmem:[%s5499_s26 + $0x30] sm:$0xff]  ;;  %v71_v20 = vld [vmem:[%s5499_s26 + $0x38] sm:$0xff]  ;;  %227 = vmatpush.bf16.msra.mxu1 %v3475_v23  ;;  %3529 = vmatpush.bf16.msra.mxu2 %v3475_v23 }
   0xb   :  { %3161 = vmatmul.msk.bf16.vlgmr.msra.gmra.mxu0 %vm78_vm1, %v72_v12  ;;  %v75_v21 = vpack.c.bf16 %v71_v20, %v70_v19 }
   0xc   :  { %3162 = vmatmul.msk.bf16.vlgmr.msra.gmra.mxu3 %vm78_vm1, %v73_v15 }
   0xe   :  { %228 = vmatpush.bf16.msra.mxu1 %v3474_v24  ;;  %3530 = vmatpush.bf16.msra.mxu2 %v3474_v24 }
  0x12   :  { %229 = vmatpush.bf16.msra.mxu1 %v3473_v25  ;;  %3531 = vmatpush.bf16.msra.mxu2 %v3473_v25 }
  0x1c   :  { %3163 = vmatmul.msk.bf16.gmra.mxu3 %vm78_vm1, %v74_v18 }
  0x2c   :  { %3164 = vmatmul.msk.bf16.gmra.mxu3 %vm78_vm1, %v75_v21 }
  0x88   :  { %v104_v28 = vpop.f32.mrf.mxu0 }
  0x89   :  { %v105_v29 = vadd.f32 %v104_v28, %v4312_v27 }
  0x8b   :  { %v132_v30 = vmin.f32 %v105_v29, 0.0  ;;  %vm124_vm2 = vcmp.gt.f32.partialorder %v105_v29, 0.0 }
  0x8d   :  { %v140_v31 = vmul.f32 1.442695, %v132_v30 }
  0x8f   :  { %v109_v32 = vpop.f32.mrf.mxu3  ;;  %3627 = vpow2.f32 %v140_v31 }
  0x90   :  { %v106_v33 = vpop.f32.mrf.mxu0  ;;  %v110_v39 = vadd.f32 %v109_v32, %v4312_v27 }
  0x91   :  { %v107_v34 = vadd.f32 %v106_v33, %v4312_v27 }
  0x92   :  { %v134_v43 = vmin.f32 %v110_v39, 0.0  ;;  %vm126_vm6 = vcmp.gt.f32.partialorder %v110_v39, 0.0 }
  0x93   :  { %v133_v35 = vmin.f32 %v107_v34, 0.0  ;;  %vm125_vm3 = vcmp.gt.f32.partialorder %v107_v34, 0.0 }
  0x94   :  { %v144_v49 = vmul.f32 1.442695, %v134_v43 }
  0x95   :  { %v142_v36 = vmul.f32 1.442695, %v133_v35  ;;  %v3628_v38 = vpop.eup %3627 }
  0x96   :  { %v3165_v42 = vadd.f32 -1.0, %v3628_v38 }
  0x97   :  { %v111_v37 = vpop.f32.mrf.mxu3  ;;  %3629 = vpow2.f32 %v142_v36 }
  0x98   :  { %v112_v40 = vadd.f32 %v111_v37, %v4312_v27  ;;  %v164_v48 = vsel %vm124_vm2, %v105_v29, %v3165_v42 }
  0x9a   :  { %v135_v41 = vmin.f32 %v112_v40, 0.0  ;;  %vm127_vm5 = vcmp.gt.f32.partialorder %v112_v40, 0.0 }
  0x9c   :  { %v146_v45 = vmul.f32 1.442695, %v135_v41 }
  0x9d   :  { %v3630_v44 = vpop.eup %3629 }
  0x9e   :  { %v3166_v46 = vadd.f32 -1.0, %v3630_v44  ;;  %3631 = vpow2.f32 %v146_v45 }
  0x9f   :  { %v114_v47 = vpop.f32.mrf.mxu3  ;;  %3633 = vpow2.f32 %v144_v49 }
  0xa0   :  { %v115_v50 = vadd.f32 %v114_v47, %v4312_v27  ;;  %v165_v51 = vsel %vm125_vm3, %v107_v34, %v3166_v46 }
  0xa1   :  { %v172_v53 = vpack.c.bf16 %v165_v51, %v164_v48 }
  0xa2   :  { %v136_v52 = vmin.f32 %v115_v50, 0.0  ;;  %vm128_vm7 = vcmp.gt.f32.partialorder %v115_v50, 0.0 }
  0xa3   :  { %3189 = vmatmul.msk.bf16.vlgmr.msra.gmra.mxu1 %vm209_vm4, %v172_v53 }
  0xa4   :  { %v148_v54 = vmul.f32 1.442695, %v136_v52  ;;  %v3632_v56 = vpop.eup %3631 }
  0xa5   :  { %v3634_v58 = vpop.eup %3633  ;;  %v3168_v60 = vadd.f32 -1.0, %v3632_v56 }
  0xa6   :  { %3635 = vpow2.f32 %v148_v54  ;;  %v3167_v62 = vadd.f32 -1.0, %v3634_v58 }
  0xa7   :  { %v116_v55 = vpop.f32.mrf.mxu3  ;;  %v167_v8 = vsel %vm127_vm5, %v112_v40, %v3168_v60 }
  0xa8   :  { %v117_v57 = vadd.f32 %v116_v55, %v4312_v27  ;;  %v166_v11 = vsel %vm126_vm6, %v110_v39, %v3167_v62 }
  0xa9   :  { %v173_v13 = vpack.c.bf16 %v167_v8, %v166_v11 }
  0xaa   :  { %v137_v59 = vmin.f32 %v117_v57, 0.0  ;;  %vm129_vm8 = vcmp.gt.f32.partialorder %v117_v57, 0.0 }
  0xac   :  { %v150_v61 = vmul.f32 1.442695, %v137_v59  ;;  %v3636_v9 = vpop.eup %3635 }
  0xad   :  { %v3169_v14 = vadd.f32 -1.0, %v3636_v9 }
  0xae   :  { %3637 = vpow2.f32 %v150_v61 }
  0xaf   :  { %v119_v63 = vpop.f32.mrf.mxu3  ;;  %v168_v19 = vsel %vm128_vm7, %v115_v50, %v3169_v14 }
  0xb0   :  { %v120_v10 = vadd.f32 %v119_v63, %v4312_v27 }
  0xb2   :  { %v138_v12 = vmin.f32 %v120_v10, 0.0  ;;  %vm130_vm9 = vcmp.gt.f32.partialorder %v120_v10, 0.0 }
  0xb3   :  { %3190 = vmatmul.msk.bf16.gmra.mxu1 %vm209_vm4, %v173_v13 }
  0xb4   :  { %v3638_v15 = vpop.eup %3637  ;;  %v152_v17 = vmul.f32 1.442695, %v138_v12 }
  0xb5   :  { %v3170_v16 = vadd.f32 -1.0, %v3638_v15 }
  0xb6   :  { %3639 = vpow2.f32 %v152_v17 }
  0xb7   :  { %v121_v18 = vpop.f32.mrf.mxu3  ;;  %v169_v20 = vsel %vm129_vm8, %v117_v57, %v3170_v16 }
  0xb8   :  { %v122_v21 = vadd.f32 %v121_v18, %v4312_v27  ;;  %v174_v22 = vpack.c.bf16 %v169_v20, %v168_v19  ;;  %v184_v27 = vperm.slane %v4309_v26, 1 }
  0xba   :  { %v139_v23 = vmin.f32 %v122_v21, 0.0  ;;  %3191 = vmatmul.msk.bf16.vlgmr.msra.gmra.mxu2 %vm209_vm4, %v174_v22  ;;  %vm131_vm10 = vcmp.gt.f32.partialorder %v122_v21, 0.0 }
  0xbc   :  { %v154_v24 = vmul.f32 1.442695, %v139_v23  ;;  %v3640_v25 = vpop.eup %3639 }
  0xbd   :  { %v3171_v28 = vadd.f32 -1.0, %v3640_v25 }
  0xbe   :  { %3641 = vpow2.f32 %v154_v24 }
  0xbf   :  { %v170_v31 = vsel %vm130_vm9, %v120_v10, %v3171_v28 }
  0xc4   :  { %v3642_v29 = vpop.eup %3641 }
  0xc5   :  { %v3172_v30 = vadd.f32 -1.0, %v3642_v29 }
  0xc7   :  { %v171_v32 = vsel %vm131_vm10, %v122_v21, %v3172_v30 }
  0xc8   :  { %v175_v33 = vpack.c.bf16 %v171_v32, %v170_v31 }
  0xca   :  { %3192 = vmatmul.msk.bf16.gmra.mxu2 %vm209_vm4, %v175_v33 }
 0x120   :  { %v231_v34 = vpop.f32.mrf.mxu1 }
 0x121   :  { %v232_v35 = vadd.f32 %v231_v34, %v184_v27 }
 0x123   :  { %v259_v36 = vmin.f32 %v232_v35, 0.0  ;;  %vm251_vm11 = vcmp.gt.f32.partialorder %v232_v35, 0.0 }
 0x125   :  { %v267_v37 = vmul.f32 1.442695, %v259_v36 }
 0x127   :  { %3643 = vpow2.f32 %v267_v37 }
 0x128   :  { %v233_v38 = vpop.f32.mrf.mxu1 }
 0x129   :  { %v234_v39 = vadd.f32 %v233_v38, %v184_v27 }
 0x12b   :  { %v260_v40 = vmin.f32 %v234_v39, 0.0  ;;  %vm252_vm12 = vcmp.gt.f32.partialorder %v234_v39, 0.0 }
 0x12d   :  { %v3644_v41 = vpop.eup %3643  ;;  %v269_v42 = vmul.f32 1.442695, %v260_v40 }
 0x12e   :  { %v3193_v43 = vadd.f32 -1.0, %v3644_v41 }
 0x12f   :  { %3645 = vpow2.f32 %v269_v42 }
 0x130   :  { %v4327_v44 = vsel %vm251_vm11, %v232_v35, %v3193_v43   ;;  %v236_v45 = vpop.f32.mrf.mxu1 }
 0x131   :  { %v237_v46 = vadd.f32 %v236_v45, %v184_v27 }
 0x133   :  { %v261_v47 = vmin.f32 %v237_v46, 0.0  ;;  %vm253_vm13 = vcmp.gt.f32.partialorder %v237_v46, 0.0 }
 0x135   :  { %v3646_v48 = vpop.eup %3645  ;;  %v271_v26 = vmul.f32 1.442695, %v261_v47 }
 0x136   :  { %v3194_v49 = vadd.f32 -1.0, %v3646_v48 }
 0x137   :  { %3647 = vpow2.f32 %v271_v26 }
 0x138   :  { %v292_v50 = vsel %vm252_vm12, %v234_v39, %v3194_v49   ;;  %v238_v51 = vpop.f32.mrf.mxu1 }
 0x139   :  { %v239_v52 = vadd.f32 %v238_v51, %v184_v27 }
 0x13b   :  { %v262_v53 = vmin.f32 %v239_v52, 0.0  ;;  %vm254_vm14 = vcmp.gt.f32.partialorder %v239_v52, 0.0 }
 0x13d   :  { %v241_v54 = vpop.f32.mrf.mxu2  ;;  %v3648_v55 = vpop.eup %3647  ;;  %v273_v56 = vmul.f32 1.442695, %v262_v53 }
 0x13e   :  { %v242_v57 = vadd.f32 %v241_v54, %v184_v27  ;;  %v3195_v58 = vadd.f32 -1.0, %v3648_v55 }
 0x13f   :  { %3649 = vpow2.f32 %v273_v56 }
 0x140   :  { %v263_v59 = vmin.f32 %v242_v57, 0.0  ;;  %v293_v60 = vsel %vm253_vm13, %v237_v46, %v3195_v58   ;;  %vm255_vm15 = vcmp.gt.f32.partialorder %v242_v57, 0.0 }
 0x142   :  { %v275_v61 = vmul.f32 1.442695, %v263_v59 }
 0x144   :  { %3651 = vpow2.f32 %v275_v61 }
 0x145   :  { %v243_v62 = vpop.f32.mrf.mxu2  ;;  %v3650_v63 = vpop.eup %3649 }
 0x146   :  { %v244_v8 = vadd.f32 %v243_v62, %v184_v27  ;;  %v3196_v9 = vadd.f32 -1.0, %v3650_v63 }
 0x148   :  { %v264_v10 = vmin.f32 %v244_v8, 0.0  ;;  %v294_v11 = vsel %vm254_vm14, %v239_v52, %v3196_v9   ;;  %vm256_vm0 = vcmp.gt.f32.partialorder %v244_v8, 0.0 }
 0x14a   :  { %v3652_v12 = vpop.eup %3651  ;;  %v277_v13 = vmul.f32 1.442695, %v264_v10 }
 0x14b   :  { %v3197_v14 = vadd.f32 -1.0, %v3652_v12 }
 0x14c   :  { %3653 = vpow2.f32 %v277_v13 }
 0x14d   :  { %v295_v15 = vsel %vm255_vm15, %v242_v57, %v3197_v14   ;;  %v246_v16 = vpop.f32.mrf.mxu2 }
 0x14e   :  { %v247_v17 = vadd.f32 %v246_v16, %v184_v27 }
 0x150   :  { %v265_v18 = vmin.f32 %v247_v17, 0.0  ;;  %vm257_vm1 = vcmp.gt.f32.partialorder %v247_v17, 0.0 }
 0x152   :  { %v3654_v19 = vpop.eup %3653  ;;  %v279_v20 = vmul.f32 1.442695, %v265_v18 }
 0x153   :  { %v3198_v21 = vadd.f32 -1.0, %v3654_v19 }
 0x154   :  { %3655 = vpow2.f32 %v279_v20 }
 0x155   :  { %v296_v22 = vsel %vm256_vm0, %v244_v8, %v3198_v21   ;;  %v248_v23 = vpop.f32.mrf.mxu2 }
 0x156   :  { %v249_v24 = vadd.f32 %v248_v23, %v184_v27 }
 0x158   :  { %v266_v25 = vmin.f32 %v249_v24, 0.0  ;;  %vm258_vm2 = vcmp.gt.f32.partialorder %v249_v24, 0.0 }
 0x15a   :  { %v3656_v28 = vpop.eup %3655  ;;  %v281_v29 = vmul.f32 1.442695, %v266_v25 }
 0x15b   :  { %v3199_v30 = vadd.f32 -1.0, %v3656_v28 }
 0x15c   :  { %3657 = vpow2.f32 %v281_v29 }
 0x15d   :  { %v297_v31 = vsel %vm257_vm1, %v247_v17, %v3199_v30  }
 0x162   :  { %v3658_v32 = vpop.eup %3657 }
 0x163   :  { %v3200_v33 = vadd.f32 -1.0, %v3658_v32 }
 0x165   :  { %v298_v34 = vsel %vm258_vm2, %v249_v24, %v3200_v33  }
 0x166 LB: > { %v5500_v3 = vld [vmem:[#allocation8_spill] sm:$0xff]  ;;  %v5501_v2 = vld [vmem:[#allocation7_spill] sm:$0xff]  ;;  %v5502_v1 = vld [vmem:[#allocation6_spill] sm:$0xff]  ;;  %s3477_s4 = sshll.u32 %s4129_s3, 6  ;;  %v4393_v47 = vpack.c.bf16 %v4121_v50, %v4125_v44  ;;  %v4399_v48 = vpack.c.bf16 %v4113_v11, %v4117_v60  ;;  %v4405_v26 = vpack.c.bf16 %v4105_v22, %v4109_v15  ;;  %v4411_v49 = vpack.c.bf16 %v4097_v34, %v4101_v31  ;;  %s3203_s20 = sshll.u32 %s4129_s3, 1  ;;  %v4109_v15 = vphi %v295_v15, %v5513_v15   ;;  %v4105_v22 = vphi %v296_v22, %v5512_v22   ;;  %v4101_v31 = vphi %v297_v31, %v5511_v31   ;;  %v4097_v34 = vphi %v298_v34, %v5510_v34   ;;  %s4129_s3 = sphi %s4346_s3, %s304_s3   ;;  %v4125_v44 = vphi %v4327_v44, %v5517_v44   ;;  %v4121_v50 = vphi %v292_v50, %v5516_v50   ;;  %v4117_v60 = vphi %v293_v60, %v5515_v60   ;;  %v4113_v11 = vphi %v294_v11, %v5514_v11  }
 0x167   : > { %v5503_v0 = vld [vmem:[#allocation5_spill] sm:$0xff]  ;;  %s4381_s19 = scalar_lea.vmem %s5477_s5, %s3477_s4  ;;  %s325_s23 = scalar_lea.vmem %s5478_s6, %s3203_s20  ;;  %vm758_vm3 = vcmask 130048  }
 0x168   : > { %v3235_v27 = vld [vmem:[%s4381_s19 + $0x30] sm:$0xf]  ;;  %v3485_v35 = vld [vmem:[%s4381_s19 + $0x34] sm:$0xf0]  ;;  %v3227_v36 = vld [vmem:[%s4381_s19 + $0x20] sm:$0xf] }
 0x169   : > { %v3236_v37 = vor.u32 %v3485_v35, %v3235_v27  ;;  %v3483_v38 = vld [vmem:[%s4381_s19 + $0x24] sm:$0xf0]  ;;  %v3219_v40 = vld [vmem:[%s4381_s19 + $0x10] sm:$0xf]  ;;  %v3481_v41 = vld [vmem:[%s4381_s19 + $0x14] sm:$0xf0] }
 0x16a   : > { %v3228_v39 = vor.u32 %v3483_v38, %v3227_v36  ;;  %v3220_v42 = vor.u32 %v3481_v41, %v3219_v40  ;;  %v3211_v43 = vld [vmem:[%s4381_s19] sm:$0xf]  ;;  %v3479_v45 = vld [vmem:[%s4381_s19 + $0x4] sm:$0xf0]  ;;  %s4131_s24 = smov 112   ;;  %s4132_s25 = smov 96  }
 0x16b   : > { %452 = vmatpush.bf16.msra.mxu0 %v3236_v37  ;;  %v3212_v46 = vor.u32 %v3479_v45, %v3211_v43  ;;  %v4421_v51 = vld [vmem:[%s325_s23] sm:$0x3]  ;;  %v3484_v35 = vld [vmem:[%s4381_s19 + $0x34] sm:$0xf]  ;;  %v3237_v36 = vld [vmem:[%s4381_s19 + $0x38] sm:$0xf0] }
 0x16c   : > { %v392_v53 = vperm.slane %v4421_v51, 0  ;;  %v3240_v37 = vor.u32 %v3484_v35, %v3237_v36  ;;  %v3482_v38 = vld [vmem:[%s4381_s19 + $0x24] sm:$0xf]  ;;  %s4133_s27 = smov 80   ;;  %s4134_s28 = smov 64  }
 0x16d   : > { %s4135_s29 = smov 48   ;;  %s4136_s30 = smov 32  }
 0x16e   : > { %481 = vmatpush.bf16.msra.mxu1 %v3240_v37  ;;  %s4137_s26 = smov 16   ;;  %s3486_s1 = sshll.u32 %s4129_s3, 5 }
 0x16f   : > { %453 = vmatpush.bf16.msra.mxu0 %v3228_v39  ;;  %v3229_v39 = vld [vmem:[%s4381_s19 + $0x28] sm:$0xf0]  ;;  %s5025_s17 = scalar_lea.vmem %s5479_s7, %s3486_s1  ;;  %s3204_s18 = sshll.u32 %s4129_s3, 3 }
 0x170   : > { %v3232_v43 = vor.u32 %v3482_v38, %v3229_v39  ;;  %s383_s22 = scalar_lea.vmem %s5482_s10, %s3204_s18  ;;  %s385_s1 = scalar_lea.vmem %s5483_s11, %s3203_s20 }
 0x172   : > { %482 = vmatpush.bf16.msra.mxu1 %v3232_v43 }
 0x173   : > { %454 = vmatpush.bf16.msra.mxu0 %v3220_v42 }
 0x177   : > { %455 = vmatpush.bf16.msra.mxu0 %v3212_v46 }
 0x17a   : > { %3241 = vmatmul.msk.bf16.vlgmr.msra.gmra.mxu0 %vm209_vm4, %v4393_v47 }
 0x18a   : > { %3242 = vmatmul.msk.bf16.gmra.mxu0 %vm209_vm4, %v4399_v48 }
 0x19a   : > { %3243 = vmatmul.msk.bf16.gmra.mxu0 %vm209_vm4, %v4405_v26 }
 0x1aa   : > { %3244 = vmatmul.msk.bf16.gmra.mxu0 %vm209_vm4, %v4411_v49 }
 0x1f7   : > { %v457_v52 = vpop.f32.mrf.mxu0 }
 0x1f8   : > { %v458_v54 = vadd.f32 %v457_v52, %v392_v53 }
 0x1fa   : > { %v586_v57 = vpack.c.bf16 %v458_v54, %v458_v54 }
 0x1fc   : > { %v738_v59 = vunpack.c.l.b16 %v586_v57 }
 0x1ff   : > { %v459_v55 = vpop.f32.mrf.mxu0 }
 0x200   : > { %v460_v56 = vadd.f32 %v459_v55, %v392_v53 }
 0x202   : > { %v587_v58 = vpack.c.bf16 %v460_v56, %v460_v56  ;;  %v3714_v45 = vpack.i.bf16 %v460_v56, %v458_v54  ;;  %v3480_v54 = vld [vmem:[%s4381_s19 + $0x14] sm:$0xf]  ;;  %v3221_v56 = vld [vmem:[%s4381_s19 + $0x18] sm:$0xf0] }
 0x204   : > { %v739_v61 = vunpack.c.l.b16 %v587_v58  ;;  %v3224_v58 = vor.u32 %v3480_v54, %v3221_v56 }
 0x206   : > { %v4424_v62 = vpack.c.b16 %v739_v61, %v738_v59  ;;  %483 = vmatpush.bf16.msra.mxu1 %v3224_v58  ;;  %v3478_v59 = vld [vmem:[%s4381_s19 + $0x4] sm:$0xf]  ;;  %v3213_v61 = vld [vmem:[%s4381_s19 + $0x8] sm:$0xf0] }
 0x207   : > { %v462_v63 = vpop.f32.mrf.mxu0 }
 0x208   : > { %v463_v8 = vadd.f32 %v462_v63, %v392_v53  ;;  %v3216_v63 = vor.u32 %v3478_v59, %v3213_v61 }
 0x20a   : > { %v588_v12 = vpack.c.bf16 %v463_v8, %v463_v8  ;;  %484 = vmatpush.bf16.msra.mxu1 %v3216_v63 }
 0x20c   : > { %v740_v16 = vunpack.c.l.b16 %v588_v12 }
 0x20d   : > { %3245 = vmatmul.msk.bf16.vlgmr.msra.gmra.mxu1 %vm209_vm4, %v4393_v47 }
 0x20f   : > { %v464_v9 = vpop.f32.mrf.mxu0 }
 0x210   : > { %v465_v10 = vadd.f32 %v464_v9, %v392_v53 }
 0x212   : > { %v3679_v13 = vpack.i.bf16 %v465_v10, %v463_v8  ;;  %v589_v14 = vpack.c.bf16 %v465_v10, %v465_v10 }
 0x214   : > { %3680 = vrot.lane.b32.xlu2 %v3679_v13, %s4131_s24  ;;  %v741_v17 = vunpack.c.l.b16 %v589_v14 }
 0x216   : > { %v4427_v18 = vpack.c.b16 %v741_v17, %v740_v16 }
 0x217   : > { %v467_v19 = vpop.f32.mrf.mxu0 }
 0x218   : > { %v468_v20 = vadd.f32 %v467_v19, %v392_v53 }
 0x21a   : > { %v590_v24 = vpack.c.bf16 %v468_v20, %v468_v20 }
 0x21c   : > { %v742_v29 = vunpack.c.l.b16 %v590_v24 }
 0x21d   : > { %3246 = vmatmul.msk.bf16.gmra.mxu1 %vm209_vm4, %v4399_v48 }
 0x21f   : > { %v469_v21 = vpop.f32.mrf.mxu0 }
 0x220   : > { %v470_v23 = vadd.f32 %v469_v21, %v392_v53 }
 0x222   : > { %v3684_v25 = vpack.i.bf16 %v470_v23, %v468_v20  ;;  %v591_v28 = vpack.c.bf16 %v470_v23, %v470_v23 }
 0x224   : > { %3685 = vrot.lane.b32.xlu2 %v3684_v25, %s4132_s25  ;;  %v743_v30 = vunpack.c.l.b16 %v591_v28 }
 0x226   : > { %v4430_v32 = vpack.c.b16 %v743_v30, %v742_v29 }
 0x227   : > { %v472_v33 = vpop.f32.mrf.mxu0 }
 0x228   : > { %v473_v27 = vadd.f32 %v472_v33, %v392_v53 }
 0x22a   : > { %v592_v42 = vpack.c.bf16 %v473_v27, %v473_v27 }
 0x22c   : > { %3700 = vrot.lane.b32.xlu2 %v3679_v13, %s4132_s25  ;;  %v744_v55 = vunpack.c.l.b16 %v592_v42 }
 0x22d   : > { %3247 = vmatmul.msk.bf16.gmra.mxu1 %vm209_vm4, %v4405_v26 }
 0x22f   : > { %v474_v40 = vpop.f32.mrf.mxu0 }
 0x230   : > { %v475_v41 = vadd.f32 %v474_v40, %v392_v53 }
 0x232   : > { %v3669_v46 = vpack.i.bf16 %v475_v41, %v473_v27  ;;  %v593_v52 = vpack.c.bf16 %v475_v41, %v475_v41 }
 0x234   : > { %3715 = vrot.lane.b32.xlu2 %v3714_v45, %s4133_s27  ;;  %3670 = vrot.lane.b32.xlu1 %v3669_v46, %s4132_s25  ;;  %v745_v57 = vunpack.c.l.b16 %v593_v52 }
 0x235   : > { %3660 = vrot.lane.b32.xlu0 %v3669_v46, %s4131_s24 }
 0x236   : > { %v4440_v53 = vpack.c.b16 %v745_v57, %v744_v55 }
 0x23c   : > { %3675 = vrot.lane.b32.xlu1 %v3669_v46, %s4133_s27 }
 0x23d   : > { %3665 = vrot.lane.b32.xlu0 %v3684_v25, %s4131_s24  ;;  %3248 = vmatmul.msk.bf16.gmra.mxu1 %vm209_vm4, %v4411_v49 }
 0x244   : > { %3695 = vrot.lane.b32.xlu1 %v3714_v45, %s4131_s24 }
 0x245   : > { %3690 = vrot.lane.b32.xlu0 %v3684_v25, %s4133_s27 }
 0x24c   : > { %3710 = vrot.lane.b32.xlu1 %v3714_v45, %s4132_s25 }
 0x24d   : > { %3705 = vrot.lane.b32.xlu0 %v3679_v13, %s4133_s27 }
 0x26e   : > { %v3681_v8 = vpop.permute.xlu2 %3680 }
 0x26f   : > { %v3683_v55 = vunpack.i.h.bf16 %v3681_v8  ;;  %v3682_v57 = vunpack.i.l.bf16 %v3681_v8 }
 0x27e   : > { %v3686_v9 = vpop.permute.xlu2 %3685 }
 0x27f   : > { %v3688_v19 = vunpack.i.h.bf16 %v3686_v9  ;;  %v3687_v20 = vunpack.i.l.bf16 %v3686_v9 }
 0x281   : > { %v607_v49 = vpack.c.bf16 %v3688_v19, %v3688_v19  ;;  %v606_v30 = vpack.c.bf16 %v3687_v20, %v3687_v20 }
 0x283   : > { %v906_v43 = vunpack.c.l.b16 %v607_v49  ;;  %v905_v45 = vunpack.c.l.b16 %v606_v30 }
 0x286   : > { %v3701_v26 = vpop.permute.xlu2 %3700 }
 0x287   : > { %v3703_v39 = vunpack.i.h.bf16 %v3701_v26  ;;  %v3702_v40 = vunpack.i.l.bf16 %v3701_v26 }
 0x289   : > { %v605_v61 = vpack.c.bf16 %v3703_v39, %v3703_v39  ;;  %v604_v63 = vpack.c.bf16 %v3702_v40, %v3702_v40 }
 0x28b   : > { %v904_v8 = vunpack.c.l.b16 %v605_v61 }
 0x2a6   : > { %v3671_v10 = vpop.permute.xlu1 %3670 }
 0x2a7   : > { %v3673_v12 = vunpack.i.h.bf16 %v3671_v10  ;;  %v3672_v13 = vunpack.i.l.bf16 %v3671_v10  ;;  %v3661_v14 = vpop.permute.xlu0 %3660 }
 0x2a8   : > { %v3663_v16 = vunpack.i.h.bf16 %v3661_v14  ;;  %v3662_v17 = vunpack.i.l.bf16 %v3661_v14  ;;  %v597_v14 = vpack.c.bf16 %v3683_v55, %v3683_v55 }
 0x2a9   : > { %v609_v47 = vpack.c.bf16 %v3673_v12, %v3673_v12  ;;  %v608_v21 = vpack.c.bf16 %v3672_v13, %v3672_v13  ;;  %v4468_v12 = vpack.c.b16 %v906_v43, %v905_v45 }
 0x2aa   : > { %v601_v23 = vpack.c.bf16 %v3663_v16, %v3663_v16  ;;  %v600_v48 = vpack.c.bf16 %v3662_v17, %v3662_v17  ;;  %v596_v16 = vpack.c.bf16 %v3682_v57, %v3682_v57  ;;  %v3716_v17 = vpop.permute.xlu2 %3715 }
 0x2ab   : > { %v908_v24 = vunpack.c.l.b16 %v609_v47  ;;  %v907_v25 = vunpack.c.l.b16 %v608_v21  ;;  %v903_v21 = vunpack.c.l.b16 %v604_v63 }
 0x2ac   : > { %v827_v28 = vunpack.c.l.b16 %v601_v23  ;;  %v826_v29 = vunpack.c.l.b16 %v600_v48  ;;  %v822_v49 = vunpack.c.l.b16 %v596_v16 }
 0x2ad   : > { %v4460_v33 = vpack.c.b16 %v908_v24, %v907_v25  ;;  %v3718_v24 = vunpack.i.h.bf16 %v3716_v17  ;;  %v3717_v25 = vunpack.i.l.bf16 %v3716_v17 }
 0x2ae   : > { %v3676_v27 = vpop.permute.xlu1 %3675  ;;  %v4462_v35 = vpack.c.b16 %v827_v28, %v826_v29  ;;  %v823_v29 = vunpack.c.l.b16 %v597_v14 }
 0x2af   : > { %v3678_v36 = vunpack.i.h.bf16 %v3676_v27  ;;  %v3677_v37 = vunpack.i.l.bf16 %v3676_v27  ;;  %v3666_v38 = vpop.permute.xlu0 %3665  ;;  %919 = vrot.lane.b32.xlu2 %v4460_v33, %s4134_s28  ;;  %v611_v39 = vpack.c.bf16 %v3718_v24, %v3718_v24  ;;  %v610_v40 = vpack.c.bf16 %v3717_v25, %v3717_v25  ;;  %v486_v25 = vpop.f32.mrf.mxu1 }
 0x2b0   : > { %v3668_v41 = vunpack.i.h.bf16 %v3666_v38  ;;  %v3667_v42 = vunpack.i.l.bf16 %v3666_v38  ;;  %838 = vrot.lane.b32.xlu0 %v4462_v35, %s4134_s28  ;;  %v4480_v38 = vpack.c.b16 %v904_v8, %v903_v21  ;;  %v4482_v43 = vpack.c.b16 %v823_v29, %v822_v49 }
 0x2b1   : > { %v617_v46 = vpack.c.bf16 %v3678_v36, %v3678_v36  ;;  %v616_v52 = vpack.c.bf16 %v3677_v37, %v3677_v37 }
 0x2b2   : > { %v599_v54 = vpack.c.bf16 %v3668_v41, %v3668_v41  ;;  %v598_v56 = vpack.c.bf16 %v3667_v42, %v3667_v42 }
 0x2b3   : > { %v989_v58 = vunpack.c.l.b16 %v617_v46  ;;  %v988_v59 = vunpack.c.l.b16 %v616_v52 }
 0x2b4   : > { %v825_v9 = vunpack.c.l.b16 %v599_v54  ;;  %v824_v10 = vunpack.c.l.b16 %v598_v56  ;;  %v983_v54 = vunpack.c.l.b16 %v611_v39  ;;  %v982_v56 = vunpack.c.l.b16 %v610_v40 }
 0x2b5   : > { %v4470_v13 = vpack.c.b16 %v989_v58, %v988_v59 }
 0x2b6   : > { %v3696_v19 = vpop.permute.xlu1 %3695  ;;  %v4472_v20 = vpack.c.b16 %v825_v9, %v824_v10  ;;  %v4492_v17 = vpack.c.b16 %v983_v54, %v982_v56 }
 0x2b7   : > { %v3691_v47 = vpop.permute.xlu0 %3690  ;;  %917 = vrot.lane.b32.xlu2 %v4468_v12, %s4134_s28  ;;  %v3698_v26 = vunpack.i.h.bf16 %v3696_v19  ;;  %v3697_v28 = vunpack.i.l.bf16 %v3696_v19 }
 0x2b8   : > { %v3693_v23 = vunpack.i.h.bf16 %v3691_v47  ;;  %v3692_v48 = vunpack.i.l.bf16 %v3691_v47  ;;  %836 = vrot.lane.b32.xlu1 %v4472_v20, %s4134_s28  ;;  %1000 = vrot.lane.b32.xlu0 %v4470_v13, %s4134_s28 }
 0x2b9   : > { %v595_v41 = vpack.c.bf16 %v3698_v26, %v3698_v26  ;;  %v594_v42 = vpack.c.bf16 %v3697_v28, %v3697_v28  ;;  %v488_v26 = vpop.f32.mrf.mxu1 }
 0x2ba   : > { %v615_v30 = vpack.c.bf16 %v3693_v23, %v3693_v23  ;;  %v614_v27 = vpack.c.bf16 %v3692_v48, %v3692_v48 }
 0x2bb   : > { %v821_v58 = vunpack.c.l.b16 %v595_v41  ;;  %v820_v59 = vunpack.c.l.b16 %v594_v42 }
 0x2bc   : > { %v987_v36 = vunpack.c.l.b16 %v615_v30  ;;  %v986_v37 = vunpack.c.l.b16 %v614_v27 }
 0x2bd   : > { %v4494_v8 = vpack.c.b16 %v821_v58, %v820_v59 }
 0x2be   : > { %v4484_v45 = vpack.c.b16 %v987_v36, %v986_v37  ;;  %v3711_v46 = vpop.permute.xlu1 %3710  ;;  %v393_v37 = vperm.slane %v4421_v51, 1 }
 0x2bf   : > { %v3706_v52 = vpop.permute.xlu0 %3705  ;;  %915 = vrot.lane.b32.xlu2 %v4480_v38, %s4134_s28  ;;  %v3713_v61 = vunpack.i.h.bf16 %v3711_v46  ;;  %v3712_v63 = vunpack.i.l.bf16 %v3711_v46 }
 0x2c0   : > { %v3708_v55 = vunpack.i.h.bf16 %v3706_v52  ;;  %v3707_v57 = vunpack.i.l.bf16 %v3706_v52  ;;  %834 = vrot.lane.b32.xlu1 %v4482_v43, %s4134_s28  ;;  %998 = vrot.lane.b32.xlu0 %v4484_v45, %s4134_s28  ;;  %v4522_v51 = vadd.f32 %v486_v25, %v393_v37  ;;  %v4524_v56 = vadd.f32 %v488_v26, %v393_v37 }
 0x2c1   : > { %v603_v19 = vpack.c.bf16 %v3713_v61, %v3713_v61  ;;  %v602_v47 = vpack.c.bf16 %v3712_v63, %v3712_v63  ;;  %v491_v28 = vpop.f32.mrf.mxu1 }
 0x2c2   : > { %v613_v9 = vpack.c.bf16 %v3708_v55, %v3708_v55  ;;  %v612_v10 = vpack.c.bf16 %v3707_v57, %v3707_v57  ;;  %v4527_v58 = vadd.f32 %v491_v28, %v393_v37  ;;  %v3749_v63 = vpack.i.bf16 %v4524_v56, %v4522_v51 }
 0x2c3   : > { %v902_v23 = vunpack.c.l.b16 %v603_v19  ;;  %v901_v48 = vunpack.c.l.b16 %v602_v47 }
 0x2c4   : > { %v985_v14 = vunpack.c.l.b16 %v613_v9  ;;  %v984_v16 = vunpack.c.l.b16 %v612_v10 }
 0x2c5   : > { %v4504_v24 = vpack.c.b16 %v902_v23, %v901_v48 }
 0x2c6   : > { %v4496_v21 = vpack.c.b16 %v985_v14, %v984_v16 }
 0x2c7   : > { %994 = vrot.lane.b32.xlu2 %v4492_v17, %s4134_s28 }
 0x2c8   : > { %832 = vrot.lane.b32.xlu1 %v4494_v8, %s4134_s28  ;;  %996 = vrot.lane.b32.xlu0 %v4496_v21, %s4134_s28 }
 0x2c9   : > { %v493_v29 = vpop.f32.mrf.mxu1 }
 0x2ca   : > { %v4529_v59 = vadd.f32 %v493_v29, %v393_v37 }
 0x2cc   : > { %v3734_v10 = vpack.i.bf16 %v4529_v59, %v4527_v58 }
 0x2cf   : > { %752 = vrot.lane.b32.xlu2 %v4427_v18, %s4134_s28 }
 0x2d0   : > { %913 = vrot.lane.b32.xlu1 %v4504_v24, %s4134_s28  ;;  %756 = vrot.lane.b32.xlu0 %v4440_v53, %s4134_s28 }
 0x2d1   : > { %v496_v49 = vpop.f32.mrf.mxu1 }
 0x2d2   : > { %v497_v14 = vadd.f32 %v496_v49, %v393_v37 }
 0x2d8   : > { %754 = vrot.lane.b32.xlu1 %v4430_v32, %s4134_s28  ;;  %750 = vrot.lane.b32.xlu0 %v4424_v62, %s4134_s28 }
 0x2d9   : > { %v498_v30 = vpop.f32.mrf.mxu1 }
 0x2da   : > { %v499_v16 = vadd.f32 %v498_v30, %v393_v37 }
 0x2dc   : > { %v3754_v25 = vpack.i.bf16 %v499_v16, %v497_v14 }
 0x2de   : > { %3725 = vrot.lane.b32.xlu2 %v3754_v25, %s4131_s24 }
 0x2e1   : > { %v501_v27 = vpop.f32.mrf.mxu1 }
 0x2e2   : > { %v502_v40 = vadd.f32 %v501_v27, %v393_v37 }
 0x2e6   : > { %3745 = vrot.lane.b32.xlu2 %v3754_v25, %s4132_s25 }
 0x2e9   : > { %v503_v41 = vpop.f32.mrf.mxu1 }
 0x2ea   : > { %v504_v42 = vadd.f32 %v503_v41, %v393_v37 }
 0x2ec   : > { %v3729_v55 = vpack.i.bf16 %v504_v42, %v502_v40 }
 0x2ee   : > { %3730 = vrot.lane.b32.xlu0 %v3729_v55, %s4132_s25  ;;  %3720 = vrot.lane.b32.xlu1 %v3729_v55, %s4131_s24 }
 0x2ef   : > { %3770 = vrot.lane.b32.xlu2 %v3749_v63, %s4132_s25 }
 0x2f6   : > { %3740 = vrot.lane.b32.xlu0 %v3729_v55, %s4133_s27  ;;  %3735 = vrot.lane.b32.xlu1 %v3734_v10, %s4131_s24 }
 0x2f7   : > { %3775 = vrot.lane.b32.xlu2 %v3749_v63, %s4133_s27 }
 0x2fe   : > { %3750 = vrot.lane.b32.xlu0 %v3749_v63, %s4131_s24  ;;  %3755 = vrot.lane.b32.xlu1 %v3754_v25, %s4133_s27 }
 0x306   : > { %3760 = vrot.lane.b32.xlu0 %v3734_v10, %s4132_s25  ;;  %s5141_s25 = scalar_lea.vmem %s5480_s8, %s3477_s4  ;;  %s3500_s4 = sshll.u32 %s4129_s3, 7 }
 0x307   : > { %s304_s3 = sadd.s32 1, %s4129_s3  }
 0x308   : > { %p301_p0 = scmp.ge.s32.totalorder %s304_s3, 4  }
 0x309   : > { %v920_v36 = vpop.permute.xlu2 %919 }
 0x30a   : > { %v943_v39 = vsel %vm758_vm3, %v920_v36, 0 }
 0x30b   : > { %949 = vmatpush.bf16.xpose.msrb.mxu0 %v943_v39 }
 0x30e   : > { %3765 = vrot.lane.b32.xlu0 %v3734_v10, %s4133_s27 }
 0x311   : > { %v918_v46 = vpop.permute.xlu2 %917 }
 0x312   : > { %v940_v52 = vsel %vm758_vm3, %v918_v46, 0 }
 0x313   : > { %950 = vmatpush.bf16.xpose.msrb.mxu0 %v940_v52 }
 0x319   : > { %v916_v57 = vpop.permute.xlu2 %915 }
 0x31a   : > { %v937_v54 = vsel %vm758_vm3, %v916_v57, 0 }
 0x31b   : > { %951 = vmatpush.bf16.xpose.msrb.mxu0 %v937_v54  ;;  %v704_v54 = vpack.c.bf16 %v502_v40, %v502_v40  ;;  %v698_v40 = vpack.c.bf16 %v4522_v51, %v4522_v51  ;;  %v700_v51 = vpack.c.bf16 %v4527_v58, %v4527_v58 }
 0x321   : > { %v995_v39 = vpop.permute.xlu2 %994 }
 0x322   : > { %v839_v61 = vpop.permute.xlu0 %838  ;;  %v1015_v52 = vsel %vm758_vm3, %v995_v39, 0 }
 0x323   : > { %v862_v9 = vsel %vm758_vm3, %v839_v61, 0  ;;  %v705_v61 = vpack.c.bf16 %v504_v42, %v504_v42  ;;  %v699_v42 = vpack.c.bf16 %v4524_v56, %v4524_v56  ;;  %v701_v56 = vpack.c.bf16 %v4529_v59, %v4529_v59 }
 0x324   : > { %868 = vmatpush.bf16.xpose.msra.mxu3 %v862_v9  ;;  %v1569_v9 = vunpack.c.l.b16 %v704_v54 }
 0x325   : > { %v1570_v10 = vunpack.c.l.b16 %v705_v61  ;;  %v1564_v25 = vunpack.c.l.b16 %v699_v42 }
 0x32a   : > { %v837_v19 = vpop.permute.xlu1 %836  ;;  %v1001_v47 = vpop.permute.xlu0 %1000 }
 0x32b   : > { %v859_v23 = vsel %vm758_vm3, %v837_v19, 0  ;;  %v1024_v48 = vsel %vm758_vm3, %v1001_v47, 0  ;;  %v1574_v19 = vpack.c.b16 %v1570_v10, %v1569_v9 }
 0x32c   : > { %869 = vmatpush.bf16.xpose.msra.mxu3 %v859_v23  ;;  %1030 = vmatpush.bf16.xpose.msrb.mxu1 %v1024_v48  ;;  %v753_v23 = vpop.permute.xlu2 %752  ;;  %v1563_v48 = vunpack.c.l.b16 %v698_v40 }
 0x332   : > { %v835_v26 = vpop.permute.xlu1 %834  ;;  %v999_v28 = vpop.permute.xlu0 %998 }
 0x333   : > { %v856_v29 = vsel %vm758_vm3, %v835_v26, 0  ;;  %v1021_v49 = vsel %vm758_vm3, %v999_v28, 0  ;;  %v702_v26 = vpack.c.bf16 %v497_v14, %v497_v14  ;;  %v703_v28 = vpack.c.bf16 %v499_v16, %v499_v16 }
 0x334   : > { %870 = vmatpush.bf16.xpose.msra.mxu3 %v856_v29  ;;  %1031 = vmatpush.bf16.xpose.msrb.mxu1 %v1021_v49  ;;  %v1565_v16 = vunpack.c.l.b16 %v700_v51 }
 0x335   : > { %v1567_v63 = vunpack.c.l.b16 %v702_v26  ;;  %v1568_v49 = vunpack.c.l.b16 %v703_v28 }
 0x337   : > { %v1573_v14 = vpack.c.b16 %v1568_v49, %v1567_v63 }
 0x33a   : > { %v833_v30 = vpop.permute.xlu1 %832  ;;  %v997_v27 = vpop.permute.xlu0 %996 }
 0x33b   : > { %v853_v36 = vsel %vm758_vm3, %v833_v30, 0  ;;  %v1018_v37 = vsel %vm758_vm3, %v997_v27, 0  ;;  %v1566_v30 = vunpack.c.l.b16 %v701_v56 }
 0x33c   : > { %871 = vmatpush.bf16.xpose.msra.mxu3 %v853_v36  ;;  %1032 = vmatpush.bf16.xpose.msrb.mxu1 %v1018_v37 }
 0x33d   : > { %v1572_v27 = vpack.c.b16 %v1566_v30, %v1565_v16 }
 0x342   : > { %v914_v41 = vpop.permute.xlu1 %913  ;;  %v757_v46 = vpop.permute.xlu0 %756 }
 0x343   : > { %3253 = vmatmul.msk.bf16.vlgmr.msra.gmra.mxu3 %vm758_vm3, %v4494_v8  ;;  %v934_v55 = vsel %vm758_vm3, %v914_v41, 0  ;;  %v781_v57 = vsel %vm758_vm3, %v757_v46, 0 }
 0x344   : > { %952 = vmatpush.bf16.xpose.msrb.mxu0 %v934_v55  ;;  %1033 = vmatpush.bf16.xpose.msrb.mxu1 %v1015_v52 }
 0x345   : > { %787 = vmatpush.bf16.xpose.msra.mxu2 %v781_v57 }
 0x34a   : > { %v755_v47 = vpop.permute.xlu1 %754  ;;  %v751_v29 = vpop.permute.xlu0 %750 }
 0x34b   : > { %3257 = vmatmul.msk.bf16.vlgmr.msrb.gmra.mxu0 %vm758_vm3, %v4504_v24  ;;  %3261 = vmatmul.msk.bf16.vlgmr.msrb.gmra.mxu1 %vm758_vm3, %v4492_v17  ;;  %v778_v8 = vsel %vm758_vm3, %v755_v47, 0  ;;  %v1571_v24 = vpack.c.b16 %v1564_v25, %v1563_v48  ;;  %v775_v17 = vsel %vm758_vm3, %v753_v23, 0 }
 0x34d   : > { %788 = vmatpush.bf16.xpose.msra.mxu2 %v778_v8 }
 0x353   : > { %3254 = vmatmul.msk.bf16.gmra.mxu3 %vm758_vm3, %v4482_v43  ;;  %v772_v43 = vsel %vm758_vm3, %v751_v29, 0 }
 0x355   : > { %789 = vmatpush.bf16.xpose.msra.mxu2 %v775_v17 }
 0x35b   : > { %3258 = vmatmul.msk.bf16.gmra.mxu0 %vm758_vm3, %v4480_v38  ;;  %3262 = vmatmul.msk.bf16.gmra.mxu1 %vm758_vm3, %v4496_v21 }
 0x35d   : > { %790 = vmatpush.bf16.xpose.msra.mxu2 %v772_v43 }
 0x360   : > { %v4595_v37 = vpop.permute.xlu1 %3720 }
 0x363   : > { %3255 = vmatmul.msk.bf16.gmra.mxu3 %vm758_vm3, %v4472_v20 }
 0x364   : > { %3249 = vmatmul.msk.bf16.vlgmr.msra.gmra.mxu2 %vm758_vm3, %v4424_v62  ;;  %v3731_v62 = vpop.permute.xlu0 %3730 }
 0x365   : > { %1595 = vmatpush.bf16.msrb.mxu2 %v1574_v19  ;;  %v3732_v20 = vunpack.i.l.bf16 %v3731_v62 }
 0x368   : > { %v4603_v57 = vpop.permute.xlu1 %3735 }
 0x369   : > { %1596 = vmatpush.bf16.msrb.mxu2 %v1573_v14 }
 0x36b   : > { %3259 = vmatmul.msk.bf16.gmra.mxu0 %vm758_vm3, %v4468_v12  ;;  %3263 = vmatmul.msk.bf16.gmra.mxu1 %vm758_vm3, %v4484_v45  ;;  %v3733_v12 = vunpack.i.h.bf16 %v3731_v62  ;;  %v720_v45 = vpack.c.bf16 %v3732_v20, %v3732_v20 }
 0x36c   : > { %v3741_v59 = vpop.permute.xlu0 %3740 }
 0x36d   : > { %1597 = vmatpush.bf16.msrb.mxu2 %v1572_v27  ;;  %v721_v38 = vpack.c.bf16 %v3733_v12, %v3733_v12  ;;  %v1739_v58 = vunpack.c.l.b16 %v720_v45  ;;  %v3743_v36 = vunpack.i.h.bf16 %v3741_v59 }
 0x36f   : > { %v1740_v21 = vunpack.c.l.b16 %v721_v38 }
 0x370   : > { %v3756_v42 = vpop.permute.xlu1 %3755 }
 0x371   : > { %1598 = vmatpush.bf16.msrb.mxu2 %v1571_v24  ;;  %v3758_v23 = vunpack.i.h.bf16 %v3756_v42  ;;  %v3757_v48 = vunpack.i.l.bf16 %v3756_v42 }
 0x373   : > { %3256 = vmatmul.msk.bf16.gmra.mxu3 %vm758_vm3, %v4462_v35  ;;  %v1744_v35 = vpack.c.b16 %v1740_v21, %v1739_v58  ;;  %v727_v29 = vpack.c.bf16 %v3758_v23, %v3758_v23  ;;  %v726_v63 = vpack.c.bf16 %v3757_v48, %v3757_v48 }
 0x374   : > { %3250 = vmatmul.msk.bf16.gmra.mxu2 %vm758_vm3, %v4427_v18  ;;  %v3742_v18 = vunpack.i.l.bf16 %v3741_v59  ;;  %v4601_v52 = vpop.permute.xlu0 %3750 }
 0x375   : > { %1765 = vmatpush.bf16.msra.mxu0 %v1744_v35  ;;  %v1823_v49 = vunpack.c.l.b16 %v727_v29  ;;  %v1822_v51 = vunpack.c.l.b16 %v726_v63  ;;  %v3752_v29 = vunpack.i.l.bf16 %v4601_v52 }
 0x376   : > { %v728_v39 = vpack.c.bf16 %v3742_v18, %v3742_v18 }
 0x377   : > { %v1828_v38 = vpack.c.b16 %v1823_v49, %v1822_v51 }
 0x37b   : > { %3260 = vmatmul.msk.bf16.gmra.mxu0 %vm758_vm3, %v4460_v33  ;;  %3264 = vmatmul.msk.bf16.gmra.mxu1 %vm758_vm3, %v4470_v13  ;;  %v729_v33 = vpack.c.bf16 %v3743_v36, %v3743_v36  ;;  %v4597_v13 = vpop.permute.xlu2 %3725 }
 0x37c   : > { %v3761_v9 = vpop.permute.xlu0 %3760 }
 0x37d   : > { %v1825_v41 = vunpack.c.l.b16 %v729_v33  ;;  %v3763_v47 = vunpack.i.h.bf16 %v3761_v9  ;;  %v3762_v8 = vunpack.i.l.bf16 %v3761_v9 }
 0x37f   : > { %v717_v24 = vpack.c.bf16 %v3763_v47, %v3763_v47  ;;  %v716_v17 = vpack.c.bf16 %v3762_v8, %v3762_v8  ;;  %v3728_v47 = vunpack.i.h.bf16 %v4597_v13  ;;  %v3727_v8 = vunpack.i.l.bf16 %v4597_v13 }
 0x381   : > { %v1736_v43 = vunpack.c.l.b16 %v717_v24  ;;  %v1735_v14 = vunpack.c.l.b16 %v716_v17  ;;  %v711_v23 = vpack.c.bf16 %v3728_v47, %v3728_v47  ;;  %v710_v48 = vpack.c.bf16 %v3727_v8, %v3727_v8 }
 0x382   : > { %v3738_v24 = vunpack.i.h.bf16 %v4603_v57  ;;  %v3737_v17 = vunpack.i.l.bf16 %v4603_v57 }
 0x383   : > { %v3746_v55 = vpop.permute.xlu2 %3745 }
 0x384   : > { %3251 = vmatmul.msk.bf16.gmra.mxu2 %vm758_vm3, %v4430_v32  ;;  %v1824_v32 = vunpack.c.l.b16 %v728_v39  ;;  %v3748_v54 = vunpack.i.h.bf16 %v3746_v55  ;;  %v3747_v61 = vunpack.i.l.bf16 %v3746_v55  ;;  %v3766_v56 = vpop.permute.xlu0 %3765  ;;  %v1742_v55 = vpack.c.b16 %v1736_v43, %v1735_v14 }
 0x385   : > { %v3768_v16 = vunpack.i.h.bf16 %v3766_v56  ;;  %v3767_v30 = vunpack.i.l.bf16 %v3766_v56  ;;  %v709_v63 = vpack.c.bf16 %v3738_v24, %v3738_v24  ;;  %v708_v49 = vpack.c.bf16 %v3737_v17, %v3737_v17 }
 0x386   : > { %v1829_v46 = vpack.c.b16 %v1825_v41, %v1824_v32  ;;  %v719_v10 = vpack.c.bf16 %v3748_v54, %v3748_v54  ;;  %v718_v19 = vpack.c.bf16 %v3747_v61, %v3747_v61  ;;  %v706_v43 = vpack.c.bf16 %v3752_v29, %v3752_v29 }
 0x387   : > { %v725_v45 = vpack.c.bf16 %v3768_v16, %v3768_v16  ;;  %v724_v21 = vpack.c.bf16 %v3767_v30, %v3767_v30  ;;  %v1651_v14 = vunpack.c.l.b16 %v709_v63  ;;  %v1650_v16 = vunpack.c.l.b16 %v708_v49 }
 0x388   : > { %1850 = vmatpush.bf16.msra.mxu1 %v1829_v46  ;;  %v1738_v25 = vunpack.c.l.b16 %v719_v10  ;;  %v3723_v10 = vunpack.i.h.bf16 %v4595_v37 }
 0x389   : > { %v1821_v59 = vunpack.c.l.b16 %v725_v45  ;;  %v1820_v36 = vunpack.c.l.b16 %v724_v21  ;;  %v1657_v57 = vpack.c.b16 %v1651_v14, %v1650_v16 }
 0x38b   : > { %v3771_v40 = vpop.permute.xlu2 %3770  ;;  %v1827_v54 = vpack.c.b16 %v1821_v59, %v1820_v36 }
 0x38c   : > { %v3773_v26 = vunpack.i.h.bf16 %v3771_v40  ;;  %v3772_v28 = vunpack.i.l.bf16 %v3771_v40  ;;  %1851 = vmatpush.bf16.msra.mxu1 %v1828_v38  ;;  %v713_v40 = vpack.c.bf16 %v3723_v10, %v3723_v10 }
 0x38e   : > { %v715_v27 = vpack.c.bf16 %v3773_v26, %v3773_v26  ;;  %v714_v62 = vpack.c.bf16 %v3772_v28, %v3772_v28  ;;  %v1653_v26 = vunpack.c.l.b16 %v711_v23  ;;  %v1652_v28 = vunpack.c.l.b16 %v710_v48 }
 0x390   : > { %v1734_v39 = vunpack.c.l.b16 %v715_v27  ;;  %v1733_v41 = vunpack.c.l.b16 %v714_v62  ;;  %1852 = vmatpush.bf16.msra.mxu1 %v1827_v54  ;;  %v1658_v13 = vpack.c.b16 %v1653_v26, %v1652_v28  ;;  %v1648_v27 = vunpack.c.l.b16 %v706_v43 }
 0x392   : > { %v1741_v61 = vpack.c.b16 %v1734_v39, %v1733_v41 }
 0x393   : > { %v3776_v12 = vpop.permute.xlu2 %3775 }
 0x394   : > { %3252 = vmatmul.msk.bf16.gmra.mxu2 %vm758_vm3, %v4440_v53  ;;  %v1737_v53 = vunpack.c.l.b16 %v718_v19  ;;  %v3778_v58 = vunpack.i.h.bf16 %v3776_v12  ;;  %v3777_v35 = vunpack.i.l.bf16 %v3776_v12  ;;  %v3722_v19 = vunpack.i.l.bf16 %v4595_v37 }
 0x395   : > { %v3753_v37 = vunpack.i.h.bf16 %v4601_v52 }
 0x396   : > { %v1743_v20 = vpack.c.b16 %v1738_v25, %v1737_v53  ;;  %v723_v18 = vpack.c.bf16 %v3778_v58, %v3778_v58  ;;  %v722_v33 = vpack.c.bf16 %v3777_v35, %v3777_v35  ;;  %v712_v42 = vpack.c.bf16 %v3722_v19, %v3722_v19 }
 0x397   : > { %v1655_v25 = vunpack.c.l.b16 %v713_v40  ;;  %v707_v56 = vpack.c.bf16 %v3753_v37, %v3753_v37 }
 0x398   : > { %1766 = vmatpush.bf16.msra.mxu0 %v1743_v20  ;;  %v1819_v32 = vunpack.c.l.b16 %v723_v18  ;;  %v1818_v46 = vunpack.c.l.b16 %v722_v33  ;;  %v1654_v53 = vunpack.c.l.b16 %v712_v42 }
 0x399   : > { %v1649_v30 = vunpack.c.l.b16 %v707_v56 }
 0x39a   : > { %v1826_v9 = vpack.c.b16 %v1819_v32, %v1818_v46  ;;  %v1659_v51 = vpack.c.b16 %v1655_v25, %v1654_v53 }
 0x39b   : > { %v1656_v38 = vpack.c.b16 %v1649_v30, %v1648_v27 }
 0x39c   : > { %1767 = vmatpush.bf16.msra.mxu0 %v1742_v55  ;;  %1853 = vmatpush.bf16.msra.mxu1 %v1826_v9 }
 0x39d   : > { %1680 = vmatpush.bf16.msrb.mxu3 %v1659_v51 }
 0x3a0   : > { %1768 = vmatpush.bf16.msra.mxu0 %v1741_v61 }
 0x3a1   : > { %1681 = vmatpush.bf16.msrb.mxu3 %v1658_v13 }
 0x3a5   : > { %1682 = vmatpush.bf16.msrb.mxu3 %v1657_v57 }
 0x3a9   : > { %1683 = vmatpush.bf16.msrb.mxu3 %v1656_v38 }
 0x3c6   : > { %v873_v62 = vpop.f32.mrf.mxu3 }
 0x3c7   : > { %v4621_v58 = vadd.f32 %v873_v62, %v5503_v0 }
 0x3c8   : > { %v4613_v12 = vpop.f32.mrf.mxu0  ;;  %v1035_v20 = vpop.f32.mrf.mxu1 }
 0x3c9   : > { %v4616_v52 = vadd.f32 %v1035_v20, %v5503_v0  ;;  %v1079_v36 = vsel %vm209_vm4, %v4621_v58, -inf }
 0x3cb   : > { %v1127_v45 = vsel %vm209_vm4, %v4616_v52, -inf }
 0x3cc   : > { %1128 = vmax.xlane.f32.xlu1 %v1127_v45 }
 0x3ce   : > { %v875_v21 = vpop.f32.mrf.mxu3 }
 0x3cf   : > { %v4678_v62 = vadd.f32 %v875_v21, %v5502_v1  ;;  %v4694_v21 = vadd.f32 %v4613_v12, %v5503_v0 }
 0x3d0   : > { %v956_v35 = vpop.f32.mrf.mxu0  ;;  %v1037_v59 = vpop.f32.mrf.mxu1 }
 0x3d1   : > { %v4648_v25 = vadd.f32 %v956_v35, %v5502_v1  ;;  %v4663_v51 = vadd.f32 %v1037_v59, %v5502_v1  ;;  %v1082_v35 = vsel %vm209_vm4, %v4678_v62, -inf }
 0x3d3   : > { %v1106_v29 = vsel %vm209_vm4, %v4648_v25, -inf  ;;  %v1130_v16 = vsel %vm209_vm4, %v4663_v51, -inf }
 0x3d4   : > { %1080 = vmax.xlane.f32.xlu1 %v1079_v36 }
 0x3d6   : > { %v878_v18 = vpop.f32.mrf.mxu3 }
 0x3d8   : > { %v959_v33 = vpop.f32.mrf.mxu0  ;;  %v1040_v39 = vpop.f32.mrf.mxu1 }
 0x3d9   : > { %v4626_v41 = vadd.f32 %v1040_v39, %v5501_v2  ;;  %v4697_v36 = vadd.f32 %v959_v33, %v5501_v2  ;;  %v1103_v39 = vsel %vm209_vm4, %v4694_v21, -inf }
 0x3db   : > { %v1133_v32 = vsel %vm209_vm4, %v4626_v41, -inf }
 0x3dc   : > { %1134 = vmax.xlane.f32.xlu1 %v1133_v32  ;;  %v1109_v32 = vsel %vm209_vm4, %v4697_v36, -inf }
 0x3de   : > { %v880_v46 = vpop.f32.mrf.mxu3 }
 0x3df   : > { %v4631_v55 = vadd.f32 %v880_v46, %v5500_v3  ;;  %v4704_v46 = vadd.f32 %v878_v18, %v5501_v2 }
 0x3e0   : > { %v961_v54 = vpop.f32.mrf.mxu0  ;;  %v1042_v61 = vpop.f32.mrf.mxu1 }
 0x3e1   : > { %v1088_v9 = vsel %vm209_vm4, %v4631_v55, -inf  ;;  %v1085_v12 = vsel %vm209_vm4, %v4704_v46, -inf }
 0x3e4   : > { %1089 = vmax.xlane.f32.xlu1 %v1088_v9  ;;  %v4707_v9 = vadd.f32 %v1042_v61, %v5500_v3 }
 0x3e6   : > { %v4641_v42 = vpop.f32.mrf.mxu3  ;;  %v1136_v33 = vsel %vm209_vm4, %v4707_v9, -inf }
 0x3e7   : > { %v792_v10 = vpop.f32.mrf.mxu2 }
 0x3e8   : > { %v4636_v19 = vadd.f32 %v792_v10, %v5503_v0  ;;  %v964_v47 = vpop.f32.mrf.mxu0  ;;  %v1045_v8 = vpop.f32.mrf.mxu1  ;;  %v4714_v10 = vadd.f32 %v961_v54, %v5500_v3 }
 0x3e9   : > { %v4639_v40 = vadd.f32 %v964_v47, %v4250_v4 }
 0x3ea   : > { %v1055_v23 = vsel %vm209_vm4, %v4636_v19, -inf  ;;  %v1112_v18 = vsel %vm209_vm4, %v4714_v10, -inf }
 0x3eb   : > { %1056 = vmax.xlane.f32.xlu2 %v1055_v23  ;;  %v1115_v48 = vsel %vm209_vm4, %v4639_v40, -inf }
 0x3ec   : > { %1116 = vmax.xlane.f32.xlu1 %v1115_v48  ;;  %v4724_v48 = vadd.f32 %v1045_v8, %v4250_v4 }
 0x3ee   : > { %v885_v49 = vpop.f32.mrf.mxu3  ;;  %v1139_v54 = vsel %vm209_vm4, %v4724_v48, -inf }
 0x3ef   : > { %v794_v53 = vpop.f32.mrf.mxu2  ;;  %v4666_v13 = vadd.f32 %v885_v49, %v4255_v5 }
 0x3f0   : > { %v4651_v24 = vadd.f32 %v794_v53, %v5502_v1  ;;  %v1047_v17 = vpop.f32.mrf.mxu1  ;;  %v966_v28 = vpop.f32.mrf.mxu0 }
 0x3f1   : > { %v4654_v26 = vadd.f32 %v1047_v17, %v4255_v5  ;;  %v1094_v30 = vsel %vm209_vm4, %v4666_v13, -inf  ;;  %v4717_v47 = vadd.f32 %v966_v28, %v4255_v5 }
 0x3f2   : > { %v1058_v37 = vsel %vm209_vm4, %v4651_v24, -inf }
 0x3f3   : > { %1059 = vmax.xlane.f32.xlu0 %v1058_v37  ;;  %1107 = vmax.xlane.f32.xlu2 %v1106_v29  ;;  %v1142_v63 = vsel %vm209_vm4, %v4654_v26, -inf  ;;  %v1118_v61 = vsel %vm209_vm4, %v4717_v47, -inf  ;;  %v4735_v37 = vadd.f32 %v4641_v42, %v4250_v4 }
 0x3f4   : > { %1143 = vmax.xlane.f32.xlu1 %v1142_v63 }
 0x3f5   : > { %v1091_v8 = vsel %vm209_vm4, %v4735_v37, -inf }
 0x3f6   : > { %v888_v28 = vpop.f32.mrf.mxu3 }
 0x3f7   : > { %v797_v56 = vpop.f32.mrf.mxu2  ;;  %v4738_v29 = vadd.f32 %v888_v28, %v4260_v6 }
 0x3f8   : > { %v4669_v43 = vadd.f32 %v797_v56, %v5501_v2  ;;  %v969_v27 = vpop.f32.mrf.mxu0  ;;  %v1050_v23 = vpop.f32.mrf.mxu1 }
 0x3f9   : > { %v4681_v57 = vadd.f32 %v969_v27, %v4260_v6  ;;  %v4727_v53 = vadd.f32 %v1050_v23, %v4260_v6  ;;  %v1097_v63 = vsel %vm209_vm4, %v4738_v29, -inf }
 0x3fa   : > { %v1061_v14 = vsel %vm209_vm4, %v4669_v43, -inf }
 0x3fb   : > { %1062 = vmax.xlane.f32.xlu0 %v1061_v14  ;;  %1131 = vmax.xlane.f32.xlu2 %v1130_v16  ;;  %v1121_v59 = vsel %vm209_vm4, %v4681_v57, -inf  ;;  %v1145_v17 = vsel %vm209_vm4, %v4727_v53, -inf }
 0x3fc   : > { %1095 = vmax.xlane.f32.xlu1 %v1094_v30 }
 0x3ff   : > { %v799_v20 = vpop.f32.mrf.mxu2 }
 0x400   : > { %v4684_v38 = vadd.f32 %v799_v20, %v5500_v3  ;;  %v971_v49 = vpop.f32.mrf.mxu0  ;;  %v1052_v42 = vpop.f32.mrf.mxu1 }
 0x401   : > { %v4745_v56 = vadd.f32 %v971_v49, %v4265_v7  ;;  %v4750_v16 = vadd.f32 %v1052_v42, %v4265_v7  ;;  %v890_v20 = vpop.f32.mrf.mxu3 }
 0x402   : > { %v1064_v45 = vsel %vm209_vm4, %v4684_v38, -inf }
 0x403   : > { %1065 = vmax.xlane.f32.xlu0 %v1064_v45  ;;  %1083 = vmax.xlane.f32.xlu2 %v1082_v35  ;;  %v1124_v14 = vsel %vm209_vm4, %v4745_v56, -inf  ;;  %v1148_v27 = vsel %vm209_vm4, %v4750_v16, -inf  ;;  %v4757_v45 = vadd.f32 %v890_v20, %v4265_v7 }
 0x404   : > { %1122 = vmax.xlane.f32.xlu1 %v1121_v59 }
 0x407   : > { %v4752_v30 = vpop.f32.mrf.mxu2 }
 0x40b   : > { %1104 = vmax.xlane.f32.xlu0 %v1103_v39  ;;  %1110 = vmax.xlane.f32.xlu2 %v1109_v32  ;;  %v1100_v32 = vsel %vm209_vm4, %v4757_v45, -inf }
 0x413   : > { %1086 = vmax.xlane.f32.xlu0 %v1085_v12  ;;  %1137 = vmax.xlane.f32.xlu2 %v1136_v33  ;;  %v4762_v12 = vpop.f32.mrf.mxu2 }
 0x41b   : > { %1113 = vmax.xlane.f32.xlu0 %v1112_v18  ;;  %1119 = vmax.xlane.f32.xlu2 %v1118_v61 }
 0x423   : > { %1140 = vmax.xlane.f32.xlu0 %v1139_v54  ;;  %1146 = vmax.xlane.f32.xlu2 %v1145_v17 }
 0x42b   : > { %1092 = vmax.xlane.f32.xlu0 %v1091_v8  ;;  %1098 = vmax.xlane.f32.xlu2 %v1097_v63 }
 0x433   : > { %1125 = vmax.xlane.f32.xlu0 %v1124_v14 }
 0x43b   : > { %1149 = vmax.xlane.f32.xlu0 %v1148_v27 }
 0x43f   : > { %v1129_v35 = vpop.xlane.xlu1 %1128 }
 0x440   : > { %vm1175_vm5 = vcmp.gt.f32.partialorder %v1129_v35, -inf }
 0x441   : > { %v1207_v59 = vsel %vm1175_vm5, %v1129_v35, 0.0 }
 0x442   : > { %v1239_v39 = vsub.f32 %v4616_v52, %v1207_v59  ;;  %v807_v52 = vpop.f32.mrf.mxu2 }
 0x443   : > { %1101 = vmax.xlane.f32.xlu0 %v1100_v32  ;;  %v4770_v8 = vadd.f32 %v807_v52, %v4260_v6 }
 0x444   : > { %v1295_v33 = vmul.f32 1.442695, %v1239_v39 }
 0x445   : > { %v1073_v49 = vsel %vm209_vm4, %v4770_v8, -inf }
 0x446   : > { %3839 = vpow2.f32 %v1295_v33 }
 0x447   : > { %v1081_v18 = vpop.xlane.xlu1 %1080 }
 0x448   : > { %vm1159_vm6 = vcmp.gt.f32.partialorder %v1081_v18, -inf }
 0x449   : > { %v1191_v61 = vsel %vm1159_vm6, %v1081_v18, 0.0 }
 0x44a   : > { %v1223_v23 = vsub.f32 %v4621_v58, %v1191_v61 }
 0x44c   : > { %v4765_v54 = vpop.eup %3839  ;;  %v1263_v17 = vmul.f32 1.442695, %v1223_v23 }
 0x44d   : > { %v1383_v28 = vsel %vm209_vm4, %v4765_v54, 0.0 }
 0x44e   : > { %3841 = vpow2.f32 %v1263_v17  ;;  %1384 = vadd.xlane.f32.xlu1 %v1383_v28 }
 0x44f   : > { %v1135_v42 = vpop.xlane.xlu1 %1134 }
 0x450   : > { %vm1177_vm10 = vcmp.gt.f32.partialorder %v1135_v42, -inf }
 0x454   : > { %v4772_v63 = vpop.eup %3841 }
 0x455   : > { %v1335_v58 = vsel %vm209_vm4, %v4772_v63, 0.0 }
 0x456   : > { %1074 = vmax.xlane.f32.xlu1 %v1073_v49  ;;  %1336 = vadd.xlane.f32.xlu2 %v1335_v58 }
 0x457   : > { %v1090_v61 = vpop.xlane.xlu1 %1089 }
 0x458   : > { %vm1162_vm14 = vcmp.gt.f32.partialorder %v1090_v61, -inf }
 0x45e   : > { %v4778_v14 = vpop.xlane.xlu2 %1056 }
 0x45f   : > { %vm1151_vm0 = vcmp.gt.f32.partialorder %v4778_v14, -inf }
 0x466   : > { %v1108_v27 = vpop.xlane.xlu2 %1107  ;;  %v1060_v20 = vpop.xlane.xlu0 %1059 }
 0x467   : > { %vm1168_vm7 = vcmp.gt.f32.partialorder %v1108_v27, -inf  ;;  %vm1152_vm8 = vcmp.gt.f32.partialorder %v1060_v20, -inf }
 0x468   : > { %v1200_v35 = vsel %vm1168_vm7, %v1108_v27, 0.0  ;;  %v1184_v59 = vsel %vm1152_vm8, %v1060_v20, 0.0 }
 0x469   : > { %v1232_v39 = vsub.f32 %v4648_v25, %v1200_v35  ;;  %v1216_v32 = vsub.f32 %v4651_v24, %v1184_v59  ;;  %v1117_v59 = vpop.xlane.xlu1 %1116 }
 0x46a   : > { %vm1171_vm11 = vcmp.gt.f32.partialorder %v1117_v59, -inf }
 0x46b   : > { %v1281_v33 = vmul.f32 1.442695, %v1232_v39  ;;  %v1249_v18 = vmul.f32 1.442695, %v1216_v32 }
 0x46d   : > { %3843 = vpow2.f32 %v1281_v33 }
 0x46e   : > { %3845 = vpow2.f32 %v1249_v18  ;;  %v1132_v23 = vpop.xlane.xlu2 %1131  ;;  %v4782_v17 = vpop.xlane.xlu0 %1062  ;;  %v1209_v18 = vsel %vm1177_vm10, %v1135_v42, 0.0 }
 0x46f   : > { %vm1176_vm9 = vcmp.gt.f32.partialorder %v1132_v23, -inf  ;;  %v1241_v0 = vsub.f32 %v4626_v41, %v1209_v18  ;;  %vm1153_vm1 = vcmp.gt.f32.partialorder %v4782_v17, -inf }
 0x470   : > { %v1208_v28 = vsel %vm1176_vm9, %v1132_v23, 0.0  ;;  %v4803_v23 = vadd.f32 %v4752_v30, %v4250_v4  ;;  %v809_v30 = vpop.f32.mrf.mxu2  ;;  %v3517_v4 = vld [vmem:[%s5484_s12] sm:$0xff] (%p301_p0) }
 0x471   : > { %v1240_v52 = vsub.f32 %v4663_v51, %v1208_v28  ;;  %v1203_v28 = vsel %vm1171_vm11, %v1117_v59, 0.0  ;;  %v1144_v1 = vpop.xlane.xlu1 %1143  ;;  %v1299_v59 = vmul.f32 1.442695, %v1241_v0 }
 0x472   : > { %v1067_v3 = vsel %vm209_vm4, %v4803_v23, -inf  ;;  %vm1180_vm15 = vcmp.gt.f32.partialorder %v1144_v1, -inf }
 0x473   : > { %v4785_v49 = vpop.eup %3843  ;;  %v1297_v58 = vmul.f32 1.442695, %v1240_v52 }
 0x474   : > { %v4787_v27 = vpop.eup %3845  ;;  %v1362_v25 = vsel %vm209_vm4, %v4785_v49, 0.0 }
 0x475   : > { %3847 = vpow2.f32 %v1297_v58  ;;  %1363 = vadd.xlane.f32.xlu2 %v1362_v25  ;;  %v1314_v24 = vsel %vm209_vm4, %v4787_v27, 0.0 }
 0x476   : > { %1315 = vadd.xlane.f32.xlu1 %v1314_v24  ;;  %v4793_v20 = vpop.xlane.xlu2 %1083  ;;  %v4795_v35 = vpop.xlane.xlu0 %1065 }
 0x477   : > { %vm1160_vm2 = vcmp.gt.f32.partialorder %v4793_v20, -inf }
 0x47b   : > { %v4797_v51 = vpop.eup %3847 }
 0x47c   : > { %v1386_v39 = vsel %vm209_vm4, %v4797_v51, 0.0 }
 0x47d   : > { %1387 = vadd.xlane.f32.xlu2 %v1386_v39  ;;  %v1235_v39 = vsub.f32 %v4639_v40, %v1203_v28  ;;  %v1212_v40 = vsel %vm1180_vm15, %v1144_v1, 0.0 }
 0x47e   : > { %v1111_v32 = vpop.xlane.xlu2 %1110  ;;  %v1105_v33 = vpop.xlane.xlu0 %1104  ;;  %v1244_v0 = vsub.f32 %v4654_v26, %v1212_v40 }
 0x47f   : > { %vm1169_vm12 = vcmp.gt.f32.partialorder %v1111_v32, -inf  ;;  %vm1167_vm13 = vcmp.gt.f32.partialorder %v1105_v33, -inf  ;;  %v1287_v41 = vmul.f32 1.442695, %v1235_v39 }
 0x480   : > { %v1201_v52 = vsel %vm1169_vm12, %v1111_v32, 0.0  ;;  %v1199_v58 = vsel %vm1167_vm13, %v1105_v33, 0.0  ;;  %v4813_v32 = vadd.f32 %v809_v30, %v4265_v7  ;;  %v1183_v33 = vsel %vm1151_vm0, %v4778_v14, 0.0 }
 0x481   : > { %v1233_v25 = vsub.f32 %v4697_v36, %v1201_v52  ;;  %v1231_v24 = vsub.f32 %v4694_v21, %v1199_v58  ;;  %v1194_v36 = vsel %vm1162_vm14, %v1090_v61, 0.0  ;;  %v1305_v52 = vmul.f32 1.442695, %v1244_v0 }
 0x482   : > { %v1226_v18 = vsub.f32 %v4631_v55, %v1194_v36  ;;  %v1076_v61 = vsel %vm209_vm4, %v4813_v32, -inf  ;;  %v1192_v30 = vsel %vm1160_vm2, %v4793_v20, 0.0  ;;  %vm1154_vm0 = vcmp.gt.f32.partialorder %v4795_v35, -inf }
 0x483   : > { %v1283_v2 = vmul.f32 1.442695, %v1233_v25  ;;  %v1279_v42 = vmul.f32 1.442695, %v1231_v24  ;;  %v1185_v25 = vsel %vm1153_vm1, %v4782_v17, 0.0  ;;  %v4834_v24 = vpop.xlane.xlu1 %1095  ;;  %v1224_v36 = vsub.f32 %v4678_v62, %v1192_v30 }
 0x484   : > { %v1269_v14 = vmul.f32 1.442695, %v1226_v18  ;;  %vm1164_vm14 = vcmp.gt.f32.partialorder %v4834_v24, -inf }
 0x485   : > { %3849 = vpow2.f32 %v1283_v2  ;;  %1068 = vmax.xlane.f32.xlu2 %v1067_v3  ;;  %v1215_v3 = vsub.f32 %v4636_v19, %v1183_v33  ;;  %v1265_v33 = vmul.f32 1.442695, %v1224_v36 }
 0x486   : > { %3851 = vpow2.f32 %v1279_v42  ;;  %v1087_v21 = vpop.xlane.xlu0 %1086  ;;  %v4840_v42 = vadd.f32 %v4762_v12, %v4255_v5  ;;  %v1138_v36 = vpop.xlane.xlu2 %1137 }
 0x487   : > { %3853 = vpow2.f32 %v1299_v59  ;;  %v1247_v58 = vmul.f32 1.442695, %v1215_v3  ;;  %v1217_v59 = vsub.f32 %v4669_v43, %v1185_v25  ;;  %vm1161_vm5 = vcmp.gt.f32.partialorder %v1087_v21, -inf }
 0x488   : > { %3855 = vpow2.f32 %v1287_v41  ;;  %v1070_v12 = vsel %vm209_vm4, %v4840_v42, -inf  ;;  %v1193_v0 = vsel %vm1161_vm5, %v1087_v21, 0.0  ;;  %vm1178_vm10 = vcmp.gt.f32.partialorder %v1138_v36, -inf }
 0x489   : > { %3857 = vpow2.f32 %v1269_v14  ;;  %v1251_v40 = vmul.f32 1.442695, %v1217_v59  ;;  %v1225_v14 = vsub.f32 %v4704_v46, %v1193_v0 }
 0x48a   : > { %3859 = vpow2.f32 %v1305_v52 }
 0x48b   : > { %v4817_v28 = vpop.eup %3849  ;;  %3861 = vpow2.f32 %v1247_v58  ;;  %v1267_v30 = vmul.f32 1.442695, %v1225_v14 }
 0x48c   : > { %v4820_v2 = vpop.eup %3851  ;;  %v1365_v1 = vsel %vm209_vm4, %v4817_v28, 0.0  ;;  %3863 = vpow2.f32 %v1251_v40 }
 0x48d   : > { %1077 = vmax.xlane.f32.xlu2 %v1076_v61  ;;  %1366 = vadd.xlane.f32.xlu1 %v1365_v1  ;;  %v1359_v55 = vsel %vm209_vm4, %v4820_v2, 0.0  ;;  %v4831_v19 = vpop.eup %3853  ;;  %v1123_v1 = vpop.xlane.xlu1 %1122  ;;  %3865 = vpow2.f32 %v1265_v33 }
 0x48e   : > { %1360 = vadd.xlane.f32.xlu0 %v1359_v55  ;;  %v1114_v26 = vpop.xlane.xlu0 %1113  ;;  %v4836_v39 = vpop.eup %3855  ;;  %v1389_v41 = vsel %vm209_vm4, %v4831_v19, 0.0  ;;  %vm1173_vm7 = vcmp.gt.f32.partialorder %v1123_v1, -inf }
 0x48f   : > { %v1371_v17 = vsel %vm209_vm4, %v4836_v39, 0.0  ;;  %v4851_v43 = vpop.eup %3857  ;;  %vm1170_vm8 = vcmp.gt.f32.partialorder %v1114_v26, -inf  ;;  %v1205_v25 = vsel %vm1173_vm7, %v1123_v1, 0.0 }
 0x490   : > { %v4853_v18 = vpop.eup %3859  ;;  %v1344_v58 = vsel %vm209_vm4, %v4851_v43, 0.0 }
 0x491   : > { %v4856_v61 = vpop.eup %3861  ;;  %v1398_v52 = vsel %vm209_vm4, %v4853_v18, 0.0 }
 0x492   : > { %v4865_v59 = vpop.eup %3863 }
 0x493   : > { %v1317_v0 = vsel %vm209_vm4, %v4865_v59, 0.0 }
 0x495   : > { %1372 = vadd.xlane.f32.xlu2 %v1371_v17  ;;  %1390 = vadd.xlane.f32.xlu1 %v1389_v41  ;;  %v1202_v17 = vsel %vm1170_vm8, %v1114_v26, 0.0 }
 0x496   : > { %1071 = vmax.xlane.f32.xlu0 %v1070_v12  ;;  %v1141_v20 = vpop.xlane.xlu0 %1140  ;;  %v4868_v12 = vpop.eup %3865 }
 0x497   : > { %vm1179_vm6 = vcmp.gt.f32.partialorder %v1141_v20, -inf }
 0x498   : > { %v1211_v62 = vsel %vm1179_vm6, %v1141_v20, 0.0  ;;  %v1237_v20 = vsub.f32 %v4681_v57, %v1205_v25 }
 0x499   : > { %v1243_v3 = vsub.f32 %v4724_v48, %v1211_v62  ;;  %v1311_v48 = vsel %vm209_vm4, %v4856_v61, 0.0  ;;  %v1234_v62 = vsub.f32 %v4714_v10, %v1202_v17  ;;  %v1210_v10 = vsel %vm1178_vm10, %v1138_v36, 0.0 }
 0x49a   : > { %v1291_v26 = vmul.f32 1.442695, %v1237_v20  ;;  %v1242_v25 = vsub.f32 %v4707_v9, %v1210_v10  ;;  %vm1988_vm10 = vcmask 392192  }
 0x49b   : > { %v1303_v55 = vmul.f32 1.442695, %v1243_v3  ;;  %v1338_v3 = vsel %vm209_vm4, %v4868_v12, 0.0  ;;  %v1285_v1 = vmul.f32 1.442695, %v1234_v62 }
 0x49c   : > { %v1301_v36 = vmul.f32 1.442695, %v1242_v25 }
 0x49d   : > { %1399 = vadd.xlane.f32.xlu2 %v1398_v52  ;;  %1345 = vadd.xlane.f32.xlu1 %v1344_v58  ;;  %3867 = vpow2.f32 %v1303_v55  ;;  %v1120_v58 = vpop.xlane.xlu2 %1119 }
 0x49e   : > { %1312 = vadd.xlane.f32.xlu0 %v1311_v48  ;;  %v1093_v21 = vpop.xlane.xlu0 %1092  ;;  %3869 = vpow2.f32 %v1267_v30  ;;  %vm1172_vm12 = vcmp.gt.f32.partialorder %v1120_v58, -inf }
 0x49f   : > { %vm1163_vm9 = vcmp.gt.f32.partialorder %v1093_v21, -inf }
 0x4a0   : > { %v1195_v46 = vsel %vm1163_vm9, %v1093_v21, 0.0  ;;  %vm1979_vm9 = vcmask 261120  }
 0x4a1   : > { %v1227_v41 = vsub.f32 %v4735_v37, %v1195_v46 }
 0x4a3   : > { %v1271_v40 = vmul.f32 1.442695, %v1227_v41  ;;  %v4871_v33 = vpop.eup %3867  ;;  %v1204_v41 = vsel %vm1172_vm12, %v1120_v58, 0.0 }
 0x4a4   : > { %v1395_v37 = vsel %vm209_vm4, %v4871_v33, 0.0  ;;  %v4881_v52 = vpop.eup %3869  ;;  %v1236_v9 = vsub.f32 %v4717_v47, %v1204_v41 }
 0x4a5   : > { %1318 = vadd.xlane.f32.xlu2 %v1317_v0  ;;  %3871 = vpow2.f32 %v1271_v40  ;;  %1396 = vadd.xlane.f32.xlu1 %v1395_v37  ;;  %v1341_v30 = vsel %vm209_vm4, %v4881_v52, 0.0 }
 0x4a6   : > { %1339 = vadd.xlane.f32.xlu0 %v1338_v3  ;;  %v1126_v57 = vpop.xlane.xlu0 %1125  ;;  %3873 = vpow2.f32 %v1291_v26 }
 0x4a7   : > { %vm1174_vm11 = vcmp.gt.f32.partialorder %v1126_v57, -inf  ;;  %3875 = vpow2.f32 %v1285_v1  ;;  %v1196_v1 = vsel %vm1164_vm14, %v4834_v24, 0.0 }
 0x4a8   : > { %v1206_v55 = vsel %vm1174_vm11, %v1126_v57, 0.0  ;;  %v1289_v57 = vmul.f32 1.442695, %v1236_v9  ;;  %v1228_v25 = vsub.f32 %v4666_v13, %v1196_v1 }
 0x4a9   : > { %v1238_v14 = vsub.f32 %v4745_v56, %v1206_v55  ;;  %v1147_v55 = vpop.xlane.xlu2 %1146 }
 0x4aa   : > { %v1273_v24 = vmul.f32 1.442695, %v1228_v25  ;;  %vm1181_vm5 = vcmp.gt.f32.partialorder %v1147_v55, -inf }
 0x4ab   : > { %v1293_v48 = vmul.f32 1.442695, %v1238_v14  ;;  %v4883_v21 = vpop.eup %3871  ;;  %v1213_v25 = vsel %vm1181_vm5, %v1147_v55, 0.0 }
 0x4ac   : > { %v1347_v46 = vsel %vm209_vm4, %v4883_v21, 0.0  ;;  %v4890_v17 = vpop.eup %3873 }
 0x4ad   : > { %3877 = vpow2.f32 %v1293_v48  ;;  %1348 = vadd.xlane.f32.xlu1 %v1347_v46  ;;  %v4892_v20 = vpop.eup %3875  ;;  %v1377_v3 = vsel %vm209_vm4, %v4890_v17, 0.0 }
 0x4ae   : > { %1342 = vadd.xlane.f32.xlu0 %v1341_v30  ;;  %v1150_v56 = vpop.xlane.xlu0 %1149  ;;  %3879 = vpow2.f32 %v1301_v36  ;;  %v1368_v0 = vsel %vm209_vm4, %v4892_v20, 0.0 }
 0x4af   : > { %vm1182_vm13 = vcmp.gt.f32.partialorder %v1150_v56, -inf  ;;  %3881 = vpow2.f32 %v1289_v57 }
 0x4b0   : > { %v1214_v26 = vsel %vm1182_vm13, %v1150_v56, 0.0  ;;  %v1186_v56 = vsel %vm1154_vm0, %v4795_v35, 0.0 }
 0x4b1   : > { %v1246_v58 = vsub.f32 %v4750_v16, %v1214_v26  ;;  %v1099_v16 = vpop.xlane.xlu2 %1098  ;;  %v1218_v13 = vsub.f32 %v4684_v38, %v1186_v56 }
 0x4b2   : > { %vm1165_vm1 = vcmp.gt.f32.partialorder %v1099_v16, -inf }
 0x4b3   : > { %v4894_v40 = vpop.eup %3877  ;;  %v1309_v46 = vmul.f32 1.442695, %v1246_v58  ;;  %v1253_v35 = vmul.f32 1.442695, %v1218_v13 }
 0x4b4   : > { %v1380_v62 = vsel %vm209_vm4, %v4894_v40, 0.0  ;;  %v4906_v14 = vpop.eup %3879 }
 0x4b5   : > { %1381 = vadd.xlane.f32.xlu2 %v1380_v62  ;;  %1378 = vadd.xlane.f32.xlu1 %v1377_v3  ;;  %v1392_v30 = vsel %vm209_vm4, %v4906_v14, 0.0  ;;  %v4914_v36 = vpop.eup %3881  ;;  %v1197_v3 = vsel %vm1165_vm1, %v1099_v16, 0.0 }
 0x4b6   : > { %1369 = vadd.xlane.f32.xlu0 %v1368_v0  ;;  %v1102_v37 = vpop.xlane.xlu0 %1101  ;;  %v1374_v62 = vsel %vm209_vm4, %v4914_v36, 0.0  ;;  %v1229_v38 = vsub.f32 %v4738_v29, %v1197_v3 }
 0x4b7   : > { %vm1166_vm15 = vcmp.gt.f32.partialorder %v1102_v37, -inf }
 0x4b8   : > { %v1198_v47 = vsel %vm1166_vm15, %v1102_v37, 0.0 }
 0x4b9   : > { %v1230_v10 = vsub.f32 %v4757_v45, %v1198_v47 }
 0x4bb   : > { %v1277_v48 = vmul.f32 1.442695, %v1230_v10 }
 0x4bd   : > { %3883 = vpow2.f32 %v1277_v48  ;;  %v1275_v48 = vmul.f32 1.442695, %v1229_v38 }
 0x4be   : > { %1393 = vadd.xlane.f32.xlu0 %v1392_v30  ;;  %3885 = vpow2.f32 %v1309_v46  ;;  %v1245_v46 = vsub.f32 %v4727_v53, %v1213_v25 }
 0x4bf   : > { %3887 = vpow2.f32 %v1273_v24 }
 0x4c0   : > { %3889 = vpow2.f32 %v1253_v35  ;;  %v1307_v56 = vmul.f32 1.442695, %v1245_v46 }
 0x4c1   : > { %v1385_v45 = vpop.xlane.xlu1 %1384 }
 0x4c2   : > { %v1431_v35 = vadd.f32 1e-16, %v1385_v45 }
 0x4c3   : > { %v4916_v41 = vpop.eup %3883 }
 0x4c4   : > { %v1356_v9 = vsel %vm209_vm4, %v4916_v41, 0.0  ;;  %v4923_v0 = vpop.eup %3885 }
 0x4c5   : > { %1357 = vadd.xlane.f32.xlu1 %v1356_v9  ;;  %v4925_v57 = vpop.eup %3887  ;;  %v1404_v1 = vsel %vm209_vm4, %v4923_v0, 0.0 }
 0x4c6   : > { %1375 = vadd.xlane.f32.xlu0 %v1374_v62  ;;  %v1350_v10 = vsel %vm209_vm4, %v4925_v57, 0.0  ;;  %v4933_v30 = vpop.eup %3889 }
 0x4c7   : > { %v1320_v29 = vsel %vm209_vm4, %v4933_v30, 0.0 }
 0x4c9   : > { %v1075_v37 = vpop.xlane.xlu1 %1074  ;;  %v4946_v53 = vpop.xlane.xlu2 %1336 }
 0x4ca   : > { %vm1157_vm2 = vcmp.gt.f32.partialorder %v1075_v37, -inf }
 0x4cb   : > { %v1189_v26 = vsel %vm1157_vm2, %v1075_v37, 0.0 }
 0x4cc   : > { %v1221_v47 = vsub.f32 %v4770_v8, %v1189_v26 }
 0x4cd   : > { %1405 = vadd.xlane.f32.xlu1 %v1404_v1 }
 0x4ce   : > { %v1259_v58 = vmul.f32 1.442695, %v1221_v47  ;;  %1351 = vadd.xlane.f32.xlu0 %v1350_v10 }
 0x4d0   : > { %3891 = vpow2.f32 %v1259_v58 }
 0x4d1   : > { %3893 = vpow2.f32 %v1275_v48 }
 0x4d2   : > { %3895 = vpow2.f32 %v1307_v56 }
 0x4d3   : > { %3897 = vrcp.f32 %v1431_v35 }
 0x4d6   : > { %v4938_v8 = vpop.eup %3891  ;;  %1321 = vadd.xlane.f32.xlu0 %v1320_v29 }
 0x4d7   : > { %v1329_v24 = vsel %vm209_vm4, %v4938_v8, 0.0  ;;  %v4942_v16 = vpop.eup %3893 }
 0x4d8   : > { %1330 = vadd.xlane.f32.xlu1 %v1329_v24  ;;  %v1353_v55 = vsel %vm209_vm4, %v4942_v16, 0.0  ;;  %v4948_v13 = vpop.eup %3895 }
 0x4d9   : > { %v1401_v9 = vsel %vm209_vm4, %v4948_v13, 0.0  ;;  %v3898_v26 = vpop.eup %3897 }
 0x4da   : > { %v1495_v38 = vmul.f32 %v3898_v26, %v4765_v54 }
 0x4dc   : > { %v1527_v10 = vpack.c.bf16 %v1495_v38, %v1495_v38 }
 0x4de   : > { %1354 = vadd.xlane.f32.xlu0 %v1353_v55  ;;  %v1798_v45 = vunpack.c.l.b16 %v1527_v10 }
 0x4e6   : > { %1402 = vadd.xlane.f32.xlu0 %v1401_v9 }
 0x4e8   : > { %v1364_v62 = vpop.xlane.xlu2 %1363 }
 0x4e9   : > { %v1424_v58 = vadd.f32 1e-16, %v1364_v62  ;;  %v1316_v62 = vpop.xlane.xlu1 %1315 }
 0x4f0   : > { %v1388_v3 = vpop.xlane.xlu2 %1387 }
 0x4f1   : > { %v1432_v37 = vadd.f32 1e-16, %v1388_v3 }
 0x4f3   : > { %3899 = vrcp.f32 %v1432_v37 }
 0x4f4   : > { %3901 = vrcp.f32 %v1424_v58 }
 0x4f8   : > { %v1069_v47 = vpop.xlane.xlu2 %1068 }
 0x4f9   : > { %v3900_v1 = vpop.eup %3899  ;;  %vm1155_vm6 = vcmp.gt.f32.partialorder %v1069_v47, -inf }
 0x4fa   : > { %v1496_v48 = vmul.f32 %v3900_v1, %v4797_v51  ;;  %v1187_v25 = vsel %vm1155_vm6, %v1069_v47, 0.0  ;;  %v3902_v37 = vpop.eup %3901 }
 0x4fb   : > { %v1219_v46 = vsub.f32 %v4803_v23, %v1187_v25  ;;  %v1488_v47 = vmul.f32 %v3902_v37, %v4785_v49 }
 0x4fc   : > { %v1528_v29 = vpack.c.bf16 %v1496_v48, %v1496_v48  ;;  %v1408_v48 = vadd.f32 1e-16, %v1316_v62 }
 0x4fd   : > { %v1255_v24 = vmul.f32 1.442695, %v1219_v46  ;;  %v1520_v58 = vpack.c.bf16 %v1488_v47, %v1488_v47 }
 0x4fe   : > { %v1799_v56 = vunpack.c.l.b16 %v1528_v29 }
 0x4ff   : > { %3903 = vpow2.f32 %v1255_v24 }
 0x500   : > { %v1078_v55 = vpop.xlane.xlu2 %1077  ;;  %v1806_v9 = vpack.c.b16 %v1799_v56, %v1798_v45  ;;  %v1367_v25 = vpop.xlane.xlu1 %1366 }
 0x501   : > { %vm1158_vm7 = vcmp.gt.f32.partialorder %v1078_v55, -inf  ;;  %v1361_v54 = vpop.xlane.xlu0 %1360 }
 0x502   : > { %v1190_v35 = vsel %vm1158_vm7, %v1078_v55, 0.0  ;;  %v1423_v3 = vadd.f32 1e-16, %v1361_v54  ;;  %3277 = vmatmul.msk.bf16.vlgmr.msra.gmra.mxu1 %vm209_vm4, %v1806_v9  ;;  %v1714_v55 = vunpack.c.l.b16 %v1520_v58 }
 0x503   : > { %v1222_v51 = vsub.f32 %v4813_v32, %v1190_v35 }
 0x504   : > { %3905 = vrcp.f32 %v1423_v3 }
 0x505   : > { %v4957_v23 = vpop.eup %3903  ;;  %v1261_v26 = vmul.f32 1.442695, %v1222_v51 }
 0x506   : > { %v1323_v38 = vsel %vm209_vm4, %v4957_v23, 0.0 }
 0x507   : > { %3907 = vpow2.f32 %v1261_v26  ;;  %1324 = vadd.xlane.f32.xlu2 %v1323_v38 }
 0x508   : > { %3909 = vrcp.f32 %v1408_v48  ;;  %v1391_v62 = vpop.xlane.xlu1 %1390 }
 0x509   : > { %v1072_v1 = vpop.xlane.xlu0 %1071 }
 0x50a   : > { %v3906_v10 = vpop.eup %3905  ;;  %vm1156_vm8 = vcmp.gt.f32.partialorder %v1072_v1, -inf }
 0x50b   : > { %v1487_v32 = vmul.f32 %v3906_v10, %v4820_v2  ;;  %v1188_v46 = vsel %vm1156_vm8, %v1072_v1, 0.0  ;;  %v1415_v2 = vadd.f32 1e-16, %v4946_v53 }
 0x50c   : > { %v1220_v29 = vsub.f32 %v4840_v42, %v1188_v46  ;;  %v1373_v46 = vpop.xlane.xlu2 %1372 }
 0x50d   : > { %v4964_v24 = vpop.eup %3907  ;;  %v1519_v45 = vpack.c.bf16 %v1487_v32, %v1487_v32 }
 0x50e   : > { %v1257_v56 = vmul.f32 1.442695, %v1220_v29  ;;  %v1332_v49 = vsel %vm209_vm4, %v4964_v24, 0.0  ;;  %v3910_v42 = vpop.eup %3909 }
 0x50f   : > { %v1713_v9 = vunpack.c.l.b16 %v1519_v45  ;;  %1333 = vadd.xlane.f32.xlu2 %v1332_v49  ;;  %v1472_v26 = vmul.f32 %v3910_v42, %v4787_v27 }
 0x510   : > { %3911 = vpow2.f32 %v1257_v56  ;;  %v1346_v32 = vpop.xlane.xlu1 %1345 }
 0x511   : > { %v1313_v54 = vpop.xlane.xlu0 %1312  ;;  %v1721_v35 = vpack.c.b16 %v1714_v55, %v1713_v9  ;;  %v1504_v53 = vpack.c.bf16 %v1472_v26, %v1472_v26  ;;  %v1425_v55 = vadd.f32 1e-16, %v1367_v25 }
 0x512   : > { %v1407_v3 = vadd.f32 1e-16, %v1313_v54 }
 0x513   : > { %3273 = vmatmul.msk.bf16.vlgmr.msra.gmra.mxu0 %vm209_vm4, %v1721_v35  ;;  %v1544_v45 = vunpack.c.l.b16 %v1504_v53  ;;  %v1418_v35 = vadd.f32 1e-16, %v1346_v32 }
 0x514   : > { %3913 = vrcp.f32 %v1407_v3 }
 0x515   : > { %3915 = vrcp.f32 %v1415_v2 }
 0x516   : > { %v4970_v51 = vpop.eup %3911 }
 0x517   : > { %v1326_v37 = vsel %vm209_vm4, %v4970_v51, 0.0 }
 0x518   : > { %1327 = vadd.xlane.f32.xlu0 %v1326_v37  ;;  %v1397_v26 = vpop.xlane.xlu1 %1396 }
 0x519   : > { %v1340_v38 = vpop.xlane.xlu0 %1339 }
 0x51a   : > { %v1416_v47 = vadd.f32 1e-16, %v1340_v38  ;;  %v3914_v1 = vpop.eup %3913 }
 0x51b   : > { %v1471_v10 = vmul.f32 %v3914_v1, %v4856_v61  ;;  %v3916_v58 = vpop.eup %3915 }
 0x51c   : > { %3917 = vrcp.f32 %v1416_v47  ;;  %v1479_v56 = vmul.f32 %v3916_v58, %v4772_v63  ;;  %v1433_v63 = vadd.f32 1e-16, %v1391_v62  ;;  %v1400_v47 = vpop.xlane.xlu2 %1399 }
 0x51d   : > { %v1503_v48 = vpack.c.bf16 %v1471_v10, %v1471_v10 }
 0x51e   : > { %v1511_v3 = vpack.c.bf16 %v1479_v56, %v1479_v56 }
 0x51f   : > { %v1543_v29 = vunpack.c.l.b16 %v1503_v48 }
 0x520   : > { %v1628_v42 = vunpack.c.l.b16 %v1511_v3 }
 0x521   : > { %v1343_v49 = vpop.xlane.xlu0 %1342  ;;  %v1551_v54 = vpack.c.b16 %v1544_v45, %v1543_v29  ;;  %v1427_v45 = vadd.f32 1e-16, %v1373_v46 }
 0x522   : > { %v1417_v9 = vadd.f32 1e-16, %v1343_v49  ;;  %v3918_v27 = vpop.eup %3917 }
 0x523   : > { %3265 = vmatmul.msk.bf16.vlgmr.msrb.gmra.mxu2 %vm209_vm4, %v1551_v54  ;;  %v1480_v61 = vmul.f32 %v3918_v27, %v4868_v12 }
 0x524   : > { %3919 = vrcp.f32 %v1417_v9  ;;  %v1319_v54 = vpop.xlane.xlu2 %1318 }
 0x525   : > { %3921 = vrcp.f32 %v1425_v55  ;;  %v1512_v2 = vpack.c.bf16 %v1480_v61, %v1480_v61  ;;  %v1349_v55 = vpop.xlane.xlu1 %1348 }
 0x526   : > { %3923 = vrcp.f32 %v1418_v35 }
 0x527   : > { %v1629_v37 = vunpack.c.l.b16 %v1512_v2  ;;  %v1435_v2 = vadd.f32 1e-16, %v1397_v26 }
 0x529   : > { %v1370_v38 = vpop.xlane.xlu0 %1369  ;;  %v1636_v1 = vpack.c.b16 %v1629_v37, %v1628_v42  ;;  %v1436_v37 = vadd.f32 1e-16, %v1400_v47 }
 0x52a   : > { %v1426_v25 = vadd.f32 1e-16, %v1370_v38  ;;  %v3920_v10 = vpop.eup %3919 }
 0x52b   : > { %v3922_v53 = vpop.eup %3921  ;;  %3269 = vmatmul.msk.bf16.vlgmr.msrb.gmra.mxu3 %vm209_vm4, %v1636_v1  ;;  %v1481_v12 = vmul.f32 %v3920_v10, %v4881_v52 }
 0x52c   : > { %v3924_v58 = vpop.eup %3923  ;;  %3925 = vrcp.f32 %v1426_v25  ;;  %v1489_v32 = vmul.f32 %v3922_v53, %v4817_v28  ;;  %v1419_v25 = vadd.f32 1e-16, %v1349_v55 }
 0x52d   : > { %3927 = vrcp.f32 %v1433_v63  ;;  %v1482_v48 = vmul.f32 %v3924_v58, %v4851_v43  ;;  %v1513_v62 = vpack.c.bf16 %v1481_v12, %v1481_v12 }
 0x52e   : > { %v1521_v61 = vpack.c.bf16 %v1489_v32, %v1489_v32 }
 0x52f   : > { %v1514_v27 = vpack.c.bf16 %v1482_v48, %v1482_v48  ;;  %v1630_v3 = vunpack.c.l.b16 %v1513_v62  ;;  %v1382_v48 = vpop.xlane.xlu2 %1381 }
 0x530   : > { %v1715_v42 = vunpack.c.l.b16 %v1521_v61  ;;  %v1430_v47 = vadd.f32 1e-16, %v1382_v48 }
 0x531   : > { %v1394_v29 = vpop.xlane.xlu0 %1393  ;;  %v1631_v28 = vunpack.c.l.b16 %v1514_v27 }
 0x532   : > { %v1434_v56 = vadd.f32 1e-16, %v1394_v29  ;;  %v3926_v49 = vpop.eup %3925 }
 0x533   : > { %v3928_v9 = vpop.eup %3927  ;;  %v1490_v35 = vmul.f32 %v3926_v49, %v4892_v20  ;;  %v1637_v10 = vpack.c.b16 %v1631_v28, %v1630_v3 }
 0x534   : > { %3929 = vrcp.f32 %v1434_v56  ;;  %v1497_v43 = vmul.f32 %v3928_v9, %v4831_v19  ;;  %v1379_v19 = vpop.xlane.xlu1 %1378  ;;  %v1409_v9 = vadd.f32 1e-16, %v1319_v54 }
 0x535   : > { %3931 = vrcp.f32 %v1427_v45  ;;  %v1522_v52 = vpack.c.bf16 %v1490_v35, %v1490_v35  ;;  %v1429_v62 = vadd.f32 1e-16, %v1379_v19 }
 0x536   : > { %3933 = vrcp.f32 %v1435_v2  ;;  %v1529_v58 = vpack.c.bf16 %v1497_v43, %v1497_v43 }
 0x537   : > { %v1716_v46 = vunpack.c.l.b16 %v1522_v52 }
 0x538   : > { %v1800_v32 = vunpack.c.l.b16 %v1529_v58 }
 0x539   : > { %v1376_v38 = vpop.xlane.xlu0 %1375  ;;  %v1722_v53 = vpack.c.b16 %v1716_v46, %v1715_v42 }
 0x53a   : > { %v3930_v63 = vpop.eup %3929  ;;  %v1428_v1 = vadd.f32 1e-16, %v1376_v38 }
 0x53b   : > { %v1498_v20 = vmul.f32 %v3930_v63, %v4906_v14  ;;  %v3932_v12 = vpop.eup %3931  ;;  %3270 = vmatmul.msk.bf16.gmra.mxu3 %vm209_vm4, %v1637_v10  ;;  %3274 = vmatmul.msk.bf16.gmra.mxu0 %vm209_vm4, %v1722_v53 }
 0x53c   : > { %3935 = vrcp.f32 %v1428_v1  ;;  %v1491_v45 = vmul.f32 %v3932_v12, %v4836_v39  ;;  %v3934_v56 = vpop.eup %3933  ;;  %v1358_v2 = vpop.xlane.xlu1 %1357 }
 0x53d   : > { %3937 = vrcp.f32 %v1436_v37  ;;  %v1530_v26 = vpack.c.bf16 %v1498_v20, %v1498_v20  ;;  %v1499_v39 = vmul.f32 %v3934_v56, %v4871_v33  ;;  %v1422_v1 = vadd.f32 1e-16, %v1358_v2 }
 0x53e   : > { %3939 = vrcp.f32 %v1419_v25  ;;  %v1523_v3 = vpack.c.bf16 %v1491_v45, %v1491_v45 }
 0x53f   : > { %v1801_v29 = vunpack.c.l.b16 %v1530_v26  ;;  %3941 = vrcp.f32 %v1430_v47  ;;  %v1531_v25 = vpack.c.bf16 %v1499_v39, %v1499_v39 }
 0x540   : > { %v1717_v28 = vunpack.c.l.b16 %v1523_v3 }
 0x541   : > { %v1352_v14 = vpop.xlane.xlu0 %1351  ;;  %v1807_v49 = vpack.c.b16 %v1801_v29, %v1800_v32 }
 0x542   : > { %v3936_v55 = vpop.eup %3935  ;;  %v1420_v27 = vadd.f32 1e-16, %v1352_v14 }
 0x543   : > { %v3938_v35 = vpop.eup %3937  ;;  %3278 = vmatmul.msk.bf16.gmra.mxu1 %vm209_vm4, %v1807_v49  ;;  %v1492_v61 = vmul.f32 %v3936_v55, %v4914_v36 }
 0x544   : > { %v3940_v52 = vpop.eup %3939  ;;  %3943 = vrcp.f32 %v1420_v27  ;;  %v1500_v46 = vmul.f32 %v3938_v35, %v4853_v18  ;;  %v1406_v26 = vpop.xlane.xlu1 %1405 }
 0x545   : > { %3945 = vrcp.f32 %v1429_v62  ;;  %v1524_v43 = vpack.c.bf16 %v1492_v61, %v1492_v61  ;;  %v1483_v54 = vmul.f32 %v3940_v52, %v4883_v21  ;;  %v3942_v37 = vpop.eup %3941  ;;  %v1802_v21 = vunpack.c.l.b16 %v1531_v25 }
 0x546   : > { %3947 = vrcp.f32 %v1409_v9  ;;  %v1532_v12 = vpack.c.bf16 %v1500_v46, %v1500_v46  ;;  %v1494_v19 = vmul.f32 %v3942_v37, %v4894_v40  ;;  %v1438_v49 = vadd.f32 1e-16, %v1406_v26 }
 0x547   : > { %v1718_v42 = vunpack.c.l.b16 %v1524_v43  ;;  %v1515_v58 = vpack.c.bf16 %v1483_v54, %v1483_v54 }
 0x548   : > { %v1803_v29 = vunpack.c.l.b16 %v1532_v12  ;;  %v1526_v27 = vpack.c.bf16 %v1494_v19, %v1494_v19 }
 0x549   : > { %v1322_v38 = vpop.xlane.xlu0 %1321  ;;  %v1723_v63 = vpack.c.b16 %v1718_v42, %v1717_v28  ;;  %v1632_v47 = vunpack.c.l.b16 %v1515_v58 }
 0x54a   : > { %v3944_v36 = vpop.eup %3943  ;;  %v1410_v10 = vadd.f32 1e-16, %v1322_v38  ;;  %v1808_v62 = vpack.c.b16 %v1803_v29, %v1802_v21  ;;  %v1720_v3 = vunpack.c.l.b16 %v1526_v27 }
 0x54b   : > { %v3946_v53 = vpop.eup %3945  ;;  %v1484_v20 = vmul.f32 %v3944_v36, %v4925_v57  ;;  %3275 = vmatmul.msk.bf16.gmra.mxu0 %vm209_vm4, %v1723_v63 }
 0x54c   : > { %v3948_v33 = vpop.eup %3947  ;;  %3949 = vrcp.f32 %v1410_v10  ;;  %v1493_v18 = vmul.f32 %v3946_v53, %v4890_v17 }
 0x54d   : > { %v1516_v48 = vpack.c.bf16 %v1484_v20, %v1484_v20  ;;  %3951 = vrcp.f32 %v1422_v1  ;;  %v1473_v45 = vmul.f32 %v3948_v33, %v4865_v59 }
 0x54e   : > { %v1525_v9 = vpack.c.bf16 %v1493_v18, %v1493_v18 }
 0x54f   : > { %v1633_v32 = vunpack.c.l.b16 %v1516_v48  ;;  %v1505_v40 = vpack.c.bf16 %v1473_v45, %v1473_v45  ;;  %v1331_v45 = vpop.xlane.xlu1 %1330 }
 0x550   : > { %v1719_v59 = vunpack.c.l.b16 %v1525_v9 }
 0x551   : > { %v1355_v57 = vpop.xlane.xlu0 %1354  ;;  %v1638_v56 = vpack.c.b16 %v1633_v32, %v1632_v47  ;;  %v1545_v52 = vunpack.c.l.b16 %v1505_v40 }
 0x552   : > { %v3950_v14 = vpop.eup %3949  ;;  %v1421_v55 = vadd.f32 1e-16, %v1355_v57  ;;  %v1724_v46 = vpack.c.b16 %v1720_v3, %v1719_v59 }
 0x553   : > { %3271 = vmatmul.msk.bf16.gmra.mxu3 %vm209_vm4, %v1638_v56  ;;  %3279 = vmatmul.msk.bf16.gmra.mxu1 %vm209_vm4, %v1808_v62  ;;  %v1474_v17 = vmul.f32 %v3950_v14, %v4933_v30  ;;  %v3952_v35 = vpop.eup %3951  ;;  %v1413_v14 = vadd.f32 1e-16, %v1331_v45 }
 0x554   : > { %3953 = vrcp.f32 %v1421_v55  ;;  %v1486_v43 = vmul.f32 %v3952_v35, %v4916_v41 }
 0x555   : > { %v1506_v61 = vpack.c.bf16 %v1474_v17, %v1474_v17  ;;  %3955 = vrcp.f32 %v1438_v49 }
 0x556   : > { %v1518_v37 = vpack.c.bf16 %v1486_v43, %v1486_v43 }
 0x557   : > { %v1546_v2 = vunpack.c.l.b16 %v1506_v61 }
 0x558   : > { %v1635_v36 = vunpack.c.l.b16 %v1518_v37 }
 0x559   : > { %v1403_v39 = vpop.xlane.xlu0 %1402  ;;  %v1552_v28 = vpack.c.b16 %v1546_v2, %v1545_v52 }
 0x55a   : > { %v3954_v42 = vpop.eup %3953  ;;  %v1437_v54 = vadd.f32 1e-16, %v1403_v39 }
 0x55b   : > { %3266 = vmatmul.msk.bf16.gmra.mxu2 %vm209_vm4, %v1552_v28  ;;  %v1485_v30 = vmul.f32 %v3954_v42, %v4942_v16  ;;  %v3956_v38 = vpop.eup %3955  ;;  %3276 = vmatmul.msk.bf16.gmra.mxu0 %vm209_vm4, %v1724_v46 }
 0x55c   : > { %3957 = vrcp.f32 %v1437_v54  ;;  %v1502_v1 = vmul.f32 %v3956_v38, %v4923_v0 }
 0x55d   : > { %v1517_v63 = vpack.c.bf16 %v1485_v30, %v1485_v30 }
 0x55e   : > { %v1534_v20 = vpack.c.bf16 %v1502_v1, %v1502_v1 }
 0x55f   : > { %v1634_v25 = vunpack.c.l.b16 %v1517_v63 }
 0x560   : > { %v1805_v16 = vunpack.c.l.b16 %v1534_v20  ;;  %v3490_v20 = vld [vmem:[%s5025_s17 + $0x18] sm:$0xff] }
 0x561   : > { %v1639_v41 = vpack.c.b16 %v1635_v36, %v1634_v25  ;;  %2042 = vmatpush.bf16.msra.mxu2 %v3490_v20  ;;  %3532 = vmatpush.bf16.msra.mxu3 %v3490_v20 }
 0x562   : > { %v3958_v10 = vpop.eup %3957 }
 0x563   : > { %3272 = vmatmul.msk.bf16.gmra.mxu3 %vm209_vm4, %v1639_v41  ;;  %v1501_v53 = vmul.f32 %v3958_v10, %v4948_v13 }
 0x565   : > { %v1533_v58 = vpack.c.bf16 %v1501_v53, %v1501_v53 }
 0x567   : > { %v1804_v12 = vunpack.c.l.b16 %v1533_v58  ;;  %v3489_v58 = vld [vmem:[%s5025_s17 + $0x10] sm:$0xff] }
 0x568   : > { %2043 = vmatpush.bf16.msra.mxu2 %v3489_v58  ;;  %3533 = vmatpush.bf16.msra.mxu3 %v3489_v58 }
 0x569   : > { %v1809_v33 = vpack.c.b16 %v1805_v16, %v1804_v12 }
 0x56b   : > { %3280 = vmatmul.msk.bf16.gmra.mxu1 %vm209_vm4, %v1809_v33 }
 0x57a   : > { %v1325_v21 = vpop.xlane.xlu2 %1324 }
 0x57b   : > { %v1411_v18 = vadd.f32 1e-16, %v1325_v21 }
 0x57d   : > { %3959 = vrcp.f32 %v1411_v18 }
 0x57f   : > { %v1855_v48 = vpop.f32.mrf.mxu1 }
 0x582   : > { %v1334_v13 = vpop.xlane.xlu2 %1333 }
 0x583   : > { %v3960_v32 = vpop.eup %3959  ;;  %v1414_v56 = vadd.f32 1e-16, %v1334_v13 }
 0x584   : > { %v1475_v57 = vmul.f32 %v3960_v32, %v4957_v23 }
 0x586   : > { %v1507_v55 = vpack.c.bf16 %v1475_v57, %v1475_v57 }
 0x587   : > { %v1857_v19 = vpop.f32.mrf.mxu1 }
 0x588   : > { %v3789_v26 = vpack.i.bf16 %v1857_v19, %v1855_v48  ;;  %v1547_v40 = vunpack.c.l.b16 %v1507_v55 }
 0x58a   : > { %3790 = vrot.lane.b32.xlu2 %v3789_v26, %s4135_s29 }
 0x58b   : > { %v1328_v0 = vpop.xlane.xlu0 %1327 }
 0x58c   : > { %v1412_v47 = vadd.f32 1e-16, %v1328_v0 }
 0x58e   : > { %3961 = vrcp.f32 %v1412_v47 }
 0x58f   : > { %3963 = vrcp.f32 %v1414_v56 }
 0x590   : > { %v1770_v29 = vpop.f32.mrf.mxu0  ;;  %3965 = vrcp.f32 %v1413_v14 }
 0x594   : > { %v3962_v62 = vpop.eup %3961 }
 0x595   : > { %v1476_v49 = vmul.f32 %v3962_v62, %v4970_v51  ;;  %v3964_v59 = vpop.eup %3963  ;;  %v3487_v62 = vld [vmem:[%s5025_s17] sm:$0xff] }
 0x596   : > { %v3966_v23 = vpop.eup %3965  ;;  %v1478_v3 = vmul.f32 %v3964_v59, %v4964_v24 }
 0x597   : > { %v1508_v9 = vpack.c.bf16 %v1476_v49, %v1476_v49  ;;  %v1477_v51 = vmul.f32 %v3966_v23, %v4938_v8 }
 0x598   : > { %v1772_v27 = vpop.f32.mrf.mxu0  ;;  %v1510_v52 = vpack.c.bf16 %v1478_v3, %v1478_v3 }
 0x599   : > { %v3784_v17 = vpack.i.bf16 %v1772_v27, %v1770_v29  ;;  %v1548_v35 = vunpack.c.l.b16 %v1508_v9  ;;  %v1509_v2 = vpack.c.bf16 %v1477_v51, %v1477_v51  ;;  %v3488_v29 = vld [vmem:[%s5025_s17 + $0x8] sm:$0xff] }
 0x59a   : > { %v1550_v43 = vunpack.c.l.b16 %v1510_v52  ;;  %2044 = vmatpush.bf16.msra.mxu2 %v3488_v29  ;;  %3534 = vmatpush.bf16.msra.mxu3 %v3488_v29 }
 0x59b   : > { %3785 = vrot.lane.b32.xlu1 %v3784_v17, %s4136_s30  ;;  %v1553_v61 = vpack.c.b16 %v1548_v35, %v1547_v40  ;;  %v1549_v39 = vunpack.c.l.b16 %v1509_v2 }
 0x59d   : > { %3267 = vmatmul.msk.bf16.gmra.mxu2 %vm209_vm4, %v1553_v61  ;;  %v1554_v28 = vpack.c.b16 %v1550_v43, %v1549_v39 }
 0x59e   : > { %2045 = vmatpush.bf16.msra.mxu2 %v3487_v62  ;;  %3535 = vmatpush.bf16.msra.mxu3 %v3487_v62 }
 0x5a6   : > { %v1600_v14 = vpop.f32.mrf.mxu2 }
 0x5ad   : > { %3268 = vmatmul.msk.bf16.gmra.mxu2 %vm209_vm4, %v1554_v28 }
 0x5ae   : > { %v1685_v42 = vpop.f32.mrf.mxu3  ;;  %v1602_v49 = vpop.f32.mrf.mxu2 }
 0x5b6   : > { %v1687_v54 = vpop.f32.mrf.mxu3 }
 0x5b7   : > { %v3779_v46 = vpack.i.bf16 %v1687_v54, %v1685_v42 }
 0x5b8   : > { %v1775_v30 = vpop.f32.mrf.mxu0 }
 0x5b9   : > { %3780 = vrot.lane.b32.xlu0 %v3779_v46, %s4137_s26 }
 0x5be   : > { %v1690_v37 = vpop.f32.mrf.mxu3 }
 0x5c0   : > { %v1860_v38 = vpop.f32.mrf.mxu1  ;;  %v1777_v24 = vpop.f32.mrf.mxu0 }
 0x5c1   : > { %v3799_v41 = vpack.i.bf16 %v1777_v24, %v1775_v30 }
 0x5c6   : > { %v1692_v63 = vpop.f32.mrf.mxu3 }
 0x5c7   : > { %v3794_v8 = vpack.i.bf16 %v1692_v63, %v1690_v37 }
 0x5c8   : > { %v1862_v25 = vpop.f32.mrf.mxu1  ;;  %v1780_v36 = vpop.f32.mrf.mxu0 }
 0x5c9   : > { %v3804_v1 = vpack.i.bf16 %v1862_v25, %v1860_v38  ;;  %3795 = vrot.lane.b32.xlu0 %v3794_v8, %s4137_s26 }
 0x5cb   : > { %3805 = vrot.lane.b32.xlu1 %v3804_v1, %s4135_s29 }
 0x5d0   : > { %v1865_v10 = vpop.f32.mrf.mxu1  ;;  %v1782_v53 = vpop.f32.mrf.mxu0 }
 0x5d1   : > { %3800 = vrot.lane.b32.xlu0 %v3799_v41, %s4136_s30  ;;  %v3814_v16 = vpack.i.bf16 %v1782_v53, %v1780_v36 }
 0x5d6   : > { %v1695_v12 = vpop.f32.mrf.mxu3 }
 0x5d8   : > { %v1867_v33 = vpop.f32.mrf.mxu1  ;;  %v1785_v48 = vpop.f32.mrf.mxu0 }
 0x5d9   : > { %v3819_v21 = vpack.i.bf16 %v1867_v33, %v1865_v10  ;;  %3815 = vrot.lane.b32.xlu0 %v3814_v16, %s4136_s30 }
 0x5db   : > { %3820 = vrot.lane.b32.xlu1 %v3819_v21, %s4135_s29 }
 0x5de   : > { %v1697_v18 = vpop.f32.mrf.mxu3  ;;  %v1605_v43 = vpop.f32.mrf.mxu2 }
 0x5df   : > { %v3809_v19 = vpack.i.bf16 %v1697_v18, %v1695_v12 }
 0x5e0   : > { %v1787_v26 = vpop.f32.mrf.mxu0 }
 0x5e1   : > { %3810 = vrot.lane.b32.xlu2 %v3809_v19, %s4137_s26  ;;  %v3829_v0 = vpack.i.bf16 %v1787_v26, %v1785_v48 }
 0x5e3   : > { %3830 = vrot.lane.b32.xlu0 %v3829_v0, %s4136_s30  ;;  %s4140_s30 = smov (%p301_p0), 128  }
 0x5e4   : > { %v3791_v9 = vpop.permute.xlu2 %3790 }
 0x5e5   : > { %v3793_v59 = vunpack.i.h.bf16 %v3791_v9  ;;  %v3792_v23 = vunpack.i.l.bf16 %v3791_v9 }
 0x5e6   : > { %v1700_v47 = vpop.f32.mrf.mxu3  ;;  %v1607_v54 = vpop.f32.mrf.mxu2 }
 0x5e8   : > { %v1870_v32 = vpop.f32.mrf.mxu1 }
 0x5ee   : > { %v1702_v13 = vpop.f32.mrf.mxu3 }
 0x5ef   : > { %v3824_v45 = vpack.i.bf16 %v1702_v13, %v1700_v47 }
 0x5f0   : > { %v1872_v57 = vpop.f32.mrf.mxu1 }
 0x5f1   : > { %v3834_v56 = vpack.i.bf16 %v1872_v57, %v1870_v32  ;;  %3825 = vrot.lane.b32.xlu2 %v3824_v45, %s4137_s26  ;;  %s4141_s26 = smov (%p301_p0), 8  }
 0x5f3   : > { %3835 = vrot.lane.b32.xlu1 %v3834_v56, %s4135_s29  ;;  %s5225_s29 = scalar_lea.vmem %s5481_s9, %s3500_s4 }
 0x60d   : > { %v3786_v55 = vpop.permute.xlu1 %3785 }
 0x60e   : > { %v3788_v35 = vunpack.i.h.bf16 %v3786_v55  ;;  %v3787_v61 = vunpack.i.l.bf16 %v3786_v55 }
 0x620   : > { %v1610_v38 = vpop.f32.mrf.mxu2 }
 0x628   : > { %v1612_v19 = vpop.f32.mrf.mxu2 }
 0x62b   : > { %v3781_v27 = vpop.permute.xlu0 %3780 }
 0x62c   : > { %v3783_v17 = vunpack.i.h.bf16 %v3781_v27  ;;  %v3782_v40 = vunpack.i.l.bf16 %v3781_v27 }
 0x62e   : > { %v1972_v3 = vsel %vm758_vm3, %v1602_v49, %v3783_v17  ;;  %v1971_v51 = vsel %vm758_vm3, %v1600_v14, %v3782_v40 }
 0x62f   : > { %v1980_v52 = vsel %vm1979_vm9, %v1971_v51, %v3787_v61  ;;  %v1981_v2 = vsel %vm1979_vm9, %v1972_v3, %v3788_v35 }
 0x630   : > { %v1989_v39 = vsel %vm1988_vm10, %v1980_v52, %v3792_v23  ;;  %v1990_v28 = vsel %vm1988_vm10, %v1981_v2, %v3793_v59  ;;  %v1615_v55 = vpop.f32.mrf.mxu2 }
 0x631   : > { %v1997_v42 = vpack.c.bf16 %v1990_v28, %v1989_v39 }
 0x633   : > { %3297 = vmatmul.msk.bf16.vlgmr.msra.gmra.mxu2 %vm209_vm4, %v1997_v42 }
 0x638   : > { %v1617_v59 = vpop.f32.mrf.mxu2 }
 0x63b   : > { %v3796_v46 = vpop.permute.xlu0 %3795  ;;  %v3811_v53 = vpop.permute.xlu2 %3810 }
 0x63c   : > { %v3798_v30 = vunpack.i.h.bf16 %v3796_v46  ;;  %v3797_v37 = vunpack.i.l.bf16 %v3796_v46  ;;  %v3813_v48 = vunpack.i.h.bf16 %v3811_v53  ;;  %v3812_v21 = vunpack.i.l.bf16 %v3811_v53  ;;  %v5070_v46 = vld [vmem:[%s383_s22] sm:$0xff] }
 0x63d   : > { %v3806_v24 = vpop.permute.xlu1 %3805 }
 0x63e   : > { %v1974_v36 = vsel %vm758_vm3, %v1607_v54, %v3798_v30  ;;  %v1973_v1 = vsel %vm758_vm3, %v1605_v43, %v3797_v37  ;;  %v3808_v41 = vunpack.i.h.bf16 %v3806_v24  ;;  %v3807_v10 = vunpack.i.l.bf16 %v3806_v24 }
 0x63f   : > { %v1976_v32 = vsel %vm758_vm3, %v1612_v19, %v3813_v48  ;;  %v1975_v13 = vsel %vm758_vm3, %v1610_v38, %v3812_v21  ;;  %v2001_v30 = vperm.slane %v5070_v46, 0 }
 0x643   : > { %v3801_v63 = vpop.permute.xlu0 %3800 }
 0x644   : > { %v3803_v8 = vunpack.i.h.bf16 %v3801_v63  ;;  %v3802_v25 = vunpack.i.l.bf16 %v3801_v63 }
 0x646   : > { %v1982_v20 = vsel %vm1979_vm9, %v1973_v1, %v3802_v25  ;;  %v1983_v58 = vsel %vm1979_vm9, %v1974_v36, %v3803_v8 }
 0x647   : > { %v1991_v12 = vsel %vm1988_vm10, %v1982_v20, %v3807_v10  ;;  %v1992_v16 = vsel %vm1988_vm10, %v1983_v58, %v3808_v41 }
 0x648   : > { %v1998_v33 = vpack.c.bf16 %v1992_v16, %v1991_v12 }
 0x64a   : > { %3298 = vmatmul.msk.bf16.gmra.mxu2 %vm209_vm4, %v1998_v33 }
 0x64b   : > { %v3816_v18 = vpop.permute.xlu0 %3815  ;;  %v3826_v9 = vpop.permute.xlu2 %3825 }
 0x64c   : > { %v3818_v26 = vunpack.i.h.bf16 %v3816_v18  ;;  %v3817_v0 = vunpack.i.l.bf16 %v3816_v18  ;;  %v3828_v17 = vunpack.i.h.bf16 %v3826_v9  ;;  %v3827_v40 = vunpack.i.l.bf16 %v3826_v9 }
 0x64d   : > { %v3821_v47 = vpop.permute.xlu1 %3820 }
 0x64e   : > { %v3823_v29 = vunpack.i.h.bf16 %v3821_v47  ;;  %v3822_v45 = vunpack.i.l.bf16 %v3821_v47  ;;  %v1985_v57 = vsel %vm1979_vm9, %v1976_v32, %v3818_v26  ;;  %v1984_v56 = vsel %vm1979_vm9, %v1975_v13, %v3817_v0 }
 0x64f   : > { %v1978_v3 = vsel %vm758_vm3, %v1617_v59, %v3828_v17  ;;  %v1977_v51 = vsel %vm758_vm3, %v1615_v55, %v3827_v40 }
 0x650   : > { %v1993_v62 = vsel %vm1988_vm10, %v1984_v56, %v3822_v45  ;;  %v1994_v14 = vsel %vm1988_vm10, %v1985_v57, %v3823_v29 }
 0x651   : > { %v1999_v49 = vpack.c.bf16 %v1994_v14, %v1993_v62 }
 0x653   : > { %3299 = vmatmul.msk.bf16.vlgmr.msra.gmra.mxu3 %vm209_vm4, %v1999_v49 }
 0x655   : > { %v3831_v27 = vpop.permute.xlu0 %3830 }
 0x656   : > { %v3833_v35 = vunpack.i.h.bf16 %v3831_v27  ;;  %v3832_v61 = vunpack.i.l.bf16 %v3831_v27 }
 0x658   : > { %v1986_v43 = vsel %vm1979_vm9, %v1977_v51, %v3832_v61  ;;  %v1987_v39 = vsel %vm1979_vm9, %v1978_v3, %v3833_v35 }
 0x665   : > { %v3836_v23 = vpop.permute.xlu1 %3835 }
 0x666   : > { %v3838_v52 = vunpack.i.h.bf16 %v3836_v23  ;;  %v3837_v2 = vunpack.i.l.bf16 %v3836_v23 }
 0x668   : > { %v1995_v28 = vsel %vm1988_vm10, %v1986_v43, %v3837_v2  ;;  %v1996_v42 = vsel %vm1988_vm10, %v1987_v39, %v3838_v52 }
 0x669   : > { %v2000_v54 = vpack.c.bf16 %v1996_v42, %v1995_v28 }
 0x66b   : > { %3300 = vmatmul.msk.bf16.gmra.mxu3 %vm209_vm4, %v2000_v54 }
 0x6b6   : > { %v2047_v37 = vpop.f32.mrf.mxu2 }
 0x6b7   : > { %v2048_v38 = vadd.f32 %v2047_v37, %v2001_v30 }
 0x6b9   : > { %v2067_v24 = vadd.f32 %v4125_v44, %v2048_v38 }
 0x6bb   : > { %v2075_v63 = vsel %vm209_vm4, %v2067_v24, 0.0 }
 0x6bc   : > { %2076 = vadd.xlane.f32.xlu2 %v2075_v63 }
 0x6be   : > { %v2049_v8 = vpop.f32.mrf.mxu2 }
 0x6bf   : > { %v2050_v25 = vadd.f32 %v2049_v8, %v2001_v30 }
 0x6c1   : > { %v2068_v36 = vadd.f32 %v4121_v50, %v2050_v25 }
 0x6c3   : > { %v2078_v1 = vsel %vm209_vm4, %v2068_v36, 0.0 }
 0x6c4   : > { %2079 = vadd.xlane.f32.xlu0 %v2078_v1 }
 0x6cd   : > { %v2052_v41 = vpop.f32.mrf.mxu2 }
 0x6ce   : > { %v2053_v10 = vadd.f32 %v2052_v41, %v2001_v30 }
 0x6d0   : > { %v2069_v53 = vadd.f32 %v4117_v60, %v2053_v10 }
 0x6d2   : > { %v2081_v20 = vsel %vm209_vm4, %v2069_v53, 0.0 }
 0x6d3   : > { %2082 = vadd.xlane.f32.xlu1 %v2081_v20 }
 0x6d5   : > { %v2054_v58 = vpop.f32.mrf.mxu2 }
 0x6d6   : > { %v2057_v12 = vpop.f32.mrf.mxu3  ;;  %v2055_v44 = vadd.f32 %v2054_v58, %v2001_v30 }
 0x6d7   : > { %v2058_v16 = vadd.f32 %v2057_v12, %v2001_v30 }
 0x6d8   : > { %v2070_v33 = vadd.f32 %v4113_v11, %v2055_v44 }
 0x6d9   : > { %v2071_v48 = vadd.f32 %v4109_v15, %v2058_v16  ;;  %v4138_v15 = vmov 64.0   ;;  %v3327_v16 = vld [vmem:[%s5141_s25 + $0x30] sm:$0xf] }
 0x6da   : > { %v2084_v50 = vsel %vm209_vm4, %v2070_v33, 0.0  ;;  %3967 = vrcp.f32 %v4138_v15  ;;  %v3495_v15 = vld [vmem:[%s5141_s25 + $0x14] sm:$0xf0] }
 0x6db   : > { %v2087_v21 = vsel %vm209_vm4, %v2071_v48, 0.0  ;;  %2085 = vadd.xlane.f32.xlu2 %v2084_v50 }
 0x6dc   : > { %2088 = vadd.xlane.f32.xlu0 %v2087_v21  ;;  %v3329_v21 = vld [vmem:[%s5141_s25 + $0x38] sm:$0xf0] }
 0x6de   : > { %v2059_v18 = vpop.f32.mrf.mxu3 }
 0x6df   : > { %v2060_v19 = vadd.f32 %v2059_v18, %v2001_v30 }
 0x6e0   : > { %v3968_v13 = vpop.eup %3967 }
 0x6e1   : > { %v2072_v60 = vadd.f32 %v4105_v22, %v2060_v19  ;;  %v2100_v29 = vmul.f32 64.0, %v3968_v13  ;;  %vm2104_vm3 = vweird.f32 %v3968_v13  ;;  %v3319_v19 = vld [vmem:[%s5141_s25 + $0x20] sm:$0xf] }
 0x6e3   : > { %v2090_v26 = vsel %vm209_vm4, %v2072_v60, 0.0  ;;  %v2101_v45 = vsub.f32 1.0, %v2100_v29 }
 0x6e4   : > { %2091 = vadd.xlane.f32.xlu2 %v2090_v26  ;;  %v3496_v26 = vld [vmem:[%s5141_s25 + $0x24] sm:$0xf] }
 0x6e5   : > { %v2102_v57 = vmul.f32 %v3968_v13, %v2101_v45  ;;  %v3313_v45 = vld [vmem:[%s5141_s25 + $0x18] sm:$0xf0] }
 0x6e7   : > { %v2103_v56 = vadd.f32 %v3968_v13, %v2102_v57 }
 0x6e9   : > { %v5087_v62 = vsel %vm2104_vm3, %v3968_v13, %v2103_v56  ;;  %v3494_v13 = vld [vmem:[%s5141_s25 + $0x14] sm:$0xf] }
 0x6ea   : > { %v3316_v57 = vor.u32 %v3494_v13, %v3313_v45 }
 0x6ee   : > { %v2062_v0 = vpop.f32.mrf.mxu3 }
 0x6ef   : > { %v2063_v47 = vadd.f32 %v2062_v0, %v2001_v30 }
 0x6f1   : > { %v2073_v32 = vadd.f32 %v4101_v31, %v2063_v47  ;;  %v3321_v47 = vld [vmem:[%s5141_s25 + $0x28] sm:$0xf0] }
 0x6f3   : > { %v2093_v11 = vsel %vm209_vm4, %v2073_v32, 0.0 }
 0x6f4   : > { %2094 = vadd.xlane.f32.xlu2 %v2093_v11  ;;  %v3311_v11 = vld [vmem:[%s5141_s25 + $0x10] sm:$0xf] }
 0x6f5   : > { %v3312_v29 = vor.u32 %v3495_v15, %v3311_v11 }
 0x6f6   : > { %v2064_v55 = vpop.f32.mrf.mxu3 }
 0x6f7   : > { %v2065_v9 = vadd.f32 %v2064_v55, %v2001_v30  ;;  %v3493_v55 = vld [vmem:[%s5141_s25 + $0x4] sm:$0xf0] }
 0x6f9   : > { %v5099_v61 = vadd.f32 %v4097_v34, %v2065_v9 }
 0x6fb   : > { %v2096_v3 = vsel %vm209_vm4, %v5099_v61, 0.0 }
 0x72f   : > { %v2077_v22 = vpop.xlane.xlu2 %2076 }
 0x730   : > { %v2106_v14 = vmul.f32 %v5087_v62, %v2077_v22 }
 0x732   : > { %v5090_v49 = vsub.f32 %v2067_v24, %v2106_v14  ;;  %v3303_v14 = vld [vmem:[%s5141_s25] sm:$0xf] }
 0x733   : > { %v3304_v9 = vor.u32 %v3493_v55, %v3303_v14 }
 0x734   : > { %v2122_v31 = vmul.f32 %v5090_v49, %v5090_v49 }
 0x736   : > { %v2130_v27 = vsel %vm209_vm4, %v2122_v31, 0.0  ;;  %v3492_v31 = vld [vmem:[%s5141_s25 + $0x4] sm:$0xf] }
 0x737   : > { %2131 = vadd.xlane.f32.xlu1 %v2130_v27  ;;  %v2080_v17 = vpop.xlane.xlu0 %2079  ;;  %v3305_v27 = vld [vmem:[%s5141_s25 + $0x8] sm:$0xf0] }
 0x738   : > { %v2107_v40 = vmul.f32 %v5087_v62, %v2080_v17 }
 0x73a   : > { %v5096_v35 = vsub.f32 %v2068_v36, %v2107_v40  ;;  %v3308_v40 = vor.u32 %v3492_v31, %v3305_v27 }
 0x73c   : > { %v2123_v59 = vmul.f32 %v5096_v35, %v5096_v35 }
 0x73e   : > { %v2133_v23 = vsel %vm209_vm4, %v2123_v59, 0.0 }
 0x73f   : > { %2134 = vadd.xlane.f32.xlu0 %v2133_v23  ;;  %2097 = vadd.xlane.f32.xlu1 %v2096_v3 }
 0x746   : > { %v2083_v51 = vpop.xlane.xlu1 %2082 }
 0x747   : > { %v2108_v52 = vmul.f32 %v5087_v62, %v2083_v51 }
 0x749   : > { %v5107_v2 = vsub.f32 %v2069_v53, %v2108_v52 }
 0x74b   : > { %v2124_v43 = vmul.f32 %v5107_v2, %v5107_v2 }
 0x74d   : > { %v2136_v34 = vsel %vm209_vm4, %v2124_v43, 0.0 }
 0x74e   : > { %v2086_v39 = vpop.xlane.xlu2 %2085  ;;  %2137 = vadd.xlane.f32.xlu0 %v2136_v34 }
 0x74f   : > { %v2089_v28 = vpop.xlane.xlu0 %2088  ;;  %v2109_v42 = vmul.f32 %v5087_v62, %v2086_v39 }
 0x750   : > { %v2110_v54 = vmul.f32 %v5087_v62, %v2089_v28 }
 0x751   : > { %v5114_v30 = vsub.f32 %v2070_v33, %v2109_v42  ;;  %v3499_v33 = vld [vmem:[%s5141_s25 + $0x34] sm:$0xf0] }
 0x752   : > { %v5116_v37 = vsub.f32 %v2071_v48, %v2110_v54  ;;  %v3498_v48 = vld [vmem:[%s5141_s25 + $0x34] sm:$0xf]  ;;  %v3328_v50 = vor.u32 %v3499_v33, %v3327_v16  ;;  %v5171_v16 = vperm.slane %v5070_v46, 1 }
 0x753   : > { %v2125_v38 = vmul.f32 %v5114_v30, %v5114_v30  ;;  %v3332_v18 = vor.u32 %v3498_v48, %v3329_v21 }
 0x754   : > { %v2126_v24 = vmul.f32 %v5116_v37, %v5116_v37  ;;  %2341 = vmatpush.bf16.msrb.mxu3 %v3328_v50 }
 0x755   : > { %v2139_v63 = vsel %vm209_vm4, %v2125_v38, 0.0  ;;  %2370 = vmatpush.bf16.msrb.mxu0 %v3332_v18 }
 0x756   : > { %v2142_v8 = vsel %vm209_vm4, %v2126_v24, 0.0  ;;  %2140 = vadd.xlane.f32.xlu2 %v2139_v63 }
 0x757   : > { %v2092_v25 = vpop.xlane.xlu2 %2091  ;;  %2143 = vadd.xlane.f32.xlu1 %v2142_v8 }
 0x758   : > { %v2111_v36 = vmul.f32 %v5087_v62, %v2092_v25 }
 0x75a   : > { %v5125_v1 = vsub.f32 %v2072_v60, %v2111_v36  ;;  %v3497_v60 = vld [vmem:[%s5141_s25 + $0x24] sm:$0xf0] }
 0x75b   : > { %v3320_v0 = vor.u32 %v3497_v60, %v3319_v19  ;;  %v5176_v60 = vperm.slane %v5070_v46, 2 }
 0x75c   : > { %v2127_v41 = vmul.f32 %v5125_v1, %v5125_v1 }
 0x75d   : > { %2342 = vmatpush.bf16.msrb.mxu3 %v3320_v0 }
 0x75e   : > { %v2145_v10 = vsel %vm209_vm4, %v2127_v41, 0.0 }
 0x75f   : > { %2146 = vadd.xlane.f32.xlu0 %v2145_v10 }
 0x761   : > { %2343 = vmatpush.bf16.msrb.mxu3 %v3312_v29 }
 0x765   : > { %2344 = vmatpush.bf16.msrb.mxu3 %v3304_v9 }
 0x767   : > { %v2095_v53 = vpop.xlane.xlu2 %2094 }
 0x768   : > { %v2112_v20 = vmul.f32 %v5087_v62, %v2095_v53 }
 0x76a   : > { %v5131_v58 = vsub.f32 %v2073_v32, %v2112_v20  ;;  %v3324_v32 = vor.u32 %v3496_v26, %v3321_v47 }
 0x76c   : > { %v2128_v12 = vmul.f32 %v5131_v58, %v5131_v58  ;;  %2371 = vmatpush.bf16.msrb.mxu0 %v3324_v32 }
 0x76e   : > { %v2148_v44 = vsel %vm209_vm4, %v2128_v12, 0.0 }
 0x76f   : > { %2149 = vadd.xlane.f32.xlu2 %v2148_v44 }
 0x770   : > { %2372 = vmatpush.bf16.msrb.mxu0 %v3316_v57 }
 0x774   : > { %2373 = vmatpush.bf16.msrb.mxu0 %v3308_v40 }
 0x7aa   : > { %v2132_v56 = vpop.xlane.xlu1 %2131 }
 0x7ab   : > { %v2154_v22 = vmul.f32 %v2132_v56, %v5087_v62 }
 0x7ad   : > { %v2162_v17 = vadd.f32 1e-05, %v2154_v22 }
 0x7af   : > { %3969 = vrsqrt.f32 %v2162_v17  ;;  %vm2176_vm12 = vweird.f32 %v2162_v17 }
 0x7b2   : > { %v2135_v59 = vpop.xlane.xlu0 %2134  ;;  %v2098_v23 = vpop.xlane.xlu1 %2097 }
 0x7b3   : > { %v2155_v3 = vmul.f32 %v2135_v59, %v5087_v62  ;;  %v2113_v51 = vmul.f32 %v5087_v62, %v2098_v23 }
 0x7b5   : > { %v3970_v52 = vpop.eup %3969  ;;  %v2163_v43 = vadd.f32 1e-05, %v2155_v3  ;;  %v5163_v34 = vsub.f32 %v5099_v61, %v2113_v51 }
 0x7b6   : > { %v2171_v39 = vmul.f32 %v3970_v52, %v2162_v17  ;;  %vm2177_vm11 = vweird.f32 %v3970_v52 }
 0x7b7   : > { %3971 = vrsqrt.f32 %v2163_v43  ;;  %v2129_v28 = vmul.f32 %v5163_v34, %v5163_v34  ;;  %vm2178_vm13 = vmor %vm2176_vm12, %vm2177_vm11  ;;  %vm2186_vm15 = vweird.f32 %v2163_v43 }
 0x7b8   : > { %v2172_v42 = vmul.f32 %v3970_v52, %v2171_v39 }
 0x7b9   : > { %v2151_v54 = vsel %vm209_vm4, %v2129_v28, 0.0 }
 0x7ba   : > { %v2173_v38 = vmul.f32 0.5, %v2172_v42  ;;  %2152 = vadd.xlane.f32.xlu1 %v2151_v54 }
 0x7bc   : > { %v2174_v24 = vsub.f32 1.5, %v2173_v38 }
 0x7bd   : > { %v3972_v63 = vpop.eup %3971 }
 0x7be   : > { %v2175_v8 = vmul.f32 %v3970_v52, %v2174_v24  ;;  %v2181_v25 = vmul.f32 %v3972_v63, %v2163_v43  ;;  %vm2187_vm14 = vweird.f32 %v3972_v63 }
 0x7bf   : > { %vm2188_vm0 = vmor %vm2186_vm15, %vm2187_vm14 }
 0x7c0   : > { %v2182_v36 = vmul.f32 %v3972_v63, %v2181_v25  ;;  %v2179_v41 = vsel %vm2178_vm13, %v3970_v52, %v2175_v8 }
 0x7c1   : > { %v2138_v61 = vpop.xlane.xlu0 %2137  ;;  %v2250_v44 = vmul.f32 %v2179_v41, %v5090_v49 }
 0x7c2   : > { %v2183_v10 = vmul.f32 0.5, %v2182_v36  ;;  %v2156_v53 = vmul.f32 %v2138_v61, %v5087_v62 }
 0x7c3   : > { %v2259_v19 = vmul.f32 %v5171_v16, %v2250_v44 }
 0x7c4   : > { %v2184_v20 = vsub.f32 1.5, %v2183_v10  ;;  %v2164_v12 = vadd.f32 1e-05, %v2156_v53 }
 0x7c5   : > { %v5182_v13 = vadd.f32 %v5176_v60, %v2259_v19 }
 0x7c6   : > { %v2185_v33 = vmul.f32 %v3972_v63, %v2184_v20  ;;  %3973 = vrsqrt.f32 %v2164_v12  ;;  %vm2196_vm2 = vweird.f32 %v2164_v12 }
 0x7c8   : > { %v2189_v48 = vsel %vm2188_vm0, %v3972_v63, %v2185_v33 }
 0x7c9   : > { %v2251_v50 = vmul.f32 %v2189_v48, %v5096_v35  ;;  %v2141_v21 = vpop.xlane.xlu2 %2140 }
 0x7ca   : > { %v2144_v18 = vpop.xlane.xlu1 %2143  ;;  %v2157_v26 = vmul.f32 %v2141_v21, %v5087_v62 }
 0x7cb   : > { %v2158_v49 = vmul.f32 %v2144_v18, %v5087_v62  ;;  %v2260_v0 = vmul.f32 %v5171_v16, %v2251_v50 }
 0x7cc   : > { %v3974_v47 = vpop.eup %3973  ;;  %v2165_v32 = vadd.f32 1e-05, %v2157_v26 }
 0x7cd   : > { %v2166_v11 = vadd.f32 1e-05, %v2158_v49  ;;  %v2191_v15 = vmul.f32 %v3974_v47, %v2164_v12  ;;  %v5185_v35 = vadd.f32 %v5176_v60, %v2260_v0  ;;  %vm2197_vm1 = vweird.f32 %v3974_v47  ;;  %v3516_v0 = vld [vmem:[%s5225_s29 + $0x78] sm:$0xff] }
 0x7ce   : > { %3975 = vrsqrt.f32 %v2165_v32  ;;  %vm2198_vm5 = vmor %vm2196_vm2, %vm2197_vm1  ;;  %vm2206_vm7 = vweird.f32 %v2165_v32  ;;  %2545 = vmatpush.bf16.msrb.mxu2 %v3516_v0 }
 0x7cf   : > { %v2192_v29 = vmul.f32 %v3974_v47, %v2191_v15  ;;  %3977 = vrsqrt.f32 %v2166_v11  ;;  %v2276_v45 = vpack.c.bf16 %v5185_v35, %v5182_v13  ;;  %vm2216_vm13 = vweird.f32 %v2166_v11  ;;  %v3507_v15 = vld [vmem:[%s5225_s29 + $0x30] sm:$0xff] }
 0x7d1   : > { %v2193_v57 = vmul.f32 0.5, %v2192_v29  ;;  %3333 = vmatmul.msk.bf16.vlgmr.msrb.gmra.mxu3 %vm209_vm4, %v2276_v45  ;;  %3337 = vmatmul.msk.bf16.vlgmr.msrb.gmra.mxu0 %vm209_vm4, %v2276_v45  ;;  %v3513_v45 = vld [vmem:[%s5225_s29 + $0x60] sm:$0xff] }
 0x7d2   : > { %v2147_v56 = vpop.xlane.xlu0 %2146 }
 0x7d3   : > { %v2159_v22 = vmul.f32 %v2147_v56, %v5087_v62  ;;  %v2194_v14 = vsub.f32 1.5, %v2193_v57  ;;  %v3506_v56 = vld [vmem:[%s5225_s29 + $0x28] sm:$0xff] }
 0x7d4   : > { %v3976_v55 = vpop.eup %3975 }
 0x7d5   : > { %v2167_v31 = vadd.f32 1e-05, %v2159_v22  ;;  %v3978_v9 = vpop.eup %3977  ;;  %v2195_v27 = vmul.f32 %v3974_v47, %v2194_v14  ;;  %v2201_v17 = vmul.f32 %v3976_v55, %v2165_v32  ;;  %vm2207_vm6 = vweird.f32 %v3976_v55  ;;  %v3508_v32 = vld [vmem:[%s5225_s29 + $0x38] sm:$0xff] }
 0x7d6   : > { %v2211_v40 = vmul.f32 %v3978_v9, %v2166_v11  ;;  %vm2208_vm8 = vmor %vm2206_vm7, %vm2207_vm6  ;;  %vm2217_vm3 = vweird.f32 %v3978_v9  ;;  %2516 = vmatpush.bf16.msrb.mxu1 %v3508_v32  ;;  %v3514_v11 = vld [vmem:[%s5225_s29 + $0x68] sm:$0xff]  ;;  %v3512_v22 = vld [vmem:[%s5225_s29 + $0x58] sm:$0xff] }
 0x7d7   : > { %3979 = vrsqrt.f32 %v2167_v31  ;;  %v2202_v59 = vmul.f32 %v3976_v55, %v2201_v17  ;;  %v2199_v51 = vsel %vm2198_vm5, %v3974_v47, %v2195_v27  ;;  %vm2226_vm11 = vweird.f32 %v2167_v31  ;;  %vm2218_vm14 = vmor %vm2216_vm13, %vm2217_vm3  ;;  %v3515_v47 = vld [vmem:[%s5225_s29 + $0x70] sm:$0xff] }
 0x7d8   : > { %v2212_v3 = vmul.f32 %v3978_v9, %v2211_v40  ;;  %v2252_v39 = vmul.f32 %v2199_v51, %v5107_v2  ;;  %2546 = vmatpush.bf16.msrb.mxu2 %v3515_v47  ;;  %v3511_v17 = vld [vmem:[%s5225_s29 + $0x50] sm:$0xff] }
 0x7d9   : > { %v2203_v23 = vmul.f32 0.5, %v2202_v59  ;;  %v3504_v59 = vld [vmem:[%s5225_s29 + $0x18] sm:$0xff]  ;;  %v3503_v51 = vld [vmem:[%s5225_s29 + $0x10] sm:$0xff] }
 0x7da   : > { %v2213_v42 = vmul.f32 0.5, %v2212_v3  ;;  %v2261_v8 = vmul.f32 %v5171_v16, %v2252_v39  ;;  %2517 = vmatpush.bf16.msrb.mxu1 %v3507_v15 }
 0x7db   : > { %v2204_v52 = vsub.f32 1.5, %v2203_v23  ;;  %v3510_v23 = vld [vmem:[%s5225_s29 + $0x48] sm:$0xff] }
 0x7dc   : > { %v2214_v25 = vsub.f32 1.5, %v2213_v42  ;;  %v5197_v10 = vadd.f32 %v5176_v60, %v2261_v8  ;;  %2547 = vmatpush.bf16.msrb.mxu2 %v3514_v11  ;;  %v3502_v42 = vld [vmem:[%s5225_s29 + $0x8] sm:$0xff] }
 0x7dd   : > { %v3980_v43 = vpop.eup %3979  ;;  %v2205_v28 = vmul.f32 %v3976_v55, %v2204_v52 }
 0x7de   : > { %v2221_v54 = vmul.f32 %v3980_v43, %v2167_v31  ;;  %vm2227_vm10 = vweird.f32 %v3980_v43  ;;  %v2215_v53 = vmul.f32 %v3978_v9, %v2214_v25  ;;  %2518 = vmatpush.bf16.msrb.mxu1 %v3506_v56 }
 0x7df   : > { %v2209_v24 = vsel %vm2208_vm8, %v3976_v55, %v2205_v28  ;;  %vm2228_vm12 = vmor %vm2226_vm11, %vm2227_vm10 }
 0x7e0   : > { %v2222_v38 = vmul.f32 %v3980_v43, %v2221_v54  ;;  %v2253_v63 = vmul.f32 %v2209_v24, %v5114_v30  ;;  %v2219_v44 = vsel %vm2218_vm14, %v3978_v9, %v2215_v53  ;;  %2548 = vmatpush.bf16.msrb.mxu2 %v3513_v45  ;;  %v3505_v9 = vld [vmem:[%s5225_s29 + $0x20] sm:$0xff] }
 0x7e1   : > { %v2254_v48 = vmul.f32 %v2219_v44, %v5116_v37 }
 0x7e2   : > { %v2223_v36 = vmul.f32 0.5, %v2222_v38  ;;  %v2262_v61 = vmul.f32 %v5171_v16, %v2253_v63  ;;  %2519 = vmatpush.bf16.msrb.mxu1 %v3505_v9  ;;  %v3501_v63 = vld [vmem:[%s5225_s29] sm:$0xff] }
 0x7e3   : > { %v2263_v21 = vmul.f32 %v5171_v16, %v2254_v48 }
 0x7e4   : > { %v2224_v41 = vsub.f32 1.5, %v2223_v36  ;;  %v5200_v2 = vadd.f32 %v5176_v60, %v2262_v61  ;;  %2549 = vmatpush.bf16.msrb.mxu2 %v3512_v22 }
 0x7e5   : > { %v5214_v19 = vadd.f32 %v5176_v60, %v2263_v21 }
 0x7e6   : > { %v2225_v20 = vmul.f32 %v3980_v43, %v2224_v41  ;;  %v2277_v30 = vpack.c.bf16 %v5200_v2, %v5197_v10  ;;  %2520 = vmatpush.bf16.msrb.mxu1 %v3504_v59 }
 0x7e8   : > { %v2229_v12 = vsel %vm2228_vm12, %v3980_v43, %v2225_v20  ;;  %3334 = vmatmul.msk.bf16.gmra.mxu3 %vm209_vm4, %v2277_v30  ;;  %3338 = vmatmul.msk.bf16.gmra.mxu0 %vm209_vm4, %v2277_v30  ;;  %v3509_v43 = vld [vmem:[%s5225_s29 + $0x40] sm:$0xff]  ;;  %s3106_s29 = sshll.u32 (%p301_p0), %s5488_s16, 4  ;;  %s3107_s29 = int_to_ptr.hbm [resolvable:$true] %s3106_s29 }
 0x7e9   : > { %v2255_v33 = vmul.f32 %v2229_v12, %v5125_v1  ;;  %v2150_v1 = vpop.xlane.xlu2 %2149  ;;  %2550 = vmatpush.bf16.msrb.mxu2 %v3511_v17 }
 0x7ea   : > { %v2160_v37 = vmul.f32 %v2150_v1, %v5087_v62  ;;  %2521 = vmatpush.bf16.msrb.mxu1 %v3503_v51 }
 0x7eb   : > { %v2264_v50 = vmul.f32 %v5171_v16, %v2255_v33 }
 0x7ec   : > { %v2168_v49 = vadd.f32 1e-05, %v2160_v37 }
 0x7ed   : > { %v5211_v18 = vadd.f32 %v5176_v60, %v2264_v50  ;;  %2551 = vmatpush.bf16.msrb.mxu2 %v3510_v23 }
 0x7ee   : > { %3981 = vrsqrt.f32 %v2168_v49  ;;  %vm2236_vm0 = vweird.f32 %v2168_v49  ;;  %2522 = vmatpush.bf16.msrb.mxu1 %v3502_v42 }
 0x7ef   : > { %v2278_v26 = vpack.c.bf16 %v5211_v18, %v5214_v19 }
 0x7f1   : > { %2552 = vmatpush.bf16.msrb.mxu2 %v3509_v43 }
 0x7f2   : > { %2523 = vmatpush.bf16.msrb.mxu1 %v3501_v63 }
 0x7f4   : > { %v3982_v29 = vpop.eup %3981 }
 0x7f5   : > { %v2231_v57 = vmul.f32 %v3982_v29, %v2168_v49  ;;  %vm2237_vm15 = vweird.f32 %v3982_v29 }
 0x7f6   : > { %vm2238_vm1 = vmor %vm2236_vm0, %vm2237_vm15 }
 0x7f7   : > { %v2232_v14 = vmul.f32 %v3982_v29, %v2231_v57 }
 0x7f8   : > { %3335 = vmatmul.msk.bf16.gmra.mxu3 %vm209_vm4, %v2278_v26  ;;  %3339 = vmatmul.msk.bf16.gmra.mxu0 %vm209_vm4, %v2278_v26 }
 0x7f9   : > { %v2233_v40 = vmul.f32 0.5, %v2232_v14 }
 0x7fb   : > { %v2234_v3 = vsub.f32 1.5, %v2233_v40 }
 0x7fd   : > { %v2235_v39 = vmul.f32 %v3982_v29, %v2234_v3 }
 0x7ff   : > { %v2239_v38 = vsel %vm2238_vm1, %v3982_v29, %v2235_v39 }
 0x800   : > { %v2256_v25 = vmul.f32 %v2239_v38, %v5131_v58 }
 0x802   : > { %v2265_v53 = vmul.f32 %v5171_v16, %v2256_v25 }
 0x804   : > { %v5249_v30 = vadd.f32 %v5176_v60, %v2265_v53 }
 0x82d   : > { %v2153_v55 = vpop.xlane.xlu1 %2152 }
 0x82e   : > { %v2161_v31 = vmul.f32 %v2153_v55, %v5087_v62 }
 0x830   : > { %v2169_v27 = vadd.f32 1e-05, %v2161_v31 }
 0x832   : > { %3983 = vrsqrt.f32 %v2169_v27  ;;  %vm2246_vm5 = vweird.f32 %v2169_v27 }
 0x838   : > { %v3984_v52 = vpop.eup %3983 }
 0x839   : > { %v2241_v28 = vmul.f32 %v3984_v52, %v2169_v27  ;;  %vm2247_vm2 = vweird.f32 %v3984_v52 }
 0x83a   : > { %vm2248_vm6 = vmor %vm2246_vm5, %vm2247_vm2 }
 0x83b   : > { %v2242_v54 = vmul.f32 %v3984_v52, %v2241_v28 }
 0x83d   : > { %v2243_v24 = vmul.f32 0.5, %v2242_v54 }
 0x83f   : > { %v2244_v8 = vsub.f32 1.5, %v2243_v24 }
 0x841   : > { %v2245_v36 = vmul.f32 %v3984_v52, %v2244_v8 }
 0x843   : > { %v2249_v61 = vsel %vm2248_vm6, %v3984_v52, %v2245_v36 }
 0x844   : > { %v2257_v41 = vmul.f32 %v2249_v61, %v5163_v34  ;;  %v386_v34 = vld [vmem:[%s385_s1] sm:$0x3] }
 0x845   : > { %v2282_v44 = vperm.slane %v386_v34, 1 }
 0x846   : > { %v2266_v20 = vmul.f32 %v5171_v16, %v2257_v41 }
 0x848   : > { %v5252_v12 = vadd.f32 %v5176_v60, %v2266_v20  ;;  %v2281_v60 = vperm.slane %v386_v34, 0 }
 0x84a   : > { %v2279_v58 = vpack.c.bf16 %v5252_v12, %v5249_v30 }
 0x84c   : > { %3336 = vmatmul.msk.bf16.gmra.mxu3 %vm209_vm4, %v2279_v58  ;;  %3340 = vmatmul.msk.bf16.gmra.mxu0 %vm209_vm4, %v2279_v58 }
 0x84e   : > { %v2375_v16 = vpop.f32.mrf.mxu0 }
 0x84f   : > { %v2376_v48 = vadd.f32 %v2375_v16, %v2282_v44 }
 0x851   : > { %v2396_v26 = vmax.f32 %v2376_v48, 0.0 }
 0x854   : > { %v2346_v33 = vpop.f32.mrf.mxu3 }
 0x855   : > { %v2347_v37 = vadd.f32 %v2346_v33, %v2281_v60 }
 0x856   : > { %v2377_v50 = vpop.f32.mrf.mxu0 }
 0x857   : > { %v2378_v21 = vadd.f32 %v2377_v50, %v2282_v44  ;;  %v2395_v32 = vmax.f32 %v2347_v37, 0.0 }
 0x859   : > { %v2398_v1 = vmax.f32 %v2378_v21, 0.0 }
 0x85b   : > { %v2412_v49 = vpack.c.bf16 %v2398_v1, %v2396_v26 }
 0x85c   : > { %v2348_v0 = vpop.f32.mrf.mxu3 }
 0x85d   : > { %v2349_v47 = vadd.f32 %v2348_v0, %v2281_v60  ;;  %2553 = vmatmul.bf16.vlgmr.msrb.gmra.mxu2 %v2412_v49  ;;  %v2419_v49 = vperm.slane %v5070_v46, 5 }
 0x85f   : > { %v2397_v11 = vmax.f32 %v2349_v47, 0.0 }
 0x861   : > { %v2411_v15 = vpack.c.bf16 %v2397_v11, %v2395_v32 }
 0x863   : > { %2524 = vmatmul.bf16.vlgmr.msrb.gmra.mxu1 %v2411_v15 }
 0x865   : > { %v2380_v29 = vpop.f32.mrf.mxu0 }
 0x866   : > { %v2381_v57 = vadd.f32 %v2380_v29, %v2282_v44 }
 0x868   : > { %v2400_v14 = vmax.f32 %v2381_v57, 0.0 }
 0x86b   : > { %v2351_v45 = vpop.f32.mrf.mxu3 }
 0x86c   : > { %v2352_v31 = vadd.f32 %v2351_v45, %v2281_v60 }
 0x86d   : > { %v2382_v56 = vpop.f32.mrf.mxu0 }
 0x86e   : > { %v2383_v22 = vadd.f32 %v2382_v56, %v2282_v44  ;;  %v2399_v59 = vmax.f32 %v2352_v31, 0.0 }
 0x870   : > { %v2402_v55 = vmax.f32 %v2383_v22, 0.0 }
 0x872   : > { %v2414_v9 = vpack.c.bf16 %v2402_v55, %v2400_v14 }
 0x873   : > { %v2353_v27 = vpop.f32.mrf.mxu3 }
 0x874   : > { %v2354_v17 = vadd.f32 %v2353_v27, %v2281_v60  ;;  %2558 = vmatmul.bf16.gmra.mxu2 %v2414_v9 }
 0x875   : > { %v2385_v40 = vpop.f32.mrf.mxu0 }
 0x876   : > { %v2401_v23 = vmax.f32 %v2354_v17, 0.0  ;;  %v2386_v52 = vadd.f32 %v2385_v40, %v2282_v44 }
 0x878   : > { %v2413_v3 = vpack.c.bf16 %v2401_v23, %v2399_v59  ;;  %v2404_v28 = vmax.f32 %v2386_v52, 0.0 }
 0x87a   : > { %2529 = vmatmul.bf16.gmra.mxu1 %v2413_v3 }
 0x87b   : > { %v2356_v51 = vpop.f32.mrf.mxu3 }
 0x87c   : > { %v2357_v54 = vadd.f32 %v2356_v51, %v2281_v60 }
 0x87d   : > { %v2387_v43 = vpop.f32.mrf.mxu0 }
 0x87e   : > { %v2388_v39 = vadd.f32 %v2387_v43, %v2282_v44  ;;  %v2403_v8 = vmax.f32 %v2357_v54, 0.0 }
 0x880   : > { %v2406_v42 = vmax.f32 %v2388_v39, 0.0 }
 0x882   : > { %v2416_v38 = vpack.c.bf16 %v2406_v42, %v2404_v28 }
 0x883   : > { %v2358_v24 = vpop.f32.mrf.mxu3 }
 0x884   : > { %v2359_v63 = vadd.f32 %v2358_v24, %v2281_v60  ;;  %2563 = vmatmul.bf16.gmra.mxu2 %v2416_v38 }
 0x886   : > { %v2405_v25 = vmax.f32 %v2359_v63, 0.0 }
 0x888   : > { %v2415_v36 = vpack.c.bf16 %v2405_v25, %v2403_v8 }
 0x88a   : > { %2534 = vmatmul.bf16.gmra.mxu1 %v2415_v36 }
 0x8c9   : > { %v2390_v61 = vpop.f32.mrf.mxu0 }
 0x8ca   : > { %v2391_v53 = vadd.f32 %v2390_v61, %v2282_v44 }
 0x8cc   : > { %v2408_v34 = vmax.f32 %v2391_v53, 0.0 }
 0x8cf   : > { %v2361_v41 = vpop.f32.mrf.mxu3 }
 0x8d0   : > { %v2362_v33 = vadd.f32 %v2361_v41, %v2281_v60 }
 0x8d1   : > { %v2392_v20 = vpop.f32.mrf.mxu0 }
 0x8d2   : > { %v2393_v58 = vadd.f32 %v2392_v20, %v2282_v44  ;;  %v2407_v26 = vmax.f32 %v2362_v33, 0.0 }
 0x8d4   : > { %v2410_v16 = vmax.f32 %v2393_v58, 0.0 }
 0x8d6   : > { %v2418_v48 = vpack.c.bf16 %v2410_v16, %v2408_v34 }
 0x8d7   : > { %v2363_v50 = vpop.f32.mrf.mxu3 }
 0x8d8   : > { %v2364_v21 = vadd.f32 %v2363_v50, %v2281_v60  ;;  %2568 = vmatmul.bf16.gmra.mxu2 %v2418_v48 }
 0x8da   : > { %v2409_v1 = vmax.f32 %v2364_v21, 0.0 }
 0x8dc   : > { %v2417_v37 = vpack.c.bf16 %v2409_v1, %v2407_v26 }
 0x8de   : > { %2539 = vmatmul.bf16.gmra.mxu1 %v2417_v37 }
 0x8e0   : > { %v2525_v0 = vpop.f32.mrf.mxu1  ;;  %v2554_v47 = vpop.f32.mrf.mxu2 }
 0x8e1   : > { %v2526_v32 = vadd.f32 %v2525_v0, %v2419_v49 }
 0x8e3   : > { %v2555_v11 = vadd.f32 %v2554_v47, %v2526_v32 }
 0x8e5   : > { %v2574_v15 = vadd.f32 %v2555_v11, %v5182_v13 }
 0x8e7   : > { %v2582_v44 = vsel %vm209_vm4, %v2574_v15, 0.0 }
 0x8e8   : > { %v2527_v29 = vpop.f32.mrf.mxu1  ;;  %2583 = vadd.xlane.f32.xlu0 %v2582_v44  ;;  %v2556_v57 = vpop.f32.mrf.mxu2 }
 0x8e9   : > { %v2528_v45 = vadd.f32 %v2527_v29, %v2419_v49 }
 0x8eb   : > { %v2557_v60 = vadd.f32 %v2556_v57, %v2528_v45 }
 0x8ed   : > { %v2575_v56 = vadd.f32 %v2557_v60, %v5185_v35 }
 0x8ef   : > { %v2585_v22 = vsel %vm209_vm4, %v2575_v56, 0.0 }
 0x8f0   : > { %2586 = vadd.xlane.f32.xlu2 %v2585_v22 }
 0x8f7   : > { %v2530_v14 = vpop.f32.mrf.mxu1  ;;  %v2559_v55 = vpop.f32.mrf.mxu2 }
 0x8f8   : > { %v2531_v31 = vadd.f32 %v2530_v14, %v2419_v49 }
 0x8fa   : > { %v2560_v9 = vadd.f32 %v2559_v55, %v2531_v31 }
 0x8fc   : > { %v2576_v27 = vadd.f32 %v2560_v9, %v5197_v10 }
 0x8fe   : > { %v2588_v13 = vsel %vm209_vm4, %v2576_v27, 0.0 }
 0x8ff   : > { %v2532_v17 = vpop.f32.mrf.mxu1  ;;  %v2561_v40 = vpop.f32.mrf.mxu2  ;;  %2589 = vadd.xlane.f32.xlu1 %v2588_v13 }
 0x900   : > { %v2533_v59 = vadd.f32 %v2532_v17, %v2419_v49 }
 0x902   : > { %v2562_v23 = vadd.f32 %v2561_v40, %v2533_v59 }
 0x904   : > { %v2577_v3 = vadd.f32 %v2562_v23, %v5200_v2 }
 0x906   : > { %v2591_v35 = vsel %vm209_vm4, %v2577_v3, 0.0 }
 0x907   : > { %v2535_v51 = vpop.f32.mrf.mxu1  ;;  %v2564_v52 = vpop.f32.mrf.mxu2  ;;  %2592 = vadd.xlane.f32.xlu0 %v2591_v35 }
 0x908   : > { %v2536_v43 = vadd.f32 %v2535_v51, %v2419_v49 }
 0x90a   : > { %v2565_v39 = vadd.f32 %v2564_v52, %v2536_v43 }
 0x90c   : > { %v2578_v28 = vadd.f32 %v2565_v39, %v5214_v19 }
 0x90e   : > { %v2594_v10 = vsel %vm209_vm4, %v2578_v28, 0.0 }
 0x90f   : > { %v2537_v42 = vpop.f32.mrf.mxu1  ;;  %2595 = vadd.xlane.f32.xlu2 %v2594_v10  ;;  %v2566_v38 = vpop.f32.mrf.mxu2 }
 0x910   : > { %v2538_v54 = vadd.f32 %v2537_v42, %v2419_v49 }
 0x912   : > { %v2567_v24 = vadd.f32 %v2566_v38, %v2538_v54 }
 0x914   : > { %v2579_v63 = vadd.f32 %v2567_v24, %v5211_v18 }
 0x916   : > { %v2597_v2 = vsel %vm209_vm4, %v2579_v63, 0.0 }
 0x917   : > { %2598 = vadd.xlane.f32.xlu1 %v2597_v2 }
 0x95b   : > { %v2584_v8 = vpop.xlane.xlu0 %2583  ;;  %v2540_v25 = vpop.f32.mrf.mxu1 }
 0x95c   : > { %v2606_v36 = vmul.f32 %v2584_v8, %v5087_v62  ;;  %v2541_v61 = vadd.f32 %v2540_v25, %v2419_v49  ;;  %v2569_v41 = vpop.f32.mrf.mxu2 }
 0x95e   : > { %v5277_v53 = vsub.f32 %v2574_v15, %v2606_v36  ;;  %v2570_v19 = vadd.f32 %v2569_v41, %v2541_v61 }
 0x960   : > { %v2580_v20 = vadd.f32 %v2570_v19, %v5249_v30  ;;  %v2622_v58 = vmul.f32 %v5277_v53, %v5277_v53 }
 0x962   : > { %v2630_v34 = vsel %vm209_vm4, %v2622_v58, 0.0  ;;  %v2600_v18 = vsel %vm209_vm4, %v2580_v20, 0.0 }
 0x963   : > { %2631 = vadd.xlane.f32.xlu1 %v2630_v34  ;;  %v2542_v16 = vpop.f32.mrf.mxu1  ;;  %2601 = vadd.xlane.f32.xlu0 %v2600_v18  ;;  %v2587_v33 = vpop.xlane.xlu2 %2586  ;;  %v5331_v34 = vperm.slane %v5070_v46, 3 }
 0x964   : > { %v2543_v48 = vadd.f32 %v2542_v16, %v2419_v49  ;;  %v2607_v50 = vmul.f32 %v2587_v33, %v5087_v62  ;;  %v2571_v21 = vpop.f32.mrf.mxu2  ;;  %v5334_v33 = vperm.slane %v5070_v46, 4 }
 0x966   : > { %v2572_v26 = vadd.f32 %v2571_v21, %v2543_v48  ;;  %v5285_v1 = vsub.f32 %v2575_v56, %v2607_v50 }
 0x968   : > { %v2581_v30 = vadd.f32 %v2572_v26, %v5252_v12  ;;  %v2623_v37 = vmul.f32 %v5285_v1, %v5285_v1 }
 0x96a   : > { %v2603_v0 = vsel %vm209_vm4, %v2581_v30, 0.0  ;;  %v2633_v47 = vsel %vm209_vm4, %v2623_v37, 0.0 }
 0x96b   : > { %2604 = vadd.xlane.f32.xlu2 %v2603_v0  ;;  %2634 = vadd.xlane.f32.xlu0 %v2633_v47 }
 0x972   : > { %v2590_v32 = vpop.xlane.xlu1 %2589 }
 0x973   : > { %v2608_v49 = vmul.f32 %v2590_v32, %v5087_v62 }
 0x975   : > { %v5293_v11 = vsub.f32 %v2576_v27, %v2608_v49 }
 0x977   : > { %v2624_v15 = vmul.f32 %v5293_v11, %v5293_v11 }
 0x979   : > { %v2636_v44 = vsel %vm209_vm4, %v2624_v15, 0.0 }
 0x97a   : > { %v2593_v12 = vpop.xlane.xlu0 %2592  ;;  %2637 = vadd.xlane.f32.xlu2 %v2636_v44 }
 0x97b   : > { %v2609_v29 = vmul.f32 %v2593_v12, %v5087_v62 }
 0x97d   : > { %v5299_v45 = vsub.f32 %v2577_v3, %v2609_v29 }
 0x97f   : > { %v2625_v57 = vmul.f32 %v5299_v45, %v5299_v45 }
 0x981   : > { %v2639_v60 = vsel %vm209_vm4, %v2625_v57, 0.0 }
 0x982   : > { %2640 = vadd.xlane.f32.xlu1 %v2639_v60  ;;  %v2596_v56 = vpop.xlane.xlu2 %2595 }
 0x983   : > { %v2610_v22 = vmul.f32 %v2596_v56, %v5087_v62 }
 0x985   : > { %v5305_v14 = vsub.f32 %v2578_v28, %v2610_v22 }
 0x987   : > { %v2626_v55 = vmul.f32 %v5305_v14, %v5305_v14 }
 0x989   : > { %v2642_v31 = vsel %vm209_vm4, %v2626_v55, 0.0 }
 0x98a   : > { %v2599_v9 = vpop.xlane.xlu1 %2598  ;;  %2643 = vadd.xlane.f32.xlu0 %v2642_v31 }
 0x98b   : > { %v2611_v27 = vmul.f32 %v2599_v9, %v5087_v62 }
 0x98d   : > { %v5311_v13 = vsub.f32 %v2579_v63, %v2611_v27 }
 0x98f   : > { %v2627_v17 = vmul.f32 %v5311_v13, %v5311_v13 }
 0x991   : > { %v2645_v40 = vsel %vm209_vm4, %v2627_v17, 0.0 }
 0x992   : > { %2646 = vadd.xlane.f32.xlu2 %v2645_v40 }
 0x9d6   : > { %v2632_v59 = vpop.xlane.xlu1 %2631  ;;  %v2602_v23 = vpop.xlane.xlu0 %2601 }
 0x9d7   : > { %v2654_v3 = vmul.f32 %v2632_v59, %v5087_v62  ;;  %v2612_v35 = vmul.f32 %v2602_v23, %v5087_v62 }
 0x9d9   : > { %v2662_v51 = vadd.f32 1e-05, %v2654_v3  ;;  %v5318_v52 = vsub.f32 %v2580_v20, %v2612_v35 }
 0x9db   : > { %3985 = vrsqrt.f32 %v2662_v51  ;;  %v2628_v43 = vmul.f32 %v5318_v52, %v5318_v52  ;;  %vm2676_vm8 = vweird.f32 %v2662_v51 }
 0x9dd   : > { %v2648_v39 = vsel %vm209_vm4, %v2628_v43, 0.0 }
 0x9de   : > { %2649 = vadd.xlane.f32.xlu1 %v2648_v39  ;;  %v2635_v28 = vpop.xlane.xlu0 %2634  ;;  %v2605_v10 = vpop.xlane.xlu2 %2604 }
 0x9df   : > { %v2655_v42 = vmul.f32 %v2635_v28, %v5087_v62  ;;  %v2613_v54 = vmul.f32 %v2605_v10, %v5087_v62 }
 0x9e1   : > { %v3986_v38 = vpop.eup %3985  ;;  %v2663_v24 = vadd.f32 1e-05, %v2655_v42  ;;  %v5325_v63 = vsub.f32 %v2581_v30, %v2613_v54 }
 0x9e2   : > { %v2671_v2 = vmul.f32 %v3986_v38, %v2662_v51  ;;  %vm2677_vm7 = vweird.f32 %v3986_v38 }
 0x9e3   : > { %3987 = vrsqrt.f32 %v2663_v24  ;;  %v2629_v8 = vmul.f32 %v5325_v63, %v5325_v63  ;;  %vm2678_vm10 = vmor %vm2676_vm8, %vm2677_vm7  ;;  %vm2686_vm11 = vweird.f32 %v2663_v24 }
 0x9e4   : > { %v2672_v25 = vmul.f32 %v3986_v38, %v2671_v2 }
 0x9e5   : > { %v2651_v36 = vsel %vm209_vm4, %v2629_v8, 0.0 }
 0x9e6   : > { %v2673_v61 = vmul.f32 0.5, %v2672_v25  ;;  %2652 = vadd.xlane.f32.xlu0 %v2651_v36 }
 0x9e8   : > { %v2674_v41 = vsub.f32 1.5, %v2673_v61 }
 0x9e9   : > { %v3988_v19 = vpop.eup %3987 }
 0x9ea   : > { %v2675_v20 = vmul.f32 %v3986_v38, %v2674_v41  ;;  %v2681_v58 = vmul.f32 %v3988_v19, %v2663_v24  ;;  %vm2687_vm3 = vweird.f32 %v3988_v19 }
 0x9eb   : > { %vm2688_vm12 = vmor %vm2686_vm11, %vm2687_vm3 }
 0x9ec   : > { %v2679_v18 = vsel %vm2678_vm10, %v3986_v38, %v2675_v20  ;;  %v2682_v16 = vmul.f32 %v3988_v19, %v2681_v58 }
 0x9ed   : > { %v2750_v48 = vmul.f32 %v2679_v18, %v5277_v53  ;;  %v2638_v50 = vpop.xlane.xlu2 %2637 }
 0x9ee   : > { %v2683_v21 = vmul.f32 0.5, %v2682_v16  ;;  %v2656_v26 = vmul.f32 %v2638_v50, %v5087_v62 }
 0x9ef   : > { %v2759_v30 = vmul.f32 %v5331_v34, %v2750_v48 }
 0x9f0   : > { %v2684_v37 = vsub.f32 1.5, %v2683_v21  ;;  %v2664_v0 = vadd.f32 1e-05, %v2656_v26 }
 0x9f1   : > { %v5340_v44 = vadd.f32 %v5334_v33, %v2759_v30  }
 0x9f2   : > { %v2685_v32 = vmul.f32 %v3988_v19, %v2684_v37  ;;  %3989 = vrsqrt.f32 %v2664_v0  ;;  %vm2696_vm14 = vweird.f32 %v2664_v0 }
 0x9f3   : > { %v5504_v47 = vmov %v5340_v44 }
 0x9f4   : > { %v2689_v46 = vsel %vm2688_vm12, %v3988_v19, %v2685_v32 }
 0x9f5   : > { %v2751_v49 = vmul.f32 %v2689_v46, %v5285_v1  ;;  %v2641_v53 = vpop.xlane.xlu1 %2640 }
 0x9f6   : > { %v2657_v15 = vmul.f32 %v2641_v53, %v5087_v62 }
 0x9f7   : > { %v2760_v12 = vmul.f32 %v5331_v34, %v2751_v49 }
 0x9f8   : > { %v3990_v29 = vpop.eup %3989  ;;  %v2665_v57 = vadd.f32 1e-05, %v2657_v15 }
 0x9f9   : > { %v5346_v50 = vadd.f32 %v5334_v33, %v2760_v12   ;;  %v2691_v60 = vmul.f32 %v3990_v29, %v2664_v0  ;;  %vm2697_vm13 = vweird.f32 %v3990_v29 }
 0x9fa   : > { %3991 = vrsqrt.f32 %v2665_v57  ;;  %vm2698_vm15 = vmor %vm2696_vm14, %vm2697_vm13  ;;  %vm2706_vm1 = vweird.f32 %v2665_v57 }
 0x9fb   : > { %v5505_v56 = vmov %v5346_v50  ;;  %v2692_v44 = vmul.f32 %v3990_v29, %v2691_v60 }
 0x9fc   :  { %v2777_v5 = vpack.c.bf16 (%p301_p0), %v5505_v56, %v5504_v47 }
 0x9fd   : > { %v2693_v22 = vmul.f32 0.5, %v2692_v44  ;;  %v2644_v55 = vpop.xlane.xlu0 %2643 }
 0x9fe   : > { %v2658_v31 = vmul.f32 %v2644_v55, %v5087_v62 }
 0x9ff   : > { %v2694_v9 = vsub.f32 1.5, %v2693_v22 }
 0xa00   : > { %v3992_v1 = vpop.eup %3991  ;;  %v2666_v27 = vadd.f32 1e-05, %v2658_v31 }
 0xa01   : > { %v2695_v17 = vmul.f32 %v3990_v29, %v2694_v9  ;;  %v2701_v40 = vmul.f32 %v3992_v1, %v2665_v57  ;;  %vm2707_vm0 = vweird.f32 %v3992_v1 }
 0xa02   : > { %3993 = vrsqrt.f32 %v2666_v27  ;;  %vm2708_vm2 = vmor %vm2706_vm1, %vm2707_vm0  ;;  %vm2716_vm6 = vweird.f32 %v2666_v27 }
 0xa03   : > { %v2699_v59 = vsel %vm2698_vm15, %v3990_v29, %v2695_v17  ;;  %v2702_v23 = vmul.f32 %v3992_v1, %v2701_v40 }
 0xa04   : > { %v2752_v3 = vmul.f32 %v2699_v59, %v5293_v11 }
 0xa05   : > { %v2703_v35 = vmul.f32 0.5, %v2702_v23  ;;  %v2647_v51 = vpop.xlane.xlu2 %2646 }
 0xa06   : > { %v2761_v43 = vmul.f32 %v5331_v34, %v2752_v3  ;;  %v2659_v39 = vmul.f32 %v2647_v51, %v5087_v62 }
 0xa07   : > { %v2704_v28 = vsub.f32 1.5, %v2703_v35 }
 0xa08   : > { %v3994_v10 = vpop.eup %3993  ;;  %v5353_v60 = vadd.f32 %v5334_v33, %v2761_v43   ;;  %v2667_v54 = vadd.f32 1e-05, %v2659_v39 }
 0xa09   : > { %v2705_v38 = vmul.f32 %v3992_v1, %v2704_v28  ;;  %v2711_v24 = vmul.f32 %v3994_v10, %v2666_v27  ;;  %vm2717_vm5 = vweird.f32 %v3994_v10  ;;  %v3522_v28 = vld [vmem:[%s5485_s13 + $0x8] sm:$0xff] (%p301_p0) }
 0xa0a   : > { %v5506_v42 = vmov %v5353_v60  ;;  %3995 = vrsqrt.f32 %v2667_v54  ;;  %vm2718_vm7 = vmor %vm2716_vm6, %vm2717_vm5  ;;  %vm2726_vm10 = vweird.f32 %v2667_v54 }
 0xa0b   : > { %v2709_v2 = vsel %vm2708_vm2, %v3992_v1, %v2705_v38  ;;  %v2712_v11 = vmul.f32 %v3994_v10, %v2711_v24 }
 0xa0c   : > { %v2753_v8 = vmul.f32 %v2709_v2, %v5299_v45 }
 0xa0d   : > { %v2713_v25 = vmul.f32 0.5, %v2712_v11 }
 0xa0e   : > { %v2762_v36 = vmul.f32 %v5331_v34, %v2753_v8 }
 0xa0f   : > { %v2714_v61 = vsub.f32 1.5, %v2713_v25 }
 0xa10   : > { %v3996_v41 = vpop.eup %3995  ;;  %v5358_v11 = vadd.f32 %v5334_v33, %v2762_v36  }
 0xa11   : > { %v2715_v20 = vmul.f32 %v3994_v10, %v2714_v61  ;;  %v2721_v58 = vmul.f32 %v3996_v41, %v2667_v54  ;;  %vm2727_vm8 = vweird.f32 %v3996_v41 }
 0xa12   : > { %v5507_v19 = vmov %v5358_v11  ;;  %vm2728_vm3 = vmor %vm2726_vm10, %vm2727_vm8 }
 0xa13   : > { %v2719_v18 = vsel %vm2718_vm7, %v3994_v10, %v2715_v20  ;;  %v2722_v16 = vmul.f32 %v3996_v41, %v2721_v58  ;;  %v5514_v11 = vmov %v5507_v19  ;;  %v2778_v6 = vpack.c.bf16 (%p301_p0), %v5507_v19, %v5506_v42  ;;  %v3521_v10 = vld [vmem:[%s5485_s13] sm:$0xff] (%p301_p0) }
 0xa14   : > { %v2754_v48 = vmul.f32 %v2719_v18, %v5305_v14 }
 0xa15   : > { %v2723_v50 = vmul.f32 0.5, %v2722_v16 }
 0xa16   : > { %v2763_v45 = vmul.f32 %v5331_v34, %v2754_v48 }
 0xa17   : > { %v2724_v21 = vsub.f32 1.5, %v2723_v50  ;;  %v5516_v50 = vmov %v5505_v56  ;;  %v3523_v56 = vld [vmem:[%s5485_s13 + $0x10] sm:$0xff] (%p301_p0) }
 0xa18   : > { %v5363_v15 = vadd.f32 %v5334_v33, %v2763_v45  }
 0xa19   : > { %v2725_v30 = vmul.f32 %v3996_v41, %v2724_v21 }
 0xa1a   : > { %v5508_v26 = vmov %v5363_v15 }
 0xa1b   : > { %v2729_v37 = vsel %vm2728_vm3, %v3996_v41, %v2725_v30 }
 0xa1c   : > { %v2755_v0 = vmul.f32 %v2729_v37, %v5311_v13 }
 0xa1e   : > { %v2764_v32 = vmul.f32 %v5331_v34, %v2755_v0 }
 0xa20   : > { %v5368_v22 = vadd.f32 %v5334_v33, %v2764_v32  }
 0xa22   : > { %v5509_v46 = vmov %v5368_v22 }
 0xa23   :  { %v2779_v7 = vpack.c.bf16 (%p301_p0), %v5509_v46, %v5508_v26 }
 0xa51   : > { %v2650_v14 = vpop.xlane.xlu1 %2649 }
 0xa52   : > { %v2660_v49 = vmul.f32 %v2650_v14, %v5087_v62 }
 0xa54   : > { %v2668_v53 = vadd.f32 1e-05, %v2660_v49 }
 0xa56   : > { %3997 = vrsqrt.f32 %v2668_v53  ;;  %vm2736_vm12 = vweird.f32 %v2668_v53 }
 0xa59   : > { %v2653_v12 = vpop.xlane.xlu0 %2652 }
 0xa5a   : > { %v2661_v29 = vmul.f32 %v2653_v12, %v5087_v62 }
 0xa5c   : > { %v3998_v15 = vpop.eup %3997  ;;  %v2669_v57 = vadd.f32 1e-05, %v2661_v29 }
 0xa5d   : > { %v2731_v60 = vmul.f32 %v3998_v15, %v2668_v53  ;;  %vm2737_vm11 = vweird.f32 %v3998_v15 }
 0xa5e   : > { %3999 = vrsqrt.f32 %v2669_v57  ;;  %vm2738_vm13 = vmor %vm2736_vm12, %vm2737_vm11  ;;  %vm2746_vm15 = vweird.f32 %v2669_v57 }
 0xa5f   : > { %v2732_v44 = vmul.f32 %v3998_v15, %v2731_v60  ;;  %v5515_v60 = vmov %v5506_v42  ;;  %v5440_v42 = vld [vmem:[%s5487_s15] sm:$0x7] (%p301_p0) }
 0xa60   :  { %v5443_v54 = vperm.slane (%p301_p0), %v5440_v42, 0 }
 0xa61   : > { %v2733_v55 = vmul.f32 0.5, %v2732_v44  ;;  %v5517_v44 = vmov %v5504_v47  ;;  %v3524_v47 = vld [vmem:[%s5485_s13 + $0x18] sm:$0xff] (%p301_p0) }
 0xa62   :  { %3540 = vmatpush.bf16.msra.mxu1 (%p301_p0), %v3524_v47 }
 0xa63   : > { %v2734_v13 = vsub.f32 1.5, %v2733_v55 }
 0xa64   : > { %v4000_v31 = vpop.eup %3999 }
 0xa65   : > { %v2735_v9 = vmul.f32 %v3998_v15, %v2734_v13  ;;  %v2741_v22 = vmul.f32 %v4000_v31, %v2669_v57  ;;  %vm2747_vm14 = vweird.f32 %v4000_v31 }
 0xa66   : > { %vm2748_vm0 = vmor %vm2746_vm15, %vm2747_vm14  ;;  %3541 = vmatpush.bf16.msra.mxu1 (%p301_p0), %v3523_v56 }
 0xa67   : > { %v2739_v1 = vsel %vm2738_vm13, %v3998_v15, %v2735_v9  ;;  %v2742_v27 = vmul.f32 %v4000_v31, %v2741_v22  ;;  %v5512_v22 = vmov %v5509_v46  ;;  %v5513_v15 = vmov %v5508_v26 }
 0xa68   : > { %v2756_v17 = vmul.f32 %v2739_v1, %v5318_v52  ;;  %v3520_v52 = vld [vmem:[%s5484_s12 + $0x18] sm:$0xff] (%p301_p0) }
 0xa69   : > { %v2743_v40 = vmul.f32 0.5, %v2742_v27  ;;  %2830 = vmatpush.bf16.msra.mxu0 (%p301_p0), %v3520_v52  ;;  %3536 = vmatpush.bf16.msra.mxu3 (%p301_p0), %v3520_v52 }
 0xa6a   : > { %v2765_v62 = vmul.f32 %v5331_v34, %v2756_v17  ;;  %3542 = vmatpush.bf16.msra.mxu1 (%p301_p0), %v3522_v28 }
 0xa6b   : > { %v2744_v59 = vsub.f32 1.5, %v2743_v40 }
 0xa6c   : > { %v2774_v23 = vadd.f32 %v5334_v33, %v2765_v62  }
 0xa6d   : > { %v2745_v3 = vmul.f32 %v4000_v31, %v2744_v59 }
 0xa6e   :  { %3543 = vmatpush.bf16.msra.mxu1 (%p301_p0), %v3521_v10 }
 0xa6f   : > { %v2749_v35 = vsel %vm2748_vm0, %v4000_v31, %v2745_v3  ;;  %v5511_v31 = vmov %v2774_v23 }
 0xa70   : > { %v2757_v51 = vmul.f32 %v2749_v35, %v5325_v63  ;;  %v3519_v63 = vld [vmem:[%s5484_s12 + $0x10] sm:$0xff] (%p301_p0) }
 0xa71   :  { %2831 = vmatpush.bf16.msra.mxu0 (%p301_p0), %v3519_v63  ;;  %3537 = vmatpush.bf16.msra.mxu3 (%p301_p0), %v3519_v63 }
 0xa72   : > { %v2766_v43 = vmul.f32 %v5331_v34, %v2757_v51  ;;  %303 = sbr.rel (!%p301_p0) target bundleno = 358 (0x166), region = 98 }
 0xa74   : > { %v2775_v39 = vadd.f32 %v5334_v33, %v2766_v43   ;;  %v3518_v33 = vld [vmem:[%s5484_s12 + $0x8] sm:$0xff] (%p301_p0) }
 0xa75   :  { %2832 = vmatpush.bf16.msra.mxu0 (%p301_p0), %v3518_v33  ;;  %3538 = vmatpush.bf16.msra.mxu3 (%p301_p0), %v3518_v33 }
 0xa76   : > { %v5510_v34 = vmov %v2775_v39 }
 0xa77   :  { %v2780_v34 = vpack.c.bf16 %v2775_v39, %v2774_v23 }
 0xa79   :  { %2833 = vmatpush.bf16.msra.mxu0 %v3517_v4  ;;  %3539 = vmatpush.bf16.msra.mxu3 %v3517_v4 }
 0xa7c   :  { %3421 = vmatmul.msk.bf16.vlgmr.msra.gmra.mxu0 %vm209_vm4, %v2777_v5  ;;  %3422 = vmatmul.msk.bf16.vlgmr.msra.gmra.mxu3 %vm209_vm4, %v2778_v6 }
 0xa7d   :  { %2956 = vmatpush.bf16.msrb.mxu0 %v3524_v47 }
 0xa81   :  { %2957 = vmatpush.bf16.msrb.mxu0 %v3523_v56 }
 0xa85   :  { %2958 = vmatpush.bf16.msrb.mxu0 %v3522_v28  ;;  %v3526_v28 = vld [vmem:[%s5486_s14 + $0x8] sm:$0xff] }
 0xa86   :  { %3069 = vmatpush.bf16.msra.mxu2 %v3526_v28  ;;  %v3037_v28 = vperm.slane %v5440_v42, 2 }
 0xa89   :  { %2959 = vmatpush.bf16.msrb.mxu0 %v3521_v10  ;;  %v3525_v10 = vld [vmem:[%s5486_s14] sm:$0xff]  ;;  %s4139_s14 = smov [#allocation2]  }
 0xa8a   :  { %3070 = vmatpush.bf16.msra.mxu2 %v3525_v10  ;;  %s3104_s4 = sshll.u32 %s4139_s14, 4  ;;  %s3105_s4 = int_to_ptr.vmem [resolvable:$true] %s3104_s4 }
 0xa8c   :  { %3423 = vmatmul.msk.bf16.gmra.mxu3 %vm209_vm4, %v2779_v7 }
 0xa9c   :  { %3424 = vmatmul.msk.bf16.gmra.mxu3 %vm209_vm4, %v2780_v34 }
 0xaf9   :  { %v2835_v38 = vpop.f32.mrf.mxu0 }
 0xafa   :  { %v2836_v24 = vadd.f32 %v2835_v38, %v5443_v54 }
 0xafc   :  { %v2863_v2 = vmin.f32 %v2836_v24, 0.0  ;;  %vm2855_vm1 = vcmp.gt.f32.partialorder %v2836_v24, 0.0 }
 0xafe   :  { %v2871_v8 = vmul.f32 1.442695, %v2863_v2 }
 0xaff   :  { %v2840_v11 = vpop.f32.mrf.mxu3 }
 0xb00   :  { %v2841_v25 = vadd.f32 %v2840_v11, %v5443_v54  ;;  %4001 = vpow2.f32 %v2871_v8 }
 0xb01   :  { %v2837_v36 = vpop.f32.mrf.mxu0 }
 0xb02   :  { %v2865_v61 = vmin.f32 %v2841_v25, 0.0  ;;  %v2838_v41 = vadd.f32 %v2837_v36, %v5443_v54  ;;  %vm2857_vm5 = vcmp.gt.f32.partialorder %v2841_v25, 0.0 }
 0xb04   :  { %v2864_v19 = vmin.f32 %v2838_v41, 0.0  ;;  %v2875_v20 = vmul.f32 1.442695, %v2865_v61  ;;  %vm2856_vm2 = vcmp.gt.f32.partialorder %v2838_v41, 0.0 }
 0xb06   :  { %v2873_v58 = vmul.f32 1.442695, %v2864_v19  ;;  %v4002_v48 = vpop.eup %4001 }
 0xb07   :  { %v2842_v18 = vpop.f32.mrf.mxu3  ;;  %v3425_v21 = vadd.f32 -1.0, %v4002_v48 }
 0xb08   :  { %4003 = vpow2.f32 %v2873_v58  ;;  %v2843_v16 = vadd.f32 %v2842_v18, %v5443_v54 }
 0xb09   :  { %4005 = vpow2.f32 %v2875_v20  ;;  %v2895_v46 = vsel %vm2855_vm1, %v2836_v24, %v3425_v21 }
 0xb0a   :  { %v2866_v50 = vmin.f32 %v2843_v16, 0.0  ;;  %vm2858_vm6 = vcmp.gt.f32.partialorder %v2843_v16, 0.0 }
 0xb0c   :  { %v2877_v45 = vmul.f32 1.442695, %v2866_v50 }
 0xb0e   :  { %v4004_v26 = vpop.eup %4003  ;;  %4007 = vpow2.f32 %v2877_v45 }
 0xb0f   :  { %v3426_v30 = vadd.f32 -1.0, %v4004_v26  ;;  %v2845_v37 = vpop.f32.mrf.mxu3  ;;  %v4006_v0 = vpop.eup %4005 }
 0xb10   :  { %v2846_v32 = vadd.f32 %v2845_v37, %v5443_v54  ;;  %v3427_v12 = vadd.f32 -1.0, %v4006_v0 }
 0xb11   :  { %v2896_v14 = vsel %vm2856_vm2, %v2838_v41, %v3426_v30 }
 0xb12   :  { %v2867_v49 = vmin.f32 %v2846_v32, 0.0  ;;  %v2903_v53 = vpack.c.bf16 %v2896_v14, %v2895_v46  ;;  %v2897_v44 = vsel %vm2857_vm5, %v2841_v25, %v3427_v12  ;;  %vm2859_vm7 = vcmp.gt.f32.partialorder %v2846_v32, 0.0 }
 0xb14   :  { %v4008_v29 = vpop.eup %4007  ;;  %3449 = vmatmul.msk.bf16.vlgmr.msrb.gmra.mxu0 %vm209_vm4, %v2903_v53  ;;  %v2879_v57 = vmul.f32 1.442695, %v2867_v49 }
 0xb15   :  { %v3428_v15 = vadd.f32 -1.0, %v4008_v29 }
 0xb16   :  { %4009 = vpow2.f32 %v2879_v57 }
 0xb17   :  { %v2847_v60 = vpop.f32.mrf.mxu3  ;;  %v2898_v55 = vsel %vm2858_vm6, %v2843_v16, %v3428_v15 }
 0xb18   :  { %v2848_v13 = vadd.f32 %v2847_v60, %v5443_v54  ;;  %v2904_v31 = vpack.c.bf16 %v2898_v55, %v2897_v44 }
 0xb1a   :  { %v2868_v9 = vmin.f32 %v2848_v13, 0.0  ;;  %3450 = vmatmul.msk.bf16.vlgmr.msra.gmra.mxu1 %vm209_vm4, %v2904_v31  ;;  %vm2860_vm8 = vcmp.gt.f32.partialorder %v2848_v13, 0.0 }
 0xb1c   :  { %v2881_v22 = vmul.f32 1.442695, %v2868_v9  ;;  %v4010_v27 = vpop.eup %4009 }
 0xb1d   :  { %v3429_v62 = vadd.f32 -1.0, %v4010_v27 }
 0xb1e   :  { %4011 = vpow2.f32 %v2881_v22 }
 0xb1f   :  { %v2850_v1 = vpop.f32.mrf.mxu3  ;;  %v2899_v51 = vsel %vm2859_vm7, %v2846_v32, %v3429_v62 }
 0xb20   :  { %v2851_v17 = vadd.f32 %v2850_v1, %v5443_v54 }
 0xb22   :  { %v2869_v40 = vmin.f32 %v2851_v17, 0.0  ;;  %vm2861_vm10 = vcmp.gt.f32.partialorder %v2851_v17, 0.0 }
 0xb24   :  { %v4012_v59 = vpop.eup %4011  ;;  %v2883_v3 = vmul.f32 1.442695, %v2869_v40 }
 0xb25   :  { %v3430_v23 = vadd.f32 -1.0, %v4012_v59 }
 0xb26   :  { %4013 = vpow2.f32 %v2883_v3 }
 0xb27   :  { %v2852_v35 = vpop.f32.mrf.mxu3  ;;  %v2900_v43 = vsel %vm2860_vm8, %v2848_v13, %v3430_v23 }
 0xb28   :  { %v2853_v39 = vadd.f32 %v2852_v35, %v5443_v54  ;;  %v2905_v52 = vpack.c.bf16 %v2900_v43, %v2899_v51  ;;  %v2915_v54 = vperm.slane %v5440_v42, 1 }
 0xb2a   :  { %v2870_v63 = vmin.f32 %v2853_v39, 0.0  ;;  %3451 = vmatmul.msk.bf16.gmra.mxu1 %vm209_vm4, %v2905_v52  ;;  %vm2862_vm3 = vcmp.gt.f32.partialorder %v2853_v39, 0.0 }
 0xb2c   :  { %v2885_v33 = vmul.f32 1.442695, %v2870_v63  ;;  %v4014_v4 = vpop.eup %4013 }
 0xb2d   :  { %v3431_v5 = vadd.f32 -1.0, %v4014_v4 }
 0xb2e   :  { %4015 = vpow2.f32 %v2885_v33 }
 0xb2f   :  { %v2901_v34 = vsel %vm2861_vm10, %v2851_v17, %v3431_v5 }
 0xb34   :  { %v4016_v6 = vpop.eup %4015 }
 0xb35   :  { %v3432_v7 = vadd.f32 -1.0, %v4016_v6 }
 0xb37   :  { %v2902_v47 = vsel %vm2862_vm3, %v2853_v39, %v3432_v7 }
 0xb38   :  { %v2906_v56 = vpack.c.bf16 %v2902_v47, %v2901_v34 }
 0xb3a   :  { %3452 = vmatmul.msk.bf16.gmra.mxu1 %vm209_vm4, %v2906_v56 }
 0xb91   :  { %v2961_v38 = vpop.f32.mrf.mxu0 }
 0xb92   :  { %v2962_v24 = vadd.f32 %v2961_v38, %v2915_v54 }
 0xb94   :  { %v2989_v2 = vmin.f32 %v2962_v24, 0.0  ;;  %vm2981_vm4 = vcmp.gt.f32.partialorder %v2962_v24, 0.0 }
 0xb96   :  { %v2997_v8 = vmul.f32 1.442695, %v2989_v2 }
 0xb97   :  { %v2966_v11 = vpop.f32.mrf.mxu1 }
 0xb98   :  { %4017 = vpow2.f32 %v2997_v8  ;;  %v2967_v20 = vadd.f32 %v2966_v11, %v2915_v54 }
 0xb99   :  { %v2963_v25 = vpop.f32.mrf.mxu0 }
 0xb9a   :  { %v2964_v36 = vadd.f32 %v2963_v25, %v2915_v54  ;;  %v2991_v48 = vmin.f32 %v2967_v20, 0.0  ;;  %vm2983_vm13 = vcmp.gt.f32.partialorder %v2967_v20, 0.0 }
 0xb9c   :  { %v2990_v61 = vmin.f32 %v2964_v36, 0.0  ;;  %v3001_v37 = vmul.f32 1.442695, %v2991_v48  ;;  %vm2982_vm11 = vcmp.gt.f32.partialorder %v2964_v36, 0.0 }
 0xb9e   :  { %v2999_v41 = vmul.f32 1.442695, %v2990_v61  ;;  %v4018_v18 = vpop.eup %4017 }
 0xb9f   :  { %v2968_v19 = vpop.f32.mrf.mxu1  ;;  %v3453_v50 = vadd.f32 -1.0, %v4018_v18 }
 0xba0   :  { %4019 = vpow2.f32 %v2999_v41  ;;  %v2969_v58 = vadd.f32 %v2968_v19, %v2915_v54 }
 0xba1   :  { %v3021_v0 = vsel %vm2981_vm4, %v2962_v24, %v3453_v50 }
 0xba2   :  { %v2992_v16 = vmin.f32 %v2969_v58, 0.0  ;;  %vm2984_vm12 = vcmp.gt.f32.partialorder %v2969_v58, 0.0 }
 0xba4   :  { %v3003_v21 = vmul.f32 1.442695, %v2992_v16 }
 0xba6   :  { %v4020_v45 = vpop.eup %4019  ;;  %4021 = vpow2.f32 %v3003_v21 }
 0xba7   :  { %v2971_v26 = vpop.f32.mrf.mxu1  ;;  %v3454_v30 = vadd.f32 -1.0, %v4020_v45  ;;  %4023 = vpow2.f32 %v3001_v37 }
 0xba8   :  { %v2972_v53 = vadd.f32 %v2971_v26, %v2915_v54 }
 0xba9   :  { %v3022_v32 = vsel %vm2982_vm11, %v2964_v36, %v3454_v30 }
 0xbaa   :  { %v3029_v46 = vpack.c.bf16 %v3022_v32, %v3021_v0  ;;  %v2993_v60 = vmin.f32 %v2972_v53, 0.0  ;;  %vm2985_vm15 = vcmp.gt.f32.partialorder %v2972_v53, 0.0 }
 0xbac   :  { %3469 = vmatmul.msk.bf16.vlgmr.msra.gmra.mxu2 %vm1979_vm9, %v3029_v46  ;;  %v4022_v49 = vpop.eup %4021  ;;  %v3005_v9 = vmul.f32 1.442695, %v2993_v60 }
 0xbad   :  { %v4024_v29 = vpop.eup %4023  ;;  %v3456_v57 = vadd.f32 -1.0, %v4022_v49 }
 0xbae   :  { %v3455_v44 = vadd.f32 -1.0, %v4024_v29 }
 0xbaf   :  { %v2973_v14 = vpop.f32.mrf.mxu1  ;;  %v3024_v31 = vsel %vm2984_vm12, %v2969_v58, %v3456_v57 }
 0xbb0   :  { %v2974_v12 = vadd.f32 %v2973_v14, %v2915_v54  ;;  %v3023_v22 = vsel %vm2983_vm13, %v2967_v20, %v3455_v44 }
 0xbb1   :  { %v3030_v1 = vpack.c.bf16 %v3024_v31, %v3023_v22 }
 0xbb2   :  { %v2994_v15 = vmin.f32 %v2974_v12, 0.0  ;;  %vm2986_vm14 = vcmp.gt.f32.partialorder %v2974_v12, 0.0 }
 0xbb4   :  { %v3007_v55 = vmul.f32 1.442695, %v2994_v15 }
 0xbb6   :  { %4025 = vpow2.f32 %v3007_v55 }
 0xbb7   :  { %v2976_v13 = vpop.f32.mrf.mxu1  ;;  %4027 = vpow2.f32 %v3005_v9 }
 0xbb8   :  { %v2977_v40 = vadd.f32 %v2976_v13, %v2915_v54 }
 0xbba   :  { %v2995_v35 = vmin.f32 %v2977_v40, 0.0  ;;  %vm2987_vm1 = vcmp.gt.f32.partialorder %v2977_v40, 0.0 }
 0xbbc   :  { %3470 = vmatmul.msk.bf16.gmra.mxu2 %vm1979_vm9, %v3030_v1  ;;  %v4026_v17 = vpop.eup %4025  ;;  %v3009_v52 = vmul.f32 1.442695, %v2995_v35 }
 0xbbd   :  { %v4028_v59 = vpop.eup %4027  ;;  %v3458_v3 = vadd.f32 -1.0, %v4026_v17 }
 0xbbe   :  { %v3457_v51 = vadd.f32 -1.0, %v4028_v59 }
 0xbbf   :  { %v2978_v27 = vpop.f32.mrf.mxu1  ;;  %v3026_v39 = vsel %vm2986_vm14, %v2974_v12, %v3458_v3 }
 0xbc0   :  { %v2979_v62 = vadd.f32 %v2978_v27, %v2915_v54  ;;  %v3025_v63 = vsel %vm2985_vm15, %v2972_v53, %v3457_v51 }
 0xbc1   :  { %v3031_v33 = vpack.c.bf16 %v3026_v39, %v3025_v63 }
 0xbc2   :  { %v2996_v23 = vmin.f32 %v2979_v62, 0.0  ;;  %vm2988_vm0 = vcmp.gt.f32.partialorder %v2979_v62, 0.0 }
 0xbc4   :  { %v3011_v43 = vmul.f32 1.442695, %v2996_v23 }
 0xbc6   :  { %4029 = vpow2.f32 %v3011_v43 }
 0xbc7   :  { %4031 = vpow2.f32 %v3009_v52 }
 0xbcc   :  { %3471 = vmatmul.msk.bf16.gmra.mxu2 %vm1979_vm9, %v3031_v33  ;;  %v4030_v4 = vpop.eup %4029 }
 0xbcd   :  { %v4032_v5 = vpop.eup %4031  ;;  %v3460_v6 = vadd.f32 -1.0, %v4030_v4 }
 0xbce   :  { %v3459_v7 = vadd.f32 -1.0, %v4032_v5 }
 0xbcf   :  { %v3028_v34 = vsel %vm2988_vm0, %v2979_v62, %v3460_v6 }
 0xbd0   :  { %v3027_v47 = vsel %vm2987_vm1, %v2977_v40, %v3459_v7 }
 0xbd1   :  { %v3032_v56 = vpack.c.bf16 %v3028_v34, %v3027_v47 }
 0xbdc   :  { %3472 = vmatmul.msk.bf16.gmra.mxu2 %vm1979_vm9, %v3032_v56 }
 0xc2f   :  { %v3072_v10 = vpop.f32.mrf.mxu2 }
 0xc30   :  { %v3073_v54 = vadd.f32 %v3072_v10, %v3037_v28 }
 0xc32   :  { %3092 = vst [vmem:[#allocation2] sm:$0xff] %v3073_v54 }
 0xc37   :  { %v3074_v38 = vpop.f32.mrf.mxu2 }
 0xc38   :  { %v3075_v24 = vadd.f32 %v3074_v38, %v3037_v28 }
 0xc3a   :  { %3093 = vst [vmem:[#allocation2 + $0x8] sm:$0xff] %v3075_v24 }
 0xc3f   :  { %v3077_v2 = vpop.f32.mrf.mxu2 }
 0xc40   :  { %v3078_v11 = vadd.f32 %v3077_v2, %v3037_v28 }
 0xc42   :  { %3094 = vst [vmem:[#allocation2 + $0x10] sm:$0xff] %v3078_v11 }
 0xc47   :  { %v3079_v8 = vpop.f32.mrf.mxu2 }
 0xc48   :  { %v3080_v25 = vadd.f32 %v3079_v8, %v3037_v28 }
 0xc4a   :  { %3095 = vst [vmem:[#allocation2 + $0x18] sm:$0xff] %v3080_v25 }
 0xc4f   :  { %v3082_v36 = vpop.f32.mrf.mxu2 }
 0xc50   :  { %v3083_v61 = vadd.f32 %v3082_v36, %v3037_v28 }
 0xc52   :  { %3096 = vst [vmem:[#allocation2 + $0x20] sm:$0xff] %v3083_v61 }
 0xc57   :  { %v3084_v41 = vpop.f32.mrf.mxu2 }
 0xc58   :  { %v3085_v19 = vadd.f32 %v3084_v41, %v3037_v28 }
 0xc5a   :  { %3097 = vst [vmem:[#allocation2 + $0x28] sm:$0xff] %v3085_v19 }
 0xc5f   :  { %v3087_v20 = vpop.f32.mrf.mxu2 }
 0xc60   :  { %v3088_v42 = vadd.f32 %v3087_v20, %v3037_v28 }
 0xc62   :  { %3098 = vst [vmem:[#allocation2 + $0x30] sm:$0xff] %v3088_v42 }
 0xc67   :  { %v3089_v58 = vpop.f32.mrf.mxu2 }
 0xc68   :  { %v3090_v18 = vadd.f32 %v3089_v58, %v3037_v28 }
 0xc6a   :  { %3099 = vst [vmem:[#allocation2 + $0x38] sm:$0xff] %v3090_v18 }
 0xc6b   :  { %3112 = dma.vmem_to_hbm [thread:$0]  %s3105_s4, 1024, %s3107_s29, [#allocation3], %s4140_s30, %s4140_s30, %s4141_s26  }
 0xc6c   :  { %4093 = dma.done.wait [#allocation3], 1024  }
 0xc6d   :  { %4094 = vsyncadd [#allocation3], 4294966272 }
 0xc6e   :  { %3117 = vsyncpa [#allocation3], 1 }

</bundles_post_ra>
